<compile_context>
chip_gen: v7x
topology: tpu7x:2x2x1
jax: 0.10.0
libtpu: 0.0.40
codegen_flags: <defaults>
</compile_context>

<pallas_src>
import math

import jax
import jax.numpy as jnp
from jax.experimental import pallas as pl
from jax.experimental.pallas import tpu as pltpu

LANE = 128


def _round_up(a, m):
    return ((a + m - 1) // m) * m


def _cdiv(a, b):
    return -(-a // b)


# ----------------------------------------------------------------------------
# Pallas kernel: fused 3-layer MLP (matmul + shift + ReLU, x2; matmul + bias)
# ----------------------------------------------------------------------------
def _predictor_mlp_kernel(x_ref, w1_ref, t1_ref, w2_ref, t2_ref, w3_ref, b3_ref,
                          o_ref):
    # Cast x to bf16 in-kernel (cheap VPU work hidden under the MXU; x is
    # fetched from HBM as f32 only once, no wrapper-side cast pass).
    x = x_ref[...].astype(jnp.bfloat16)

    # fc1 (BN1 scale folded into W1) -> add shift -> ReLU
    h = jnp.dot(x, w1_ref[...], preferred_element_type=jnp.float32)
    h = jnp.maximum(h + t1_ref[...], 0.0).astype(jnp.bfloat16)

    # fc2 (BN2 scale folded into W2) -> add shift -> ReLU
    h = jnp.dot(h, w2_ref[...], preferred_element_type=jnp.float32)
    h = jnp.maximum(h + t2_ref[...], 0.0).astype(jnp.bfloat16)

    # fc3 (+ bias); output is lane-padded to 128 columns (lane-dense store)
    out = jnp.dot(h, w3_ref[...], preferred_element_type=jnp.float32) + b3_ref[...]
    o_ref[...] = out.astype(o_ref.dtype)


# ----------------------------------------------------------------------------
# Tile selection: 16-aligned (bf16 sublane packing), padding-minimizing.
# ----------------------------------------------------------------------------
def _select_batch_tile(B, batch_tile=None):
    B16 = _round_up(B, 16)
    if batch_tile is not None:
        bt = _round_up(max(16, batch_tile), 16)
        return min(bt, B16, 1024)
    if B16 <= 512:
        # Small batch: weight-DMA bound; one grid step, no padding, no per-step
        # overhead.  (On v7x the megacore split only pays off at large B.)
        return B16
    # Large batch: ~256-row MXU-friendly tiles, sized so padding waste < 1 tile.
    n = _cdiv(B, 256)
    bt = _round_up(_cdiv(B, n), 16)
    return min(bt, 1024)   # v7x VMEM cap (64 MiB physical)


def predictor_cnn_forward(x, params, num_class, *, batch_tile=None):
    """x: (B, in_dim) float32.  Returns logits (B, num_class) float32."""
    (w1, t1, w2, t2, w3, b3) = params
    B, in_dim = x.shape
    h1 = w1.shape[1]
    h2 = w2.shape[1]
    nc_pad = w3.shape[1]

    bt = _select_batch_tile(B, batch_tile)
    Bp = _round_up(B, bt)

    xin = x
    if Bp != B:
        # TODO(synk): an overlapping last tile (Element-indexed block) would
        # avoid this extra HBM pass over x for ragged batches.
        xin = jnp.pad(x, ((0, Bp - B), (0, 0)))

    grid = (Bp // bt,)

    def fixed(i):  # weights / shift vectors: same (only) block every step
        return (0, 0)

    def const_spec(shape):
        # Constant index_map -> DMA'd exactly once; single-buffered to reclaim
        # the useless second buffer's VMEM.
        return pl.BlockSpec(shape, fixed, pipeline_mode=pl.Buffered(1))

    out = pl.pallas_call(
        _predictor_mlp_kernel,
        out_shape=jax.ShapeDtypeStruct((Bp, nc_pad), jnp.bfloat16),
        grid_spec=pltpu.PrefetchScalarGridSpec(
            num_scalar_prefetch=0,
            grid=grid,
            in_specs=[
                pl.BlockSpec((bt, in_dim), lambda i: (i, 0)),  # x tile (f32)
                const_spec((in_dim, h1)),                      # W1 (bf16, scale-folded)
                const_spec((1, h1)),                           # shift1 (f32)
                const_spec((h1, h2)),                          # W2 (bf16, scale-folded)
                const_spec((1, h2)),                           # shift2 (f32)
                const_spec((h2, nc_pad)),                      # W3 (bf16, lane-padded)
                const_spec((1, nc_pad)),                       # b3  (f32, lane-padded)
            ],
            out_specs=pl.BlockSpec((bt, nc_pad), lambda i: (i, 0)),
        ),
        compiler_params=pltpu.CompilerParams(
            dimension_semantics=("parallel",),
            vmem_limit_bytes=48 * 1024 * 1024,
        ),
    )(xin, w1, t1, w2, t2, w3, b3)

    return out[:B, :num_class].astype(jnp.float32)


# ----------------------------------------------------------------------------
# Deterministic parameter construction (mirrors PredictorCNN.__init__, eval)
# ----------------------------------------------------------------------------
def make_params(key, in_dim, num_class, h1=4096, h2=256, eps=1e-5):
    keys = jax.random.split(key, 6)

    def kaiming_normal_fan_out(k, fan_in, fan_out):
        # PyTorch Linear weight is (out, in); mode='fan_out' => fan = out_features.
        std = math.sqrt(2.0 / fan_out)
        w_torch = jax.random.normal(k, (fan_out, fan_in), jnp.float32) * std
        return w_torch.T  # store as (in, out) for y = x @ W

    def default_bias(k, fan_in, fan_out):
        bound = 1.0 / math.sqrt(fan_in)
        return jax.random.uniform(k, (fan_out,), jnp.float32, -bound, bound)

    w1 = kaiming_normal_fan_out(keys[0], in_dim, h1)
    b1 = default_bias(keys[1], in_dim, h1)
    w2 = kaiming_normal_fan_out(keys[2], h1, h2)
    b2 = default_bias(keys[3], h1, h2)
    w3 = kaiming_normal_fan_out(keys[4], h2, num_class)
    b3 = default_bias(keys[5], h2, num_class)

    # Eval-mode BatchNorm1d fold:
    #   y = scale * (x @ W + bias - mean) + beta  ==  x @ (W * scale) + shift
    # (works for arbitrary trained gamma/beta/running stats; init values here)
    def fold(w, bias, gamma, beta, r_mean, r_var):
        scale = gamma / jnp.sqrt(r_var + eps)
        shift = beta + scale * (bias - r_mean)
        return w * scale[None, :], shift[None, :]

    g1 = jnp.ones((h1,), jnp.float32); be1 = jnp.zeros((h1,), jnp.float32)
    rm1 = jnp.zeros((h1,), jnp.float32); rv1 = jnp.ones((h1,), jnp.float32)
    g2 = jnp.ones((h2,), jnp.float32); be2 = jnp.zeros((h2,), jnp.float32)
    rm2 = jnp.zeros((h2,), jnp.float32); rv2 = jnp.ones((h2,), jnp.float32)

    w1f, t1 = fold(w1, b1, g1, be1, rm1, rv1)
    w2f, t2 = fold(w2, b2, g2, be2, rm2, rv2)

    # Pad fc3 to a lane-dense (…, 128) output slab; extra columns are zero.
    nc_pad = _round_up(num_class, LANE)
    w3p = jnp.zeros((h2, nc_pad), jnp.float32).at[:, :num_class].set(w3)
    b3p = jnp.zeros((1, nc_pad), jnp.float32).at[0, :num_class].set(b3)

    return (w1f.astype(jnp.bfloat16), t1.astype(jnp.float32),
            w2f.astype(jnp.bfloat16), t2.astype(jnp.float32),
            w3p.astype(jnp.bfloat16), b3p.astype(jnp.float32))


def reference_forward(x, params, num_class):
    """Pure-JAX reference with the same bf16-weight / f32-accumulate numerics."""
    (w1, t1, w2, t2, w3, b3) = params
    xb = x.astype(jnp.bfloat16)
    h = jnp.maximum(jnp.dot(xb, w1, preferred_element_type=jnp.float32) + t1, 0.0)
    h = jnp.maximum(jnp.dot(h.astype(jnp.bfloat16), w2,
                            preferred_element_type=jnp.float32) + t2, 0.0)
    out = jnp.dot(h.astype(jnp.bfloat16), w3,
                  preferred_element_type=jnp.float32) + b3
    return out[:, :num_class]


if __name__ == "__main__":
    # Small, module-consistent shapes: batch=64, in_dim=128, num_class=7
    # (hidden sizes 4096 and 256 are fixed by the module definition).
    B, IN_DIM, NUM_CLASS = 64, 128, 7

    key = jax.random.PRNGKey(0)
    kx, kp = jax.random.split(key)
    x = jax.random.normal(kx, (B, IN_DIM), jnp.float32)
    params = make_params(kp, IN_DIM, NUM_CLASS)

    # Default tile selection: B=64 -> one 64-row tile, grid=(1,), no padding.
    out = predictor_cnn_forward(x, params, NUM_CLASS)
    out = jax.block_until_ready(out)

    ref = reference_forward(x, params, NUM_CLASS)
    assert out.shape == (B, NUM_CLASS)
    assert jnp.allclose(out, ref, atol=5e-2, rtol=2e-2), "mismatch vs JAX reference"

    # Ragged-batch path (padding + 16-aligned tile) sanity check.
    x2 = jax.random.normal(jax.random.PRNGKey(1), (40, IN_DIM), jnp.float32)
    out2 = jax.block_until_ready(predictor_cnn_forward(x2, params, NUM_CLASS))
    ref2 = reference_forward(x2, params, NUM_CLASS)
    assert out2.shape == (40, NUM_CLASS)
    assert jnp.allclose(out2, ref2, atol=5e-2, rtol=2e-2), "mismatch (ragged batch)"

    print("KERNEL_OK")
</pallas_src>

<mosaic_0001>
module attributes {stable_mosaic.version = 11 : i64} {
  func.func @_predictor_mlp_kernel(%arg0: i32, %arg1: memref<64x128xf32, #tpu.memory_space<vmem>>, %arg2: memref<128x4096xbf16, #tpu.memory_space<vmem>>, %arg3: memref<1x4096xf32, #tpu.memory_space<vmem>>, %arg4: memref<4096x256xbf16, #tpu.memory_space<vmem>>, %arg5: memref<1x256xf32, #tpu.memory_space<vmem>>, %arg6: memref<256x128xbf16, #tpu.memory_space<vmem>>, %arg7: memref<1x128xf32, #tpu.memory_space<vmem>>, %arg8: memref<64x128xbf16, #tpu.memory_space<vmem>>) attributes {dimension_semantics = [#tpu.dimension_semantics<parallel>], iteration_bounds = array<i64: 1>, scalar_prefetch = 0 : i64, scratch_operands = 0 : i64, tpu.core_type = #tpu.core_type<tc>, window_params = [{transform_indices = @transform_0, window_bounds = array<i64: 64, 128>}, {pipeline_mode = #tpu.pipeline_mode<synchronous>, transform_indices = @transform_1, window_bounds = array<i64: 128, 4096>}, {pipeline_mode = #tpu.pipeline_mode<synchronous>, transform_indices = @transform_2, window_bounds = array<i64: 1, 4096>}, {pipeline_mode = #tpu.pipeline_mode<synchronous>, transform_indices = @transform_3, window_bounds = array<i64: 4096, 256>}, {pipeline_mode = #tpu.pipeline_mode<synchronous>, transform_indices = @transform_4, window_bounds = array<i64: 1, 256>}, {pipeline_mode = #tpu.pipeline_mode<synchronous>, transform_indices = @transform_5, window_bounds = array<i64: 256, 128>}, {pipeline_mode = #tpu.pipeline_mode<synchronous>, transform_indices = @transform_6, window_bounds = array<i64: 1, 128>}, {transform_indices = @transform_7, window_bounds = array<i64: 64, 128>}]} {
    %c0 = arith.constant 0 : index
    %c0_0 = arith.constant 0 : index
    %0 = vector.load %arg1[%c0, %c0_0] : memref<64x128xf32, #tpu.memory_space<vmem>>, vector<64x128xf32>
    %1 = arith.truncf %0 : vector<64x128xf32> to vector<64x128xbf16>
    %c0_1 = arith.constant 0 : index
    %c0_2 = arith.constant 0 : index
    %2 = vector.load %arg2[%c0_1, %c0_2] : memref<128x4096xbf16, #tpu.memory_space<vmem>>, vector<128x4096xbf16>
    %cst = arith.constant dense<0.000000e+00> : vector<64x4096xf32>
    %3 = tpu.matmul %1, %2, %cst {dimension_numbers = #tpu.dot_dimension_numbers<[1], [0], [0], [1], [0, 0, 1, 1], [], []>} : vector<64x128xbf16>, vector<128x4096xbf16>, vector<64x4096xf32> -> vector<64x4096xf32>
    %c0_3 = arith.constant 0 : index
    %c0_4 = arith.constant 0 : index
    %4 = vector.load %arg3[%c0_3, %c0_4] : memref<1x4096xf32, #tpu.memory_space<vmem>>, vector<1x4096xf32>
    %5 = vector.broadcast %4 : vector<1x4096xf32> to vector<64x4096xf32>
    %6 = arith.addf %3, %5 : vector<64x4096xf32>
    %cst_5 = arith.constant 0.000000e+00 : f32
    %7 = vector.broadcast %cst_5 : f32 to vector<64x4096xf32>
    %8 = arith.maximumf %6, %7 : vector<64x4096xf32>
    %9 = arith.truncf %8 : vector<64x4096xf32> to vector<64x4096xbf16>
    %c0_6 = arith.constant 0 : index
    %c0_7 = arith.constant 0 : index
    %10 = vector.load %arg4[%c0_6, %c0_7] : memref<4096x256xbf16, #tpu.memory_space<vmem>>, vector<4096x256xbf16>
    %cst_8 = arith.constant dense<0.000000e+00> : vector<64x256xf32>
    %11 = tpu.matmul %9, %10, %cst_8 {dimension_numbers = #tpu.dot_dimension_numbers<[1], [0], [0], [1], [0, 0, 1, 1], [], []>} : vector<64x4096xbf16>, vector<4096x256xbf16>, vector<64x256xf32> -> vector<64x256xf32>
    %c0_9 = arith.constant 0 : index
    %c0_10 = arith.constant 0 : index
    %12 = vector.load %arg5[%c0_9, %c0_10] : memref<1x256xf32, #tpu.memory_space<vmem>>, vector<1x256xf32>
    %13 = vector.broadcast %12 : vector<1x256xf32> to vector<64x256xf32>
    %14 = arith.addf %11, %13 : vector<64x256xf32>
    %cst_11 = arith.constant 0.000000e+00 : f32
    %15 = vector.broadcast %cst_11 : f32 to vector<64x256xf32>
    %16 = arith.maximumf %14, %15 : vector<64x256xf32>
    %17 = arith.truncf %16 : vector<64x256xf32> to vector<64x256xbf16>
    %c0_12 = arith.constant 0 : index
    %c0_13 = arith.constant 0 : index
    %18 = vector.load %arg6[%c0_12, %c0_13] : memref<256x128xbf16, #tpu.memory_space<vmem>>, vector<256x128xbf16>
    %cst_14 = arith.constant dense<0.000000e+00> : vector<64x128xf32>
    %19 = tpu.matmul %17, %18, %cst_14 {dimension_numbers = #tpu.dot_dimension_numbers<[1], [0], [0], [1], [0, 0, 1, 1], [], []>} : vector<64x256xbf16>, vector<256x128xbf16>, vector<64x128xf32> -> vector<64x128xf32>
    %c0_15 = arith.constant 0 : index
    %c0_16 = arith.constant 0 : index
    %20 = vector.load %arg7[%c0_15, %c0_16] : memref<1x128xf32, #tpu.memory_space<vmem>>, vector<1x128xf32>
    %21 = vector.broadcast %20 : vector<1x128xf32> to vector<64x128xf32>
    %22 = arith.addf %19, %21 : vector<64x128xf32>
    %23 = arith.truncf %22 : vector<64x128xf32> to vector<64x128xbf16>
    %c0_17 = arith.constant 0 : index
    %c0_18 = arith.constant 0 : index
    %24 = vector.load %arg8[%c0_17, %c0_18] : memref<64x128xbf16, #tpu.memory_space<vmem>>, vector<64x128xbf16>
    tpu.vector_store %arg8[%c0_17, %c0_18], %23 {strides = array<i32>} : memref<64x128xbf16, #tpu.memory_space<vmem>>, vector<64x128xbf16>,
    return
  }
  func.func @transform_0(%arg0: i32) -> (i32, i32) {
    %c0_i32 = arith.constant 0 : i32
    %c0_i32_0 = arith.constant 0 : i32
    return %arg0, %c0_i32 : i32, i32
  }
  func.func @transform_1(%arg0: i32) -> (i32, i32) {
    %c0_i32 = arith.constant 0 : i32
    %c0_i32_0 = arith.constant 0 : i32
    %c0_i32_1 = arith.constant 0 : i32
    return %c0_i32, %c0_i32_0 : i32, i32
  }
  func.func @transform_2(%arg0: i32) -> (i32, i32) {
    %c0_i32 = arith.constant 0 : i32
    %c0_i32_0 = arith.constant 0 : i32
    %c0_i32_1 = arith.constant 0 : i32
    return %c0_i32, %c0_i32_0 : i32, i32
  }
  func.func @transform_3(%arg0: i32) -> (i32, i32) {
    %c0_i32 = arith.constant 0 : i32
    %c0_i32_0 = arith.constant 0 : i32
    %c0_i32_1 = arith.constant 0 : i32
    return %c0_i32, %c0_i32_0 : i32, i32
  }
  func.func @transform_4(%arg0: i32) -> (i32, i32) {
    %c0_i32 = arith.constant 0 : i32
    %c0_i32_0 = arith.constant 0 : i32
    %c0_i32_1 = arith.constant 0 : i32
    return %c0_i32, %c0_i32_0 : i32, i32
  }
  func.func @transform_5(%arg0: i32) -> (i32, i32) {
    %c0_i32 = arith.constant 0 : i32
    %c0_i32_0 = arith.constant 0 : i32
    %c0_i32_1 = arith.constant 0 : i32
    return %c0_i32, %c0_i32_0 : i32, i32
  }
  func.func @transform_6(%arg0: i32) -> (i32, i32) {
    %c0_i32 = arith.constant 0 : i32
    %c0_i32_0 = arith.constant 0 : i32
    %c0_i32_1 = arith.constant 0 : i32
    return %c0_i32, %c0_i32_0 : i32, i32
  }
  func.func @transform_7(%arg0: i32) -> (i32, i32) {
    %c0_i32 = arith.constant 0 : i32
    %c0_i32_0 = arith.constant 0 : i32
    return %arg0, %c0_i32 : i32, i32
  }
}

</mosaic_0001>

<bundles_post_ra>
// kernel: tpu_custom_call.1
= control target key start
LH: loop header
LB: loop body
LE: loop exit
PB: predicated region body
PF: predicated region fallthrough
CT: control target
= control target key end

     0   :  { %12 = vsyncpa [#allocation3], 0  ;;  %s11177_s0 = inlined_call_operand.hbm [shape: f32[64,128], index: 0, kind: input, shape index: {}]   ;;  %s11178_s1 = inlined_call_operand.hbm [shape: bf16[128,4096], index: 1, kind: input, shape index: {}]   ;;  %s11179_s2 = inlined_call_operand.hbm [shape: f32[1,4096], index: 2, kind: input, shape index: {}]   ;;  %s11180_s3 = inlined_call_operand.hbm [shape: bf16[4096,256], index: 3, kind: input, shape index: {}]   ;;  %s11181_s4 = inlined_call_operand.hbm [shape: f32[1,256], index: 4, kind: input, shape index: {}]   ;;  %s11182_s5 = inlined_call_operand.hbm [shape: bf16[256,128], index: 5, kind: input, shape index: {}]   ;;  %s11183_s6 = inlined_call_operand.hbm [shape: f32[1,128], index: 6, kind: input, shape index: {}]   ;;  %s11184_s7 = inlined_call_operand.hbm [shape: bf16[64,128], index: 7, kind: output, shape index: {}]  }
   0x1   :  { %13 = vsyncpa [#allocation6], 0 }
   0x2   :  { %14 = vsyncpa [#allocation9], 0 }
   0x3   :  { %15 = vsyncpa [#allocation12], 0 }
   0x4   :  { %16 = vsyncpa [#allocation4], 0  ;;  %s10027_s24 = smov [#allocation5]   ;;  %s9841_s28 = scalar_lea.hbm %s11178_s1, 32768 }
   0x5   :  { %s34_s25 = sshll.u32 %s10027_s24, 4  ;;  %p9842_p0 = scmp.ne.s32.totalorder %s11178_s1, %s9841_s28  ;;  %s35_s25 = int_to_ptr.vmem [resolvable:$true] %s34_s25 }
   0x6   :  { %p9845_p1 = scmp.lt.u32.totalorder %s9841_s28, %s11178_s1 }
   0x8   :  { %p9847_p2 = pnand %p9845_p1, %p9842_p0 }
   0xa   :  { %9850 = shalt.err (!%p9847_p2)
}
   0xb   :  { %s9851_s10 = scalar_lea.vmem %s35_s25, 32768  ;;  %p9856_p4 = scmp.lt.s32.totalorder %s35_s25, %s35_s25 }
   0xc   :  { %p9852_p3 = scmp.ne.s32.totalorder %s35_s25, %s9851_s10  ;;  %p9857_p5 = scmp.lt.s32.totalorder %s9851_s10, %s9851_s10 }
   0xe   :  { %p9858_p6 = por %p9857_p5, %p9856_p4 }
  0x10   :  { %p9859_p7 = pnand %p9858_p6, %p9852_p3 }
  0x12   :  { %9862 = shalt.err (!%p9859_p7)
}
  0x13   :  { %s10028_s11 = smov 2048   ;;  %s10029_s12 = smov 128  }
  0x14   :  { %40 = dma.hbm_to_vmem [thread:$0]  %s11178_s1, 32768, %s35_s25, [#allocation6], %s10028_s11, %s10028_s11, %s10029_s12  }
  0x15   :  { %s10030_s15 = smov [#allocation8]   ;;  %s10031_s17 = smov [#allocation11]  }
  0x16   :  { %s56_s16 = sshll.u32 %s10030_s15, 4  ;;  %s78_s18 = sshll.u32 %s10031_s17, 4  ;;  %s57_s16 = int_to_ptr.vmem [resolvable:$true] %s56_s16  ;;  %s10094_s18 = int_to_ptr.vmem [resolvable:$true] %s78_s18 }
  0x17   :  { %s9863_s21 = scalar_lea.hbm %s11180_s3, 65536 }
  0x18   :  { %p9864_p8 = scmp.ne.s32.totalorder %s11180_s3, %s9863_s21  ;;  %p9867_p9 = scmp.lt.u32.totalorder %s9863_s21, %s11180_s3 }
  0x1a   :  { %p9869_p10 = pnand %p9867_p9, %p9864_p8 }
  0x1c   :  { %9872 = shalt.err (!%p9869_p10)
}
  0x1d   :  { %s9873_s1 = scalar_lea.vmem %s57_s16, 65536  ;;  %p9878_p12 = scmp.lt.s32.totalorder %s57_s16, %s57_s16 }
  0x1e   :  { %p9874_p11 = scmp.ne.s32.totalorder %s57_s16, %s9873_s1  ;;  %p9879_p13 = scmp.lt.s32.totalorder %s9873_s1, %s9873_s1 }
  0x20   :  { %p9880_p0 = por %p9879_p13, %p9878_p12 }
  0x22   :  { %p9881_p1 = pnand %p9880_p0, %p9874_p11 }
  0x24   :  { %9884 = shalt.err (!%p9881_p1)
}
  0x25   :  { %s10032_s25 = smov 8   ;;  %s9885_s8 = scalar_lea.hbm %s11182_s5, 2048 }
  0x26   :  { %62 = dma.hbm_to_vmem [thread:$0]  %s11180_s3, 65536, %s57_s16, [#allocation9], %s10029_s12, %s10029_s12, %s10032_s25  }
  0x27   :  { %p9886_p2 = scmp.ne.s32.totalorder %s11182_s5, %s9885_s8  ;;  %p9889_p3 = scmp.lt.u32.totalorder %s9885_s8, %s11182_s5 }
  0x29   :  { %p9891_p4 = pnand %p9889_p3, %p9886_p2 }
  0x2b   :  { %9894 = shalt.err (!%p9891_p4)
}
  0x2c   :  { %s9895_s14 = scalar_lea.vmem %s10094_s18, 2048  ;;  %p9900_p6 = scmp.lt.s32.totalorder %s10094_s18, %s10094_s18 }
  0x2d   :  { %p9896_p5 = scmp.ne.s32.totalorder %s10094_s18, %s9895_s14  ;;  %p9901_p7 = scmp.lt.s32.totalorder %s9895_s14, %s9895_s14 }
  0x2f   :  { %p9902_p8 = por %p9901_p7, %p9900_p6 }
  0x31   :  { %p9903_p9 = pnand %p9902_p8, %p9896_p5 }
  0x33   :  { %9906 = shalt.err (!%p9903_p9)
}
  0x34   :  { %s10033_s3 = smov 64   ;;  %s10034_s15 = smov 4  }
  0x35   :  { %84 = dma.hbm_to_vmem [thread:$0]  %s11182_s5, 2048, %s10094_s18, [#allocation12], %s10033_s3, %s10033_s3, %s10034_s15  }
  0x36   :  { %s10035_s19 = smov [#allocation2]   ;;  %s10036_s21 = smov [#allocation7]  }
  0x37   :  { %s22_s20 = sshll.u32 %s10035_s19, 4  ;;  %s47_s22 = sshll.u32 %s10036_s21, 4  ;;  %s23_s20 = int_to_ptr.vmem [resolvable:$true] %s22_s20  ;;  %s48_s22 = int_to_ptr.vmem [resolvable:$true] %s47_s22 }
  0x38   :  { %s9907_s26 = scalar_lea.hbm %s11177_s0, 1024 }
  0x39   :  { %p9908_p10 = scmp.ne.s32.totalorder %s11177_s0, %s9907_s26  ;;  %p9911_p11 = scmp.lt.u32.totalorder %s9907_s26, %s11177_s0 }
  0x3b   :  { %p9913_p12 = pnand %p9911_p11, %p9908_p10 }
  0x3d   :  { %9916 = shalt.err (!%p9913_p12)
}
  0x3e   :  { %s9917_s5 = scalar_lea.vmem %s23_s20, 1024  ;;  %p9922_p0 = scmp.lt.s32.totalorder %s23_s20, %s23_s20 }
  0x3f   :  { %p9918_p13 = scmp.ne.s32.totalorder %s23_s20, %s9917_s5  ;;  %p9923_p1 = scmp.lt.s32.totalorder %s9917_s5, %s9917_s5 }
  0x41   :  { %p9924_p2 = por %p9923_p1, %p9922_p0 }
  0x43   :  { %p9925_p3 = pnand %p9924_p2, %p9918_p13 }
  0x45   :  { %9928 = shalt.err (!%p9925_p3)
}
  0x46   :  { %28 = dma.hbm_to_vmem [thread:$0]  %s11177_s0, 1024, %s23_s20, [#allocation3], %s10029_s12, %s10029_s12, %s10032_s25  }
  0x47   :  { %s9929_s10 = scalar_lea.hbm %s11179_s2, 512 }
  0x48   :  { %p9930_p4 = scmp.ne.s32.totalorder %s11179_s2, %s9929_s10  ;;  %p9933_p5 = scmp.lt.u32.totalorder %s9929_s10, %s11179_s2 }
  0x4a   :  { %p9935_p6 = pnand %p9933_p5, %p9930_p4 }
  0x4c   :  { %9938 = shalt.err (!%p9935_p6)
}
  0x4d   :  { %s9939_s17 = scalar_lea.vmem %s48_s22, 512  ;;  %p9944_p8 = scmp.lt.s32.totalorder %s48_s22, %s48_s22 }
  0x4e   :  { %p9940_p7 = scmp.ne.s32.totalorder %s48_s22, %s9939_s17  ;;  %p9945_p9 = scmp.lt.s32.totalorder %s9939_s17, %s9939_s17 }
  0x50   :  { %p9946_p10 = por %p9945_p9, %p9944_p8 }
  0x52   :  { %p9947_p11 = pnand %p9946_p10, %p9940_p7 }
  0x54   :  { %9950 = shalt.err (!%p9947_p11)
}
  0x55   :  { %50 = dma.hbm_to_vmem [thread:$0]  %s11179_s2, 512, %s48_s22, [#allocation6]  }
  0x56   :  { %s10037_s25 = smov [#allocation10]   ;;  %s10038_s20 = smov [#allocation13]  }
  0x57   :  { %s69_s19 = sshll.u32 %s10037_s25, 4  ;;  %s91_s21 = sshll.u32 %s10038_s20, 4  ;;  %s70_s19 = int_to_ptr.vmem [resolvable:$true] %s69_s19  ;;  %s92_s21 = int_to_ptr.vmem [resolvable:$true] %s91_s21 }
  0x58   :  { %s9951_s26 = scalar_lea.hbm %s11181_s4, 32 }
  0x59   :  { %p9952_p12 = scmp.ne.s32.totalorder %s11181_s4, %s9951_s26  ;;  %p9955_p13 = scmp.lt.u32.totalorder %s9951_s26, %s11181_s4 }
  0x5b   :  { %p9957_p0 = pnand %p9955_p13, %p9952_p12 }
  0x5d   :  { %9960 = shalt.err (!%p9957_p0)
}
  0x5e   :  { %s9961_s2 = scalar_lea.vmem %s70_s19, 32  ;;  %p9966_p2 = scmp.lt.s32.totalorder %s70_s19, %s70_s19 }
  0x5f   :  { %p9962_p1 = scmp.ne.s32.totalorder %s70_s19, %s9961_s2  ;;  %p9967_p3 = scmp.lt.s32.totalorder %s9961_s2, %s9961_s2 }
  0x61   :  { %p9968_p4 = por %p9967_p3, %p9966_p2 }
  0x63   :  { %p9969_p5 = pnand %p9968_p4, %p9962_p1 }
  0x65   :  { %9972 = shalt.err (!%p9969_p5)
}
  0x66   :  { %72 = dma.hbm_to_vmem [thread:$0]  %s11181_s4, 32, %s70_s19, [#allocation9]  }
  0x67   :  { %s9973_s8 = scalar_lea.hbm %s11183_s6, 16 }
  0x68   :  { %p9974_p6 = scmp.ne.s32.totalorder %s11183_s6, %s9973_s8  ;;  %p9977_p7 = scmp.lt.u32.totalorder %s9973_s8, %s11183_s6 }
  0x6a   :  { %p9979_p8 = pnand %p9977_p7, %p9974_p6 }
  0x6c   :  { %9982 = shalt.err (!%p9979_p8)
}
  0x6d   :  { %s9983_s14 = scalar_lea.vmem %s92_s21, 16  ;;  %s9987_s16 = scalar_lea.vmem %s92_s21, 32 }
  0x6e   :  { %p9984_p9 = scmp.ne.s32.totalorder %s92_s21, %s9983_s14  ;;  %p9988_p10 = scmp.lt.s32.totalorder %s92_s21, %s92_s21 }
  0x6f   :  { %p9989_p11 = scmp.lt.s32.totalorder %s9987_s16, %s9983_s14 }
  0x71   :  { %p9990_p12 = por %p9989_p11, %p9988_p10 }
  0x73   :  { %p9991_p13 = pnand %p9990_p12, %p9984_p9 }
  0x75   :  { %9994 = shalt.err (!%p9991_p13)
}
  0x76   :  { %94 = dma.hbm_to_vmem [thread:$0]  %s11183_s6, 16, %s92_s21, [#allocation12]  }
  0x77   :  { %10017 = dma.done.wait [#allocation3], 1024  }
  0x78   :  { %10018 = vsyncadd [#allocation3], 4294966272 }
  0x79   :  { %10019 = dma.done.wait [#allocation6], 33280  }
  0x7a   :  { %10020 = vsyncadd [#allocation6], 4294934016 }
  0x7b   :  { %10021 = dma.done.wait [#allocation9], 65568  }
  0x7c   :  { %10022 = vsyncadd [#allocation9], 4294901728 }
  0x7d   :  { %10023 = dma.done.wait [#allocation12], 2064  }
  0x7e   :  { %10024 = vsyncadd [#allocation12], 4294965232  ;;  %v10039_v0 = vmov 0   ;;  %v129_v1 = vld [vmem:[#allocation5] sm:$0xff]  ;;  %v131_v26 = vld [vmem:[#allocation5 + $0x10] sm:$0xff]  ;;  %s10040_s6 = smov [#allocation14]  }
  0x7f   :  { %1865 = vmatprep.mubr.bf16.mxu1 %v10039_v0  ;;  %2011 = vmatprep.mubr.bf16.mxu0 %v10039_v0  ;;  %v145_v2 = vld [vmem:[#allocation5 + $0x80] sm:$0xff]  ;;  %v147_v27 = vld [vmem:[#allocation5 + $0x90] sm:$0xff]  ;;  %v130_v45 = vld [vmem:[#allocation5 + $0x8] sm:$0xff]  ;;  %s7906_s0 = sshll.u32 %s10040_s6, 4  ;;  %s7907_s0 = int_to_ptr.vmem [resolvable:$true] %s7906_s0 }
  0x80   :  { %v161_v3 = vld [vmem:[#allocation5 + $0x100] sm:$0xff]  ;;  %v7922_v4 = vcombine.high %v129_v1, %v145_v2  ;;  %v7921_v5 = vcombine.low %v129_v1, %v145_v2  ;;  %v7926_v28 = vcombine.high %v131_v26, %v147_v27  ;;  %v7925_v29 = vcombine.low %v131_v26, %v147_v27  ;;  %v163_v30 = vld [vmem:[#allocation5 + $0x110] sm:$0xff]  ;;  %v146_v46 = vld [vmem:[#allocation5 + $0x88] sm:$0xff]  ;;  %s9995_s12 = scalar_lea.vmem %s7907_s0, 512  ;;  %p10000_p1 = scmp.lt.s32.totalorder %s7907_s0, %s7907_s0 }
  0x81   :  { %v177_v6 = vld [vmem:[#allocation5 + $0x180] sm:$0xff]  ;;  %v179_v31 = vld [vmem:[#allocation5 + $0x190] sm:$0xff]  ;;  %v118_v51 = vld [vmem:[#allocation2 + $0x8] sm:$0xff]  ;;  %v7924_v54 = vcombine.high %v130_v45, %v146_v46  ;;  %v7923_v60 = vcombine.low %v130_v45, %v146_v46  ;;  %p9996_p0 = scmp.ne.s32.totalorder %s7907_s0, %s9995_s12  ;;  %p10001_p2 = scmp.lt.s32.totalorder %s9995_s12, %s9995_s12 }
  0x82   :  { %v7954_v7 = vcombine.high %v161_v3, %v177_v6  ;;  %v193_v8 = vld [vmem:[#allocation5 + $0x200] sm:$0xff]  ;;  %1833 = vmatprep.subr.bf16.mxu1 %v7922_v4  ;;  %v7953_v10 = vcombine.low %v161_v3, %v177_v6  ;;  %v7958_v33 = vcombine.high %v163_v30, %v179_v31  ;;  %v195_v34 = vld [vmem:[#allocation5 + $0x210] sm:$0xff]  ;;  %1979 = vmatprep.subr.bf16.mxu0 %v7926_v28  ;;  %v162_v55 = vld [vmem:[#allocation5 + $0x108] sm:$0xff] }
  0x83   :  { %v209_v9 = vld [vmem:[#allocation5 + $0x280] sm:$0xff]  ;;  %1834 = vmatpush1.bf16.msra.mxu1 %v7921_v5  ;;  %v211_v36 = vld [vmem:[#allocation5 + $0x290] sm:$0xff]  ;;  %1980 = vmatpush1.bf16.msra.mxu0 %v7925_v29  ;;  %v7957_v39 = vcombine.low %v163_v30, %v179_v31  ;;  %v178_v56 = vld [vmem:[#allocation5 + $0x188] sm:$0xff]  ;;  %p10002_p3 = por %p10001_p2, %p10000_p1 }
  0x84   :  { %1835 = vmatprep.subr.bf16.mxu1 %v7954_v7  ;;  %v7986_v11 = vcombine.high %v193_v8, %v209_v9  ;;  %v225_v12 = vld [vmem:[#allocation5 + $0x300] sm:$0xff]  ;;  %v7985_v14 = vcombine.low %v193_v8, %v209_v9  ;;  %1981 = vmatprep.subr.bf16.mxu0 %v7958_v33  ;;  %v7990_v40 = vcombine.high %v195_v34, %v211_v36  ;;  %v227_v42 = vld [vmem:[#allocation5 + $0x310] sm:$0xff]  ;;  %v194_v1 = vld [vmem:[#allocation5 + $0x208] sm:$0xff] }
  0x85   :  { %v241_v13 = vld [vmem:[#allocation5 + $0x380] sm:$0xff]  ;;  %v243_v43 = vld [vmem:[#allocation5 + $0x390] sm:$0xff]  ;;  %v7989_v47 = vcombine.low %v195_v34, %v211_v36  ;;  %v7956_v63 = vcombine.high %v162_v55, %v178_v56  ;;  %v210_v2 = vld [vmem:[#allocation5 + $0x288] sm:$0xff]  ;;  %v7955_v6 = vcombine.low %v162_v55, %v178_v56  ;;  %p10003_p4 = pnand %p10002_p3, %p9996_p0 }
  0x86   :  { %v8018_v15 = vcombine.high %v225_v12, %v241_v13  ;;  %v257_v16 = vld [vmem:[#allocation5 + $0x400] sm:$0xff]  ;;  %v8017_v18 = vcombine.low %v225_v12, %v241_v13  ;;  %v8022_v49 = vcombine.high %v227_v42, %v243_v43  ;;  %v259_v52 = vld [vmem:[#allocation5 + $0x410] sm:$0xff]  ;;  %v8021_v57 = vcombine.low %v227_v42, %v243_v43  ;;  %v120_v7 = vld [vmem:[#allocation2 + $0x18] sm:$0xff] }
  0x87   :  { %1836 = vmatpush1.bf16.msra.mxu1 %v7953_v10  ;;  %v273_v17 = vld [vmem:[#allocation5 + $0x480] sm:$0xff]  ;;  %1982 = vmatpush1.bf16.msra.mxu0 %v7957_v39  ;;  %v275_v53 = vld [vmem:[#allocation5 + $0x490] sm:$0xff]  ;;  %v7988_v10 = vcombine.high %v194_v1, %v210_v2  ;;  %v242_v12 = vld [vmem:[#allocation5 + $0x388] sm:$0xff] }
  0x88   :  { %1837 = vmatprep.subr.bf16.mxu1 %v7986_v11  ;;  %v8050_v19 = vcombine.high %v257_v16, %v273_v17  ;;  %v289_v20 = vld [vmem:[#allocation5 + $0x500] sm:$0xff]  ;;  %v8049_v22 = vcombine.low %v257_v16, %v273_v17  ;;  %1983 = vmatprep.subr.bf16.mxu0 %v7990_v40  ;;  %v8054_v59 = vcombine.high %v259_v52, %v275_v53  ;;  %v291_v61 = vld [vmem:[#allocation5 + $0x510] sm:$0xff]  ;;  %v226_v11 = vld [vmem:[#allocation5 + $0x308] sm:$0xff] }
  0x89   :  { %v305_v21 = vld [vmem:[#allocation5 + $0x580] sm:$0xff]  ;;  %v307_v62 = vld [vmem:[#allocation5 + $0x590] sm:$0xff]  ;;  %v8053_v3 = vcombine.low %v259_v52, %v275_v53  ;;  %v7987_v16 = vcombine.low %v194_v1, %v210_v2  ;;  %v122_v26 = vld [vmem:[#allocation2 + $0x28] sm:$0xff] }
  0x8a   :  { %v8082_v23 = vcombine.high %v289_v20, %v305_v21  ;;  %v321_v24 = vld [vmem:[#allocation5 + $0x600] sm:$0xff]  ;;  %v8081_v32 = vcombine.low %v289_v20, %v305_v21  ;;  %v119_v4 = vld [vmem:[#allocation2 + $0x10] sm:$0xff]  ;;  %v8086_v5 = vcombine.high %v291_v61, %v307_v62  ;;  %v8085_v13 = vcombine.low %v291_v61, %v307_v62  ;;  %v258_v20 = vld [vmem:[#allocation5 + $0x408] sm:$0xff] }
  0x8b   :  { %1838 = vmatpush1.bf16.msra.mxu1 %v7985_v14  ;;  %v337_v25 = vld [vmem:[#allocation5 + $0x680] sm:$0xff]  ;;  %1984 = vmatpush1.bf16.msra.mxu0 %v7989_v47  ;;  %v323_v8 = vld [vmem:[#allocation5 + $0x610] sm:$0xff]  ;;  %v10188_v14 = vpack.c.bf16 %v120_v7, %v119_v4  ;;  %v274_v21 = vld [vmem:[#allocation5 + $0x488] sm:$0xff] }
  0x8c   :  { %1839 = vmatprep.subr.bf16.mxu1 %v8018_v15  ;;  %v8114_v35 = vcombine.high %v321_v24, %v337_v25  ;;  %v353_v37 = vld [vmem:[#allocation5 + $0x700] sm:$0xff]  ;;  %v8113_v41 = vcombine.low %v321_v24, %v337_v25  ;;  %1985 = vmatprep.subr.bf16.mxu0 %v8022_v49  ;;  %v339_v9 = vld [vmem:[#allocation5 + $0x690] sm:$0xff]  ;;  %v8019_v25 = vcombine.low %v226_v11, %v242_v12  ;;  %v290_v30 = vld [vmem:[#allocation5 + $0x508] sm:$0xff] }
  0x8d   :  { %v369_v38 = vld [vmem:[#allocation5 + $0x780] sm:$0xff]  ;;  %v8118_v15 = vcombine.high %v323_v8, %v339_v9  ;;  %v355_v17 = vld [vmem:[#allocation5 + $0x710] sm:$0xff]  ;;  %v8052_v29 = vcombine.high %v258_v20, %v274_v21  ;;  %v306_v31 = vld [vmem:[#allocation5 + $0x588] sm:$0xff] }
  0x8e   :  { %v8146_v44 = vcombine.high %v353_v37, %v369_v38  ;;  %v117_v48 = vld [vmem:[#allocation2] sm:$0xff]  ;;  %v8145_v50 = vcombine.low %v353_v37, %v369_v38  ;;  %v322_v36 = vld [vmem:[#allocation5 + $0x608] sm:$0xff]  ;;  %v8084_v40 = vcombine.high %v290_v30, %v306_v31  ;;  %v123_v42 = vld [vmem:[#allocation2 + $0x30] sm:$0xff]  ;;  %v8083_v45 = vcombine.low %v290_v30, %v306_v31 }
  0x8f   :  { %1840 = vmatpush1.bf16.msra.mxu1 %v8017_v18  ;;  %v10184_v58 = vpack.c.bf16 %v118_v51, %v117_v48  ;;  %1986 = vmatpush1.bf16.msra.mxu0 %v8021_v57  ;;  %v371_v18 = vld [vmem:[#allocation5 + $0x790] sm:$0xff]  ;;  %v133_v27 = vld [vmem:[#allocation5 + $0x20] sm:$0xff]  ;;  %v338_v37 = vld [vmem:[#allocation5 + $0x688] sm:$0xff] }
  0x90   :  { %1841 = vmatprep.subr.bf16.mxu1 %v8050_v19  ;;  %1987 = vmatprep.subr.bf16.mxu0 %v8054_v59  ;;  %v8020_v19 = vcombine.high %v226_v11, %v242_v12  ;;  %v8150_v24 = vcombine.high %v355_v17, %v371_v18  ;;  %v149_v28 = vld [vmem:[#allocation5 + $0xa0] sm:$0xff]  ;;  %v124_v43 = vld [vmem:[#allocation2 + $0x38] sm:$0xff]  ;;  %v354_v46 = vld [vmem:[#allocation5 + $0x708] sm:$0xff] }
  0x91   :  { %v7930_v34 = vcombine.high %v133_v27, %v149_v28  ;;  %v165_v38 = vld [vmem:[#allocation5 + $0x120] sm:$0xff]  ;;  %v370_v47 = vld [vmem:[#allocation5 + $0x788] sm:$0xff]  ;;  %v10198_v52 = vpack.c.bf16 %v124_v43, %v123_v42  ;;  %v132_v55 = vld [vmem:[#allocation5 + $0x18] sm:$0xff] }
  0x92   :  { %v181_v39 = vld [vmem:[#allocation5 + $0x1a0] sm:$0xff]  ;;  %v148_v56 = vld [vmem:[#allocation5 + $0x98] sm:$0xff] }
  0x93   :  { %1842 = vmatpush1.bf16.msra.mxu1 %v8049_v22  ;;  %1988 = vmatpush1.bf16.msra.mxu0 %v8053_v3  ;;  %v8117_v22 = vcombine.low %v323_v8, %v339_v9  ;;  %v197_v48 = vld [vmem:[#allocation5 + $0x220] sm:$0xff]  ;;  %v7961_v51 = vcombine.low %v165_v38, %v181_v39  ;;  %v164_v1 = vld [vmem:[#allocation5 + $0x118] sm:$0xff]  ;;  %v7927_v8 = vcombine.low %v132_v55, %v148_v56 }
  0x94   :  { %1843 = vmatprep.subr.bf16.mxu1 %v8082_v23  ;;  %1989 = vmatprep.subr.bf16.mxu0 %v8086_v5  ;;  %v121_v23 = vld [vmem:[#allocation2 + $0x20] sm:$0xff]  ;;  %v180_v2 = vld [vmem:[#allocation5 + $0x198] sm:$0xff]  ;;  %v7928_v5 = vcombine.high %v132_v55, %v148_v56  ;;  %v215_v55 = vld [vmem:[#allocation5 + $0x2b0] sm:$0xff] }
  0x95   :  { %v10192_v33 = vpack.c.bf16 %v122_v26, %v121_v23  ;;  %v213_v49 = vld [vmem:[#allocation5 + $0x2a0] sm:$0xff]  ;;  %v196_v9 = vld [vmem:[#allocation5 + $0x218] sm:$0xff] }
  0x96   :  { %v7994_v53 = vcombine.high %v197_v48, %v213_v49  ;;  %v229_v57 = vld [vmem:[#allocation5 + $0x320] sm:$0xff]  ;;  %v7993_v61 = vcombine.low %v197_v48, %v213_v49  ;;  %v260_v26 = vld [vmem:[#allocation5 + $0x418] sm:$0xff] }
  0x97   :  { %1844 = vmatpush1.bf16.msra.mxu1 %v8081_v32  ;;  %1990 = vmatpush1.bf16.msra.mxu0 %v8085_v13  ;;  %v8149_v32 = vcombine.low %v355_v17, %v371_v18  ;;  %v245_v59 = vld [vmem:[#allocation5 + $0x3a0] sm:$0xff]  ;;  %v7960_v13 = vcombine.high %v164_v1, %v180_v2  ;;  %v7959_v17 = vcombine.low %v164_v1, %v180_v2  ;;  %v228_v18 = vld [vmem:[#allocation5 + $0x318] sm:$0xff]  ;;  %v247_v1 = vld [vmem:[#allocation5 + $0x3b0] sm:$0xff] }
  0x98   :  { %1845 = vmatprep.subr.bf16.mxu1 %v8114_v35  ;;  %1991 = vmatprep.subr.bf16.mxu0 %v8118_v15  ;;  %v8051_v35 = vcombine.low %v258_v20, %v274_v21  ;;  %v8026_v62 = vcombine.high %v229_v57, %v245_v59  ;;  %v261_v3 = vld [vmem:[#allocation5 + $0x420] sm:$0xff]  ;;  %v324_v43 = vld [vmem:[#allocation5 + $0x618] sm:$0xff] }
  0x99   :  { %v277_v4 = vld [vmem:[#allocation5 + $0x4a0] sm:$0xff] }
  0x9a   :  { %v8058_v7 = vcombine.high %v261_v3, %v277_v4  ;;  %v293_v11 = vld [vmem:[#allocation5 + $0x520] sm:$0xff]  ;;  %v8057_v15 = vcombine.low %v261_v3, %v277_v4 }
  0x9b   :  { %1846 = vmatpush1.bf16.msra.mxu1 %v8113_v41  ;;  %1992 = vmatpush1.bf16.msra.mxu0 %v8117_v22  ;;  %v7929_v41 = vcombine.low %v133_v27, %v149_v28  ;;  %v309_v12 = vld [vmem:[#allocation5 + $0x5a0] sm:$0xff]  ;;  %v276_v27 = vld [vmem:[#allocation5 + $0x498] sm:$0xff] }
  0x9c   :  { %1847 = vmatprep.subr.bf16.mxu1 %v8146_v44  ;;  %1993 = vmatprep.subr.bf16.mxu0 %v8150_v24  ;;  %v7962_v44 = vcombine.high %v165_v38, %v181_v39  ;;  %v325_v20 = vld [vmem:[#allocation5 + $0x620] sm:$0xff]  ;;  %v8089_v23 = vcombine.low %v293_v11, %v309_v12  ;;  %v151_v38 = vld [vmem:[#allocation5 + $0xb0] sm:$0xff]  ;;  %v8056_v39 = vcombine.high %v260_v26, %v276_v27 }
  0x9d   :  { %v341_v21 = vld [vmem:[#allocation5 + $0x6a0] sm:$0xff]  ;;  %v8055_v42 = vcombine.low %v260_v26, %v276_v27  ;;  %v343_v26 = vld [vmem:[#allocation5 + $0x6b0] sm:$0xff] }
  0x9e   :  { %v8122_v24 = vcombine.high %v325_v20, %v341_v21  ;;  %v357_v28 = vld [vmem:[#allocation5 + $0x720] sm:$0xff]  ;;  %v8121_v31 = vcombine.low %v325_v20, %v341_v21 }
  0x9f   :  { %1848 = vmatpush1.bf16.msra.mxu1 %v8145_v50  ;;  %1994 = vmatpush1.bf16.msra.mxu0 %v8149_v32  ;;  %v8116_v50 = vcombine.high %v322_v36, %v338_v37 }
  0xa0   :  { %1906 = vmatprep.subr.bf16.mxu1 %v7924_v54  ;;  %2125 = vmatprep.subr.bf16.mxu0 %v7930_v34  ;;  %v8115_v54 = vcombine.low %v322_v36, %v338_v37  ;;  %v308_v36 = vld [vmem:[#allocation5 + $0x598] sm:$0xff]  ;;  %v135_v37 = vld [vmem:[#allocation5 + $0x30] sm:$0xff] }
  0xa1   :  { %v7933_v48 = vcombine.low %v135_v37, %v151_v38 }
  0xa2   :  { %1866 = vmatmul.mubr.bf16.vlgmr.msra.gmra.mrb[0].mxu1 %v10184_v58  ;;  %2012 = vmatmul.mubr.bf16.vlgmr.msra.gmra.mrb[0].mxu0 %v10184_v58 }
  0xa3   :  { %1907 = vmatpush1.bf16.msra.mxu1 %v7923_v60  ;;  %1875 = vmatprep.mubr.bf16.mxu1 %v10039_v0  ;;  %v8148_v60 = vcombine.high %v354_v46, %v370_v47 }
  0xa4   :  { %1908 = vmatprep.subr.bf16.mxu1 %v7956_v63  ;;  %2126 = vmatpush1.bf16.msra.mxu0 %v7929_v41  ;;  %v8147_v63 = vcombine.low %v354_v46, %v370_v47  ;;  %v7934_v41 = vcombine.high %v135_v37, %v151_v38  ;;  %v183_v46 = vld [vmem:[#allocation5 + $0x1b0] sm:$0xff] }
  0xa5   :  { %2021 = vmatprep.mubr.bf16.mxu0 %v10039_v0  ;;  %2127 = vmatprep.subr.bf16.mxu0 %v7962_v44  ;;  %v340_v44 = vld [vmem:[#allocation5 + $0x698] sm:$0xff] }
  0xa6   :  { %v8120_v56 = vcombine.high %v324_v43, %v340_v44 }
  0xa7   :  { %1909 = vmatpush1.bf16.msra.mxu1 %v7955_v6  ;;  %v8025_v6 = vcombine.low %v229_v57, %v245_v59 }
  0xa8   :  { %1910 = vmatprep.subr.bf16.mxu1 %v7988_v10  ;;  %2128 = vmatpush1.bf16.msra.mxu0 %v7961_v51  ;;  %v212_v10 = vld [vmem:[#allocation5 + $0x298] sm:$0xff] }
  0xa9   :  { %2129 = vmatprep.subr.bf16.mxu0 %v7994_v53  ;;  %v7992_v22 = vcombine.high %v196_v9, %v212_v10  ;;  %v356_v51 = vld [vmem:[#allocation5 + $0x718] sm:$0xff] }
  0xaa   :  { %1876 = vmatmul.mubr.bf16.gmra.mrb[4].mxu1 %v10188_v14  ;;  %2022 = vmatmul.mubr.bf16.gmra.mrb[4].mxu0 %v10188_v14  ;;  %v372_v53 = vld [vmem:[#allocation5 + $0x798] sm:$0xff] }
  0xab   :  { %1911 = vmatpush1.bf16.msra.mxu1 %v7987_v16  ;;  %1885 = vmatprep.mubr.bf16.mxu1 %v10039_v0  ;;  %v8090_v16 = vcombine.high %v293_v11, %v309_v12  ;;  %v8152_v2 = vcombine.high %v356_v51, %v372_v53 }
  0xac   :  { %1912 = vmatprep.subr.bf16.mxu1 %v8020_v19  ;;  %2130 = vmatpush1.bf16.msra.mxu0 %v7993_v61  ;;  %v244_v19 = vld [vmem:[#allocation5 + $0x398] sm:$0xff]  ;;  %v134_v61 = vld [vmem:[#allocation5 + $0x28] sm:$0xff] }
  0xad   :  { %2031 = vmatprep.mubr.bf16.mxu0 %v10039_v0  ;;  %2131 = vmatprep.subr.bf16.mxu0 %v8026_v62  ;;  %v8024_v30 = vcombine.high %v228_v18, %v244_v19  ;;  %v8023_v34 = vcombine.low %v228_v18, %v244_v19  ;;  %v150_v62 = vld [vmem:[#allocation5 + $0xa8] sm:$0xff]  ;;  %v311_v18 = vld [vmem:[#allocation5 + $0x5b0] sm:$0xff] }
  0xaf   :  { %1913 = vmatpush1.bf16.msra.mxu1 %v8019_v25  ;;  %v7991_v25 = vcombine.low %v196_v9, %v212_v10  ;;  %v279_v9 = vld [vmem:[#allocation5 + $0x4b0] sm:$0xff]  ;;  %v7932_v10 = vcombine.high %v134_v61, %v150_v62 }
  0xb0   :  { %1914 = vmatprep.subr.bf16.mxu1 %v8052_v29  ;;  %2132 = vmatpush1.bf16.msra.mxu0 %v8025_v6  ;;  %v373_v29 = vld [vmem:[#allocation5 + $0x7a0] sm:$0xff]  ;;  %v166_v6 = vld [vmem:[#allocation5 + $0x128] sm:$0xff] }
  0xb1   :  { %2133 = vmatprep.subr.bf16.mxu0 %v8058_v7  ;;  %v8154_v32 = vcombine.high %v357_v28, %v373_v29  ;;  %v182_v7 = vld [vmem:[#allocation5 + $0x1a8] sm:$0xff] }
  0xb2   :  { %1886 = vmatmul.mubr.bf16.gmra.mrb[8].mxu1 %v10192_v33  ;;  %2032 = vmatmul.mubr.bf16.gmra.mrb[8].mxu0 %v10192_v33  ;;  %v7964_v19 = vcombine.high %v166_v6, %v182_v7 }
  0xb3   :  { %1915 = vmatpush1.bf16.msra.mxu1 %v8051_v35  ;;  %1895 = vmatprep.mubr.bf16.mxu1 %v10039_v0  ;;  %v292_v35 = vld [vmem:[#allocation5 + $0x518] sm:$0xff] }
  0xb4   :  { %1916 = vmatprep.subr.bf16.mxu1 %v8084_v40  ;;  %2134 = vmatpush1.bf16.msra.mxu0 %v8057_v15  ;;  %v8153_v40 = vcombine.low %v357_v28, %v373_v29  ;;  %v8088_v47 = vcombine.high %v292_v35, %v308_v36  ;;  %v198_v15 = vld [vmem:[#allocation5 + $0x228] sm:$0xff] }
  0xb5   :  { %2041 = vmatprep.mubr.bf16.mxu0 %v10039_v0  ;;  %2135 = vmatprep.subr.bf16.mxu0 %v8090_v16  ;;  %v214_v16 = vld [vmem:[#allocation5 + $0x2a8] sm:$0xff] }
  0xb6   :  { %v7996_v27 = vcombine.high %v198_v15, %v214_v16 }
  0xb7   :  { %1917 = vmatpush1.bf16.msra.mxu1 %v8083_v45  ;;  %v167_v45 = vld [vmem:[#allocation5 + $0x130] sm:$0xff] }
  0xb8   :  { %1918 = vmatprep.subr.bf16.mxu1 %v8116_v50  ;;  %2136 = vmatpush1.bf16.msra.mxu0 %v8089_v23  ;;  %v7966_v49 = vcombine.high %v167_v45, %v183_v46  ;;  %v8087_v50 = vcombine.low %v292_v35, %v308_v36  ;;  %v7965_v57 = vcombine.low %v167_v45, %v183_v46  ;;  %v230_v23 = vld [vmem:[#allocation5 + $0x328] sm:$0xff]  ;;  %v375_v35 = vld [vmem:[#allocation5 + $0x7b0] sm:$0xff] }
  0xb9   :  { %2137 = vmatprep.subr.bf16.mxu0 %v8122_v24  ;;  %v246_v24 = vld [vmem:[#allocation5 + $0x3a8] sm:$0xff] }
  0xba   :  { %1896 = vmatmul.mubr.bf16.gmra.mrb[12].mxu1 %v10198_v52  ;;  %2042 = vmatmul.mubr.bf16.gmra.mrb[12].mxu0 %v10198_v52  ;;  %v8028_v36 = vcombine.high %v230_v23, %v246_v24 }
  0xbb   :  { %1919 = vmatpush1.bf16.msra.mxu1 %v8115_v54  ;;  %1938 = vmatprep.mubr.bf16.mxu1 %v10039_v0  ;;  %v199_v54 = vld [vmem:[#allocation5 + $0x230] sm:$0xff] }
  0xbc   :  { %1920 = vmatprep.subr.bf16.mxu1 %v8148_v60  ;;  %2138 = vmatpush1.bf16.msra.mxu0 %v8121_v31  ;;  %v7998_v59 = vcombine.high %v199_v54, %v215_v55  ;;  %v8119_v60 = vcombine.low %v324_v43, %v340_v44  ;;  %v7997_v3 = vcombine.low %v199_v54, %v215_v55  ;;  %v262_v31 = vld [vmem:[#allocation5 + $0x428] sm:$0xff]  ;;  %v153_v43 = vld [vmem:[#allocation5 + $0xc0] sm:$0xff] }
  0xbd   :  { %2157 = vmatprep.mubr.bf16.mxu0 %v10039_v0  ;;  %2139 = vmatprep.subr.bf16.mxu0 %v8154_v32  ;;  %v278_v32 = vld [vmem:[#allocation5 + $0x4a8] sm:$0xff] }
  0xbe   :  { %v8060_v44 = vcombine.high %v262_v31, %v278_v32 }
  0xbf   :  { %1921 = vmatpush1.bf16.msra.mxu1 %v8147_v63  ;;  %v231_v63 = vld [vmem:[#allocation5 + $0x330] sm:$0xff] }
  0xc0   :  { %2052 = vmatprep.subr.bf16.mxu1 %v7928_v5  ;;  %2140 = vmatpush1.bf16.msra.mxu0 %v8153_v40  ;;  %v8030_v4 = vcombine.high %v231_v63, %v247_v1  ;;  %v8151_v5 = vcombine.low %v356_v51, %v372_v53  ;;  %v8029_v11 = vcombine.low %v231_v63, %v247_v1  ;;  %v294_v40 = vld [vmem:[#allocation5 + $0x528] sm:$0xff]  ;;  %v185_v51 = vld [vmem:[#allocation5 + $0x1c0] sm:$0xff] }
  0xc1   :  { %2271 = vmatprep.subr.bf16.mxu0 %v7934_v41  ;;  %v310_v41 = vld [vmem:[#allocation5 + $0x5a8] sm:$0xff] }
  0xc2   :  { %1939 = vmatmul.mubr.bf16.vlgmr.msra.gmra.mrb[16].mxu1 %v10184_v58  ;;  %v8092_v53 = vcombine.high %v294_v40, %v310_v41 }
  0xc3   :  { %2053 = vmatpush1.bf16.msra.mxu1 %v7927_v8  ;;  %1948 = vmatprep.mubr.bf16.mxu1 %v10039_v0  ;;  %v263_v8 = vld [vmem:[#allocation5 + $0x430] sm:$0xff] }
  0xc4   :  { %2054 = vmatprep.subr.bf16.mxu1 %v7960_v13  ;;  %2158 = vmatmul.mubr.bf16.vlgmr.msra.gmra.mrb[16].mxu0 %v10184_v58  ;;  %v8062_v12 = vcombine.high %v263_v8, %v279_v9  ;;  %v7931_v13 = vcombine.low %v134_v61, %v150_v62  ;;  %v8061_v20 = vcombine.low %v263_v8, %v279_v9  ;;  %v217_v61 = vld [vmem:[#allocation5 + $0x2c0] sm:$0xff] }
  0xc5   :  { %2272 = vmatpush1.bf16.msra.mxu0 %v7933_v48  ;;  %2167 = vmatprep.mubr.bf16.mxu0 %v10039_v0  ;;  %v326_v48 = vld [vmem:[#allocation5 + $0x628] sm:$0xff] }
  0xc6   :  { %2273 = vmatprep.subr.bf16.mxu0 %v7966_v49  ;;  %v342_v49 = vld [vmem:[#allocation5 + $0x6a8] sm:$0xff] }
  0xc7   :  { %2055 = vmatpush1.bf16.msra.mxu1 %v7959_v17  ;;  %v295_v17 = vld [vmem:[#allocation5 + $0x530] sm:$0xff]  ;;  %v8124_v62 = vcombine.high %v326_v48, %v342_v49 }
  0xc8   :  { %2056 = vmatprep.subr.bf16.mxu1 %v7992_v22  ;;  %v8094_v21 = vcombine.high %v295_v17, %v311_v18  ;;  %v7963_v22 = vcombine.low %v166_v6, %v182_v7  ;;  %v8093_v28 = vcombine.low %v295_v17, %v311_v18  ;;  %v249_v6 = vld [vmem:[#allocation5 + $0x3c0] sm:$0xff] }
  0xc9   :  { %2274 = vmatpush1.bf16.msra.mxu0 %v7965_v57  ;;  %v358_v57 = vld [vmem:[#allocation5 + $0x728] sm:$0xff] }
  0xca   :  { %1949 = vmatmul.mubr.bf16.gmra.mrb[20].mxu1 %v10188_v14  ;;  %2275 = vmatprep.subr.bf16.mxu0 %v7998_v59  ;;  %v374_v59 = vld [vmem:[#allocation5 + $0x7a8] sm:$0xff] }
  0xcb   :  { %2057 = vmatpush1.bf16.msra.mxu1 %v7991_v25  ;;  %1958 = vmatprep.mubr.bf16.mxu1 %v10039_v0  ;;  %v327_v25 = vld [vmem:[#allocation5 + $0x630] sm:$0xff]  ;;  %v8156_v7 = vcombine.high %v358_v57, %v374_v59 }
  0xcc   :  { %2058 = vmatprep.subr.bf16.mxu1 %v8024_v30  ;;  %2168 = vmatmul.mubr.bf16.gmra.mrb[20].mxu0 %v10188_v14  ;;  %v8126_v29 = vcombine.high %v327_v25, %v343_v26  ;;  %v7995_v30 = vcombine.low %v198_v15, %v214_v16  ;;  %v8125_v37 = vcombine.low %v327_v25, %v343_v26  ;;  %v281_v15 = vld [vmem:[#allocation5 + $0x4c0] sm:$0xff] }
  0xcd   :  { %2276 = vmatpush1.bf16.msra.mxu0 %v7997_v3  ;;  %2177 = vmatprep.mubr.bf16.mxu0 %v10039_v0  ;;  %v136_v3 = vld [vmem:[#allocation5 + $0x38] sm:$0xff] }
  0xce   :  { %2277 = vmatprep.subr.bf16.mxu0 %v8030_v4  ;;  %v152_v4 = vld [vmem:[#allocation5 + $0xb8] sm:$0xff] }
  0xcf   :  { %2059 = vmatpush1.bf16.msra.mxu1 %v8023_v34  ;;  %v359_v34 = vld [vmem:[#allocation5 + $0x730] sm:$0xff]  ;;  %v7936_v16 = vcombine.high %v136_v3, %v152_v4 }
  0xd0   :  { %2060 = vmatprep.subr.bf16.mxu1 %v8056_v39  ;;  %v8158_v38 = vcombine.high %v359_v34, %v375_v35  ;;  %v8027_v39 = vcombine.low %v230_v23, %v246_v24  ;;  %v8157_v45 = vcombine.low %v359_v34, %v375_v35  ;;  %v313_v23 = vld [vmem:[#allocation5 + $0x5c0] sm:$0xff] }
  0xd1   :  { %2278 = vmatpush1.bf16.msra.mxu0 %v8029_v11  ;;  %v168_v11 = vld [vmem:[#allocation5 + $0x138] sm:$0xff] }
  0xd2   :  { %1959 = vmatmul.mubr.bf16.gmra.mrb[24].mxu1 %v10192_v33  ;;  %2279 = vmatprep.subr.bf16.mxu0 %v8062_v12  ;;  %v184_v12 = vld [vmem:[#allocation5 + $0x1b8] sm:$0xff] }
  0xd3   :  { %2061 = vmatpush1.bf16.msra.mxu1 %v8055_v42  ;;  %1968 = vmatprep.mubr.bf16.mxu1 %v10039_v0  ;;  %v137_v42 = vld [vmem:[#allocation5 + $0x40] sm:$0xff]  ;;  %v7968_v24 = vcombine.high %v168_v11, %v184_v12 }
  0xd4   :  { %2062 = vmatprep.subr.bf16.mxu1 %v8088_v47  ;;  %2178 = vmatmul.mubr.bf16.gmra.mrb[24].mxu0 %v10192_v33  ;;  %v7938_v46 = vcombine.high %v137_v42, %v153_v43  ;;  %v8059_v47 = vcombine.low %v262_v31, %v278_v32  ;;  %v7937_v54 = vcombine.low %v137_v42, %v153_v43  ;;  %v345_v31 = vld [vmem:[#allocation5 + $0x6c0] sm:$0xff] }
  0xd5   :  { %2280 = vmatpush1.bf16.msra.mxu0 %v8061_v20  ;;  %2187 = vmatprep.mubr.bf16.mxu0 %v10039_v0  ;;  %v200_v20 = vld [vmem:[#allocation5 + $0x238] sm:$0xff] }
  0xd6   :  { %2281 = vmatprep.subr.bf16.mxu0 %v8094_v21  ;;  %v216_v21 = vld [vmem:[#allocation5 + $0x2b8] sm:$0xff] }
  0xd7   :  { %2063 = vmatpush1.bf16.msra.mxu1 %v8087_v50  ;;  %v169_v50 = vld [vmem:[#allocation5 + $0x140] sm:$0xff]  ;;  %v8000_v32 = vcombine.high %v200_v20, %v216_v21 }
  0xd8   :  { %2064 = vmatprep.subr.bf16.mxu1 %v8120_v56  ;;  %v7970_v55 = vcombine.high %v169_v50, %v185_v51  ;;  %v8091_v56 = vcombine.low %v294_v40, %v310_v41  ;;  %v7969_v63 = vcombine.low %v169_v50, %v185_v51  ;;  %v377_v40 = vld [vmem:[#allocation5 + $0x7c0] sm:$0xff] }
  0xd9   :  { %2282 = vmatpush1.bf16.msra.mxu0 %v8093_v28  ;;  %v232_v28 = vld [vmem:[#allocation5 + $0x338] sm:$0xff] }
  0xda   :  { %1969 = vmatmul.mubr.bf16.gmra.mrb[28].mxu1 %v10198_v52  ;;  %2283 = vmatprep.subr.bf16.mxu0 %v8126_v29  ;;  %v248_v29 = vld [vmem:[#allocation5 + $0x3b8] sm:$0xff] }
  0xdb   :  { %2065 = vmatpush1.bf16.msra.mxu1 %v8119_v60  ;;  %2084 = vmatprep.mubr.bf16.mxu1 %v10039_v0  ;;  %v201_v60 = vld [vmem:[#allocation5 + $0x240] sm:$0xff]  ;;  %v8032_v41 = vcombine.high %v232_v28, %v248_v29 }
  0xdc   :  { %2066 = vmatprep.subr.bf16.mxu1 %v8152_v2  ;;  %2188 = vmatmul.mubr.bf16.gmra.mrb[28].mxu0 %v10198_v52  ;;  %v8002_v1 = vcombine.high %v201_v60, %v217_v61  ;;  %v8123_v2 = vcombine.low %v326_v48, %v342_v49  ;;  %v8001_v8 = vcombine.low %v201_v60, %v217_v61  ;;  %v155_v48 = vld [vmem:[#allocation5 + $0xd0] sm:$0xff] }
  0xdd   :  { %2284 = vmatpush1.bf16.msra.mxu0 %v8125_v37  ;;  %2303 = vmatprep.mubr.bf16.mxu0 %v10039_v0  ;;  %v264_v37 = vld [vmem:[#allocation5 + $0x438] sm:$0xff] }
  0xde   :  { %2285 = vmatprep.subr.bf16.mxu0 %v8158_v38  ;;  %v280_v38 = vld [vmem:[#allocation5 + $0x4b8] sm:$0xff] }
  0xdf   :  { %2067 = vmatpush1.bf16.msra.mxu1 %v8151_v5  ;;  %v233_v5 = vld [vmem:[#allocation5 + $0x340] sm:$0xff]  ;;  %v8064_v49 = vcombine.high %v264_v37, %v280_v38 }
  0xe0   :  { %2198 = vmatprep.subr.bf16.mxu1 %v7932_v10  ;;  %v8034_v9 = vcombine.high %v233_v5, %v249_v6  ;;  %v8155_v10 = vcombine.low %v358_v57, %v374_v59  ;;  %v8033_v17 = vcombine.low %v233_v5, %v249_v6  ;;  %v187_v57 = vld [vmem:[#allocation5 + $0x1d0] sm:$0xff] }
  0xe1   :  { %2286 = vmatpush1.bf16.msra.mxu0 %v8157_v45  ;;  %v296_v45 = vld [vmem:[#allocation5 + $0x538] sm:$0xff] }
  0xe2   :  { %2085 = vmatmul.mubr.bf16.vlgmr.msra.gmra.mrb[32].mxu1 %v10184_v58  ;;  %2417 = vmatprep.subr.bf16.mxu0 %v7938_v46  ;;  %v312_v46 = vld [vmem:[#allocation5 + $0x5b8] sm:$0xff] }
  0xe3   :  { %2199 = vmatpush1.bf16.msra.mxu1 %v7931_v13  ;;  %2094 = vmatprep.mubr.bf16.mxu1 %v10039_v0  ;;  %v265_v13 = vld [vmem:[#allocation5 + $0x440] sm:$0xff]  ;;  %v8096_v59 = vcombine.high %v296_v45, %v312_v46 }
  0xe4   :  { %2200 = vmatprep.subr.bf16.mxu1 %v7964_v19  ;;  %2304 = vmatmul.mubr.bf16.vlgmr.msra.gmra.mrb[32].mxu0 %v10184_v58  ;;  %v8066_v18 = vcombine.high %v265_v13, %v281_v15  ;;  %v7935_v19 = vcombine.low %v136_v3, %v152_v4  ;;  %v8065_v25 = vcombine.low %v265_v13, %v281_v15  ;;  %v219_v3 = vld [vmem:[#allocation5 + $0x2d0] sm:$0xff] }
  0xe5   :  { %2418 = vmatpush1.bf16.msra.mxu0 %v7937_v54  ;;  %2313 = vmatprep.mubr.bf16.mxu0 %v10039_v0  ;;  %v328_v54 = vld [vmem:[#allocation5 + $0x638] sm:$0xff] }
  0xe6   :  { %2419 = vmatprep.subr.bf16.mxu0 %v7970_v55  ;;  %v344_v55 = vld [vmem:[#allocation5 + $0x6b8] sm:$0xff] }
  0xe7   :  { %2201 = vmatpush1.bf16.msra.mxu1 %v7963_v22  ;;  %v297_v22 = vld [vmem:[#allocation5 + $0x540] sm:$0xff]  ;;  %v8128_v4 = vcombine.high %v328_v54, %v344_v55 }
  0xe8   :  { %2202 = vmatprep.subr.bf16.mxu1 %v7996_v27  ;;  %v8098_v26 = vcombine.high %v297_v22, %v313_v23  ;;  %v7967_v27 = vcombine.low %v168_v11, %v184_v12  ;;  %v8097_v34 = vcombine.low %v297_v22, %v313_v23  ;;  %v251_v11 = vld [vmem:[#allocation5 + $0x3d0] sm:$0xff] }
  0xe9   :  { %2420 = vmatpush1.bf16.msra.mxu0 %v7969_v63  ;;  %v360_v63 = vld [vmem:[#allocation5 + $0x738] sm:$0xff] }
  0xea   :  { %2095 = vmatmul.mubr.bf16.gmra.mrb[36].mxu1 %v10188_v14  ;;  %2421 = vmatprep.subr.bf16.mxu0 %v8002_v1  ;;  %v376_v1 = vld [vmem:[#allocation5 + $0x7b8] sm:$0xff] }
  0xeb   :  { %2203 = vmatpush1.bf16.msra.mxu1 %v7995_v30  ;;  %2104 = vmatprep.mubr.bf16.mxu1 %v10039_v0  ;;  %v329_v30 = vld [vmem:[#allocation5 + $0x640] sm:$0xff]  ;;  %v8160_v12 = vcombine.high %v360_v63, %v376_v1 }
  0xec   :  { %2204 = vmatprep.subr.bf16.mxu1 %v8028_v36  ;;  %2314 = vmatmul.mubr.bf16.gmra.mrb[36].mxu0 %v10188_v14  ;;  %v8130_v35 = vcombine.high %v329_v30, %v345_v31  ;;  %v7999_v36 = vcombine.low %v200_v20, %v216_v21  ;;  %v8129_v42 = vcombine.low %v329_v30, %v345_v31  ;;  %v283_v20 = vld [vmem:[#allocation5 + $0x4d0] sm:$0xff] }
  0xed   :  { %2422 = vmatpush1.bf16.msra.mxu0 %v8001_v8  ;;  %2323 = vmatprep.mubr.bf16.mxu0 %v10039_v0  ;;  %v138_v8 = vld [vmem:[#allocation5 + $0x48] sm:$0xff] }
  0xee   :  { %2423 = vmatprep.subr.bf16.mxu0 %v8034_v9  ;;  %v154_v9 = vld [vmem:[#allocation5 + $0xc8] sm:$0xff] }
  0xef   :  { %2205 = vmatpush1.bf16.msra.mxu1 %v8027_v39  ;;  %v361_v39 = vld [vmem:[#allocation5 + $0x740] sm:$0xff]  ;;  %v7940_v21 = vcombine.high %v138_v8, %v154_v9 }
  0xf0   :  { %2206 = vmatprep.subr.bf16.mxu1 %v8060_v44  ;;  %v8162_v43 = vcombine.high %v361_v39, %v377_v40  ;;  %v8031_v44 = vcombine.low %v232_v28, %v248_v29  ;;  %v8161_v50 = vcombine.low %v361_v39, %v377_v40  ;;  %v202_v28 = vld [vmem:[#allocation5 + $0x248] sm:$0xff] }
  0xf1   :  { %2424 = vmatpush1.bf16.msra.mxu0 %v8033_v17  ;;  %v170_v17 = vld [vmem:[#allocation5 + $0x148] sm:$0xff] }
  0xf2   :  { %2105 = vmatmul.mubr.bf16.gmra.mrb[40].mxu1 %v10192_v33  ;;  %2425 = vmatprep.subr.bf16.mxu0 %v8066_v18  ;;  %v186_v18 = vld [vmem:[#allocation5 + $0x1c8] sm:$0xff] }
  0xf3   :  { %2207 = vmatpush1.bf16.msra.mxu1 %v8059_v47  ;;  %2114 = vmatprep.mubr.bf16.mxu1 %v10039_v0  ;;  %v139_v47 = vld [vmem:[#allocation5 + $0x50] sm:$0xff]  ;;  %v218_v29 = vld [vmem:[#allocation5 + $0x2c8] sm:$0xff] }
  0xf4   :  { %2208 = vmatprep.subr.bf16.mxu1 %v8092_v53  ;;  %2324 = vmatmul.mubr.bf16.gmra.mrb[40].mxu0 %v10192_v33  ;;  %v7942_v51 = vcombine.high %v139_v47, %v155_v48  ;;  %v8063_v53 = vcombine.low %v264_v37, %v280_v38  ;;  %v7941_v60 = vcombine.low %v139_v47, %v155_v48  ;;  %v234_v37 = vld [vmem:[#allocation5 + $0x348] sm:$0xff] }
  0xf5   :  { %2426 = vmatpush1.bf16.msra.mxu0 %v8065_v25  ;;  %2333 = vmatprep.mubr.bf16.mxu0 %v10039_v0  ;;  %v315_v25 = vld [vmem:[#allocation5 + $0x5d0] sm:$0xff]  ;;  %v250_v38 = vld [vmem:[#allocation5 + $0x3c8] sm:$0xff] }
  0xf6   :  { %2427 = vmatprep.subr.bf16.mxu0 %v8098_v26  ;;  %v7939_v26 = vcombine.low %v138_v8, %v154_v9  ;;  %v362_v8 = vld [vmem:[#allocation5 + $0x748] sm:$0xff] }
  0xf7   :  { %2209 = vmatpush1.bf16.msra.mxu1 %v8091_v56  ;;  %v171_v56 = vld [vmem:[#allocation5 + $0x150] sm:$0xff]  ;;  %v378_v9 = vld [vmem:[#allocation5 + $0x7c8] sm:$0xff] }
  0xf8   :  { %2210 = vmatprep.subr.bf16.mxu1 %v8124_v62  ;;  %v7974_v61 = vcombine.high %v171_v56, %v187_v57  ;;  %v8095_v62 = vcombine.low %v296_v45, %v312_v46  ;;  %v7973_v5 = vcombine.low %v171_v56, %v187_v57  ;;  %v266_v45 = vld [vmem:[#allocation5 + $0x448] sm:$0xff] }
  0xf9   :  { %2428 = vmatpush1.bf16.msra.mxu0 %v8097_v34  ;;  %v347_v34 = vld [vmem:[#allocation5 + $0x6d0] sm:$0xff]  ;;  %v282_v46 = vld [vmem:[#allocation5 + $0x4c8] sm:$0xff] }
  0xfa   :  { %2115 = vmatmul.mubr.bf16.gmra.mrb[44].mxu1 %v10198_v52  ;;  %2429 = vmatprep.subr.bf16.mxu0 %v8130_v35  ;;  %v7971_v35 = vcombine.low %v170_v17, %v186_v18 }
  0xfb   :  { %2211 = vmatpush1.bf16.msra.mxu1 %v8123_v2  ;;  %2230 = vmatprep.mubr.bf16.mxu1 %v10039_v0  ;;  %v203_v2 = vld [vmem:[#allocation5 + $0x250] sm:$0xff] }
  0xfc   :  { %2212 = vmatprep.subr.bf16.mxu1 %v8156_v7  ;;  %2334 = vmatmul.mubr.bf16.gmra.mrb[44].mxu0 %v10198_v52  ;;  %v8006_v6 = vcombine.high %v203_v2, %v219_v3  ;;  %v8127_v7 = vcombine.low %v328_v54, %v344_v55  ;;  %v8005_v13 = vcombine.low %v203_v2, %v219_v3  ;;  %v298_v54 = vld [vmem:[#allocation5 + $0x548] sm:$0xff] }
  0xfd   :  { %2430 = vmatpush1.bf16.msra.mxu0 %v8129_v42  ;;  %2449 = vmatprep.mubr.bf16.mxu0 %v10039_v0  ;;  %v379_v42 = vld [vmem:[#allocation5 + $0x7d0] sm:$0xff]  ;;  %v314_v55 = vld [vmem:[#allocation5 + $0x5c8] sm:$0xff] }
  0xfe   :  { %2431 = vmatprep.subr.bf16.mxu0 %v8162_v43  ;;  %v8003_v43 = vcombine.low %v202_v28, %v218_v29 }
  0xff   :  { %2213 = vmatpush1.bf16.msra.mxu1 %v8155_v10  ;;  %v235_v10 = vld [vmem:[#allocation5 + $0x350] sm:$0xff] }
 0x100   :  { %2344 = vmatprep.subr.bf16.mxu1 %v7936_v16  ;;  %v8038_v15 = vcombine.high %v235_v10, %v251_v11  ;;  %v8159_v16 = vcombine.low %v360_v63, %v376_v1  ;;  %v8037_v22 = vcombine.low %v235_v10, %v251_v11  ;;  %v330_v63 = vld [vmem:[#allocation5 + $0x648] sm:$0xff] }
 0x101   :  { %2432 = vmatpush1.bf16.msra.mxu0 %v8161_v50  ;;  %v157_v50 = vld [vmem:[#allocation5 + $0xe0] sm:$0xff]  ;;  %v346_v1 = vld [vmem:[#allocation5 + $0x6c8] sm:$0xff] }
 0x102   :  { %2231 = vmatmul.mubr.bf16.vlgmr.msra.gmra.mrb[48].mxu1 %v10184_v58  ;;  %2563 = vmatprep.subr.bf16.mxu0 %v7942_v51  ;;  %v8035_v51 = vcombine.low %v234_v37, %v250_v38 }
 0x103   :  { %2345 = vmatpush1.bf16.msra.mxu1 %v7935_v19  ;;  %2240 = vmatprep.mubr.bf16.mxu1 %v10039_v0  ;;  %v267_v19 = vld [vmem:[#allocation5 + $0x450] sm:$0xff] }
 0x104   :  { %2346 = vmatprep.subr.bf16.mxu1 %v7968_v24  ;;  %2450 = vmatmul.mubr.bf16.vlgmr.msra.gmra.mrb[48].mxu0 %v10184_v58  ;;  %v8070_v23 = vcombine.high %v267_v19, %v283_v20  ;;  %v299_v24 = vld [vmem:[#allocation5 + $0x550] sm:$0xff]  ;;  %v8069_v30 = vcombine.low %v267_v19, %v283_v20  ;;  %v269_v20 = vld [vmem:[#allocation5 + $0x460] sm:$0xff] }
 0x105   :  { %2564 = vmatpush1.bf16.msra.mxu0 %v7941_v60  ;;  %2459 = vmatprep.mubr.bf16.mxu0 %v10039_v0  ;;  %v8102_v31 = vcombine.high %v299_v24, %v315_v25  ;;  %v8101_v39 = vcombine.low %v299_v24, %v315_v25  ;;  %v189_v60 = vld [vmem:[#allocation5 + $0x1e0] sm:$0xff]  ;;  %v172_v25 = vld [vmem:[#allocation5 + $0x158] sm:$0xff] }
 0x106   :  { %2565 = vmatprep.subr.bf16.mxu0 %v7974_v61  ;;  %v8067_v61 = vcombine.low %v266_v45, %v282_v46 }
 0x107   :  { %2347 = vmatpush1.bf16.msra.mxu1 %v7967_v27  ;;  %v7972_v27 = vcombine.high %v170_v17, %v186_v18  ;;  %v8164_v17 = vcombine.high %v362_v8, %v378_v9  ;;  %v156_v18 = vld [vmem:[#allocation5 + $0xd8] sm:$0xff] }
 0x108   :  { %2348 = vmatprep.subr.bf16.mxu1 %v8000_v32  ;;  %v331_v32 = vld [vmem:[#allocation5 + $0x650] sm:$0xff] }
 0x109   :  { %2566 = vmatpush1.bf16.msra.mxu0 %v7973_v5  ;;  %v8134_v40 = vcombine.high %v331_v32, %v347_v34  ;;  %v8133_v47 = vcombine.low %v331_v32, %v347_v34  ;;  %v221_v5 = vld [vmem:[#allocation5 + $0x2e0] sm:$0xff]  ;;  %v204_v34 = vld [vmem:[#allocation5 + $0x258] sm:$0xff] }
 0x10a   :  { %2241 = vmatmul.mubr.bf16.gmra.mrb[52].mxu1 %v10188_v14  ;;  %2567 = vmatprep.subr.bf16.mxu0 %v8006_v6  ;;  %v8099_v6 = vcombine.low %v298_v54, %v314_v55 }
 0x10b   :  { %2349 = vmatpush1.bf16.msra.mxu1 %v7999_v36  ;;  %2250 = vmatprep.mubr.bf16.mxu1 %v10039_v0  ;;  %v8004_v36 = vcombine.high %v202_v28, %v218_v29  ;;  %v301_v28 = vld [vmem:[#allocation5 + $0x560] sm:$0xff] }
 0x10c   :  { %2350 = vmatprep.subr.bf16.mxu1 %v8032_v41  ;;  %2460 = vmatmul.mubr.bf16.gmra.mrb[52].mxu0 %v10188_v14  ;;  %v363_v41 = vld [vmem:[#allocation5 + $0x750] sm:$0xff] }
 0x10d   :  { %2568 = vmatpush1.bf16.msra.mxu0 %v8005_v13  ;;  %2469 = vmatprep.mubr.bf16.mxu0 %v10039_v0  ;;  %v8166_v48 = vcombine.high %v363_v41, %v379_v42  ;;  %v8165_v56 = vcombine.low %v363_v41, %v379_v42  ;;  %v253_v13 = vld [vmem:[#allocation5 + $0x3e0] sm:$0xff]  ;;  %v236_v42 = vld [vmem:[#allocation5 + $0x358] sm:$0xff] }
 0x10e   :  { %2569 = vmatprep.subr.bf16.mxu0 %v8038_v15  ;;  %v8131_v15 = vcombine.low %v330_v63, %v346_v1 }
 0x10f   :  { %2351 = vmatpush1.bf16.msra.mxu1 %v8031_v44  ;;  %v8036_v44 = vcombine.high %v234_v37, %v250_v38  ;;  %v333_v37 = vld [vmem:[#allocation5 + $0x660] sm:$0xff] }
 0x110   :  { %2352 = vmatprep.subr.bf16.mxu1 %v8064_v49  ;;  %v141_v49 = vld [vmem:[#allocation5 + $0x60] sm:$0xff] }
 0x111   :  { %2570 = vmatpush1.bf16.msra.mxu0 %v8037_v22  ;;  %v7946_v57 = vcombine.high %v141_v49, %v157_v50  ;;  %v7945_v2 = vcombine.low %v141_v49, %v157_v50  ;;  %v268_v50 = vld [vmem:[#allocation5 + $0x458] sm:$0xff] }
 0x112   :  { %2251 = vmatmul.mubr.bf16.gmra.mrb[56].mxu1 %v10192_v33  ;;  %2571 = vmatprep.subr.bf16.mxu0 %v8070_v23  ;;  %v8163_v23 = vcombine.low %v362_v8, %v378_v9  ;;  %v207_v9 = vld [vmem:[#allocation5 + $0x270] sm:$0xff] }
 0x113   :  { %2353 = vmatpush1.bf16.msra.mxu1 %v8063_v53  ;;  %2260 = vmatprep.mubr.bf16.mxu1 %v10039_v0  ;;  %v8068_v53 = vcombine.high %v266_v45, %v282_v46  ;;  %v365_v45 = vld [vmem:[#allocation5 + $0x760] sm:$0xff] }
 0x114   :  { %2354 = vmatprep.subr.bf16.mxu1 %v8096_v59  ;;  %2470 = vmatmul.mubr.bf16.gmra.mrb[56].mxu0 %v10192_v33  ;;  %v173_v59 = vld [vmem:[#allocation5 + $0x160] sm:$0xff] }
 0x115   :  { %2572 = vmatpush1.bf16.msra.mxu0 %v8069_v30  ;;  %2479 = vmatprep.mubr.bf16.mxu0 %v10039_v0  ;;  %v7978_v3 = vcombine.high %v173_v59, %v189_v60  ;;  %v7977_v10 = vcombine.low %v173_v59, %v189_v60  ;;  %v317_v30 = vld [vmem:[#allocation5 + $0x5e0] sm:$0xff]  ;;  %v300_v60 = vld [vmem:[#allocation5 + $0x558] sm:$0xff] }
 0x116   :  { %2573 = vmatprep.subr.bf16.mxu0 %v8102_v31  ;;  %v8106_v38 = vcombine.high %v301_v28, %v317_v30 }
 0x117   :  { %2355 = vmatpush1.bf16.msra.mxu1 %v8095_v62  ;;  %v8100_v62 = vcombine.high %v298_v54, %v314_v55  ;;  %v143_v54 = vld [vmem:[#allocation5 + $0x70] sm:$0xff] }
 0x118   :  { %2356 = vmatprep.subr.bf16.mxu1 %v8128_v4  ;;  %v205_v4 = vld [vmem:[#allocation5 + $0x260] sm:$0xff] }
 0x119   :  { %2574 = vmatpush1.bf16.msra.mxu0 %v8101_v39  ;;  %v8010_v11 = vcombine.high %v205_v4, %v221_v5  ;;  %v8009_v19 = vcombine.low %v205_v4, %v221_v5  ;;  %v349_v39 = vld [vmem:[#allocation5 + $0x6e0] sm:$0xff]  ;;  %v332_v5 = vld [vmem:[#allocation5 + $0x658] sm:$0xff] }
 0x11a   :  { %2261 = vmatmul.mubr.bf16.gmra.mrb[60].mxu1 %v10198_v52  ;;  %2575 = vmatprep.subr.bf16.mxu0 %v8134_v40  ;;  %v8138_v46 = vcombine.high %v333_v37, %v349_v39 }
 0x11b   :  { %2357 = vmatpush1.bf16.msra.mxu1 %v8127_v7  ;;  %2376 = vmatprep.mubr.bf16.mxu1 %v10039_v0  ;;  %v8132_v7 = vcombine.high %v330_v63, %v346_v1  ;;  %v175_v63 = vld [vmem:[#allocation5 + $0x170] sm:$0xff] }
 0x11c   :  { %2358 = vmatprep.subr.bf16.mxu1 %v8160_v12  ;;  %2480 = vmatmul.mubr.bf16.gmra.mrb[60].mxu0 %v10198_v52  ;;  %v237_v12 = vld [vmem:[#allocation5 + $0x360] sm:$0xff] }
 0x11d   :  { %2576 = vmatpush1.bf16.msra.mxu0 %v8133_v47  ;;  %2595 = vmatprep.mubr.bf16.mxu0 %v10039_v0  ;;  %v8042_v22 = vcombine.high %v237_v12, %v253_v13  ;;  %v381_v47 = vld [vmem:[#allocation5 + $0x7e0] sm:$0xff] }
 0x11e   :  { %2577 = vmatprep.subr.bf16.mxu0 %v8166_v48  ;;  %v8170_v55 = vcombine.high %v365_v45, %v381_v47 }
 0x11f   :  { %2359 = vmatpush1.bf16.msra.mxu1 %v8159_v16  ;;  %v140_v16 = vld [vmem:[#allocation5 + $0x58] sm:$0xff] }
 0x120   :  { %2490 = vmatprep.subr.bf16.mxu1 %v7940_v21  ;;  %v285_v21 = vld [vmem:[#allocation5 + $0x4e0] sm:$0xff]  ;;  %v7944_v24 = vcombine.high %v140_v16, %v156_v18  ;;  %v7943_v31 = vcombine.low %v140_v16, %v156_v18 }
 0x121   :  { %2578 = vmatpush1.bf16.msra.mxu0 %v8165_v56  ;;  %v8074_v29 = vcombine.high %v269_v20, %v285_v21  ;;  %v159_v56 = vld [vmem:[#allocation5 + $0xf0] sm:$0xff] }
 0x122   :  { %2377 = vmatmul.mubr.bf16.vlgmr.msra.gmra.mrb[64].mxu1 %v10184_v58  ;;  %2709 = vmatprep.subr.bf16.mxu0 %v7946_v57  ;;  %v7950_v1 = vcombine.high %v143_v54, %v159_v56 }
 0x123   :  { %2491 = vmatpush1.bf16.msra.mxu1 %v7939_v26  ;;  %2386 = vmatprep.mubr.bf16.mxu1 %v10039_v0  ;;  %v188_v26 = vld [vmem:[#allocation5 + $0x1d8] sm:$0xff] }
 0x124   :  { %2492 = vmatprep.subr.bf16.mxu1 %v7972_v27  ;;  %2596 = vmatmul.mubr.bf16.vlgmr.msra.gmra.mrb[64].mxu0 %v10184_v58  ;;  %v8041_v27 = vcombine.low %v237_v12, %v253_v13  ;;  %v7976_v32 = vcombine.high %v172_v25, %v188_v26  ;;  %v7975_v40 = vcombine.low %v172_v25, %v188_v26  ;;  %v364_v13 = vld [vmem:[#allocation5 + $0x758] sm:$0xff]  ;;  %v271_v25 = vld [vmem:[#allocation5 + $0x470] sm:$0xff] }
 0x125   :  { %2710 = vmatpush1.bf16.msra.mxu0 %v7945_v2  ;;  %2605 = vmatprep.mubr.bf16.mxu0 %v10039_v0  ;;  %v191_v2 = vld [vmem:[#allocation5 + $0x1f0] sm:$0xff] }
 0x126   :  { %2711 = vmatprep.subr.bf16.mxu0 %v7978_v3  ;;  %v7982_v8 = vcombine.high %v175_v63, %v191_v2  ;;  %v7981_v16 = vcombine.low %v175_v63, %v191_v2  ;;  %v10293_v2 = vld [vmem:[#allocation7] sm:$0xff] }
 0x127   :  { %2493 = vmatpush1.bf16.msra.mxu1 %v7971_v35  ;;  %v220_v35 = vld [vmem:[#allocation5 + $0x2d8] sm:$0xff] }
 0x128   :  { %2494 = vmatprep.subr.bf16.mxu1 %v8004_v36  ;;  %v8073_v36 = vcombine.low %v269_v20, %v285_v21  ;;  %v8008_v41 = vcombine.high %v204_v34, %v220_v35  ;;  %v8007_v48 = vcombine.low %v204_v34, %v220_v35  ;;  %v303_v34 = vld [vmem:[#allocation5 + $0x570] sm:$0xff] }
 0x129   :  { %2712 = vmatpush1.bf16.msra.mxu0 %v7977_v10 }
 0x12a   :  { %2387 = vmatmul.mubr.bf16.gmra.mrb[68].mxu1 %v10188_v14  ;;  %2713 = vmatprep.subr.bf16.mxu0 %v8010_v11  ;;  %v223_v11 = vld [vmem:[#allocation5 + $0x2f0] sm:$0xff] }
 0x12b   :  { %2495 = vmatpush1.bf16.msra.mxu1 %v8003_v43  ;;  %2396 = vmatprep.mubr.bf16.mxu1 %v10039_v0  ;;  %v252_v43 = vld [vmem:[#allocation5 + $0x3d8] sm:$0xff]  ;;  %v8014_v18 = vcombine.high %v207_v9, %v223_v11 }
 0x12c   :  { %2496 = vmatprep.subr.bf16.mxu1 %v8036_v44  ;;  %2606 = vmatmul.mubr.bf16.gmra.mrb[68].mxu0 %v10188_v14  ;;  %v8105_v44 = vcombine.low %v301_v28, %v317_v30  ;;  %v8040_v49 = vcombine.high %v236_v42, %v252_v43  ;;  %v8039_v57 = vcombine.low %v236_v42, %v252_v43  ;;  %v174_v30 = vld [vmem:[#allocation5 + $0x168] sm:$0xff]  ;;  %v335_v42 = vld [vmem:[#allocation5 + $0x670] sm:$0xff] }
 0x12d   :  { %2714 = vmatpush1.bf16.msra.mxu0 %v8009_v19  ;;  %2615 = vmatprep.mubr.bf16.mxu0 %v10039_v0  ;;  %v255_v19 = vld [vmem:[#allocation5 + $0x3f0] sm:$0xff] }
 0x12e   :  { %2715 = vmatprep.subr.bf16.mxu0 %v8042_v22  ;;  %v142_v22 = vld [vmem:[#allocation5 + $0x68] sm:$0xff] }
 0x12f   :  { %2497 = vmatpush1.bf16.msra.mxu1 %v8035_v51  ;;  %v284_v51 = vld [vmem:[#allocation5 + $0x4d8] sm:$0xff] }
 0x130   :  { %2498 = vmatprep.subr.bf16.mxu1 %v8068_v53  ;;  %v8137_v53 = vcombine.low %v333_v37, %v349_v39  ;;  %v8072_v59 = vcombine.high %v268_v50, %v284_v51  ;;  %v8071_v3 = vcombine.low %v268_v50, %v284_v51  ;;  %v206_v39 = vld [vmem:[#allocation5 + $0x268] sm:$0xff]  ;;  %v367_v50 = vld [vmem:[#allocation5 + $0x770] sm:$0xff]  ;;  %v393_v51 = vlaneseq }
 0x131   :  { %2716 = vmatpush1.bf16.msra.mxu0 %v8041_v27  ;;  %v287_v27 = vld [vmem:[#allocation5 + $0x4f0] sm:$0xff] }
 0x132   :  { %2397 = vmatmul.mubr.bf16.gmra.mrb[72].mxu1 %v10192_v33  ;;  %2717 = vmatprep.subr.bf16.mxu0 %v8074_v29  ;;  %v8078_v35 = vcombine.high %v271_v25, %v287_v27 }
 0x133   :  { %2499 = vmatpush1.bf16.msra.mxu1 %v8067_v61  ;;  %2406 = vmatprep.mubr.bf16.mxu1 %v10039_v0  ;;  %v316_v61 = vld [vmem:[#allocation5 + $0x5d8] sm:$0xff] }
 0x134   :  { %2500 = vmatprep.subr.bf16.mxu1 %v8100_v62  ;;  %2616 = vmatmul.mubr.bf16.gmra.mrb[72].mxu0 %v10192_v33  ;;  %v8169_v62 = vcombine.low %v365_v45, %v381_v47  ;;  %v8104_v4 = vcombine.high %v300_v60, %v316_v61  ;;  %v8103_v10 = vcombine.low %v300_v60, %v316_v61  ;;  %v238_v47 = vld [vmem:[#allocation5 + $0x368] sm:$0xff]  ;;  %v10289_v61 = vshrl.u32 %v393_v51, 7 }
 0x135   :  { %2718 = vmatpush1.bf16.msra.mxu0 %v8073_v36  ;;  %2625 = vmatprep.mubr.bf16.mxu0 %v10039_v0  ;;  %v319_v36 = vld [vmem:[#allocation5 + $0x5f0] sm:$0xff] }
 0x136   :  { %2719 = vmatprep.subr.bf16.mxu0 %v8106_v38  ;;  %v8110_v43 = vcombine.high %v303_v34, %v319_v36 }
 0x137   :  { %2501 = vmatpush1.bf16.msra.mxu1 %v8099_v6  ;;  %v348_v6 = vld [vmem:[#allocation5 + $0x6d8] sm:$0xff] }
 0x138   :  { %2502 = vmatprep.subr.bf16.mxu1 %v8132_v7  ;;  %v7949_v7 = vcombine.low %v143_v54, %v159_v56  ;;  %v8136_v12 = vcombine.high %v332_v5, %v348_v6  ;;  %v8135_v20 = vcombine.low %v332_v5, %v348_v6  ;;  %v383_v54 = vld [vmem:[#allocation5 + $0x7f0] sm:$0xff]  ;;  %v10297_v6 = vsub.s32 0, %v10289_v61 }
 0x139   :  { %2720 = vmatpush1.bf16.msra.mxu0 %v8105_v44  ;;  %v351_v44 = vld [vmem:[#allocation5 + $0x6f0] sm:$0xff]  ;;  %v8173_v5 = vcombine.low %v367_v50, %v383_v54 }
 0x13a   :  { %2407 = vmatmul.mubr.bf16.gmra.mrb[76].mxu1 %v10198_v52  ;;  %2721 = vmatprep.subr.bf16.mxu0 %v8138_v46  ;;  %v8141_v60 = vcombine.low %v335_v42, %v351_v44  ;;  %11187 = vst [vmem:[#allocation20_spill] sm:$0xff] %v10297_v6 }
 0x13b   :  { %2503 = vmatpush1.bf16.msra.mxu1 %v8131_v15  ;;  %2522 = vmatprep.mubr.bf16.mxu1 %v10039_v0  ;;  %v380_v15 = vld [vmem:[#allocation5 + $0x7d8] sm:$0xff] }
 0x13c   :  { %2504 = vmatprep.subr.bf16.mxu1 %v8164_v17  ;;  %2626 = vmatmul.mubr.bf16.gmra.mrb[76].mxu0 %v10198_v52  ;;  %v239_v17 = vld [vmem:[#allocation5 + $0x370] sm:$0xff]  ;;  %v8168_v21 = vcombine.high %v364_v13, %v380_v15  ;;  %v8167_v28 = vcombine.low %v364_v13, %v380_v15  ;;  %v9079_v13 = vld [vmem:[#allocation8 + $0x700] ss:$8 sps:$4 sm:$0xff]   ;;  %v10305_v15 = vrot.slane %v10293_v2, %v10297_v6 }
 0x13d   :  { %2722 = vmatpush1.bf16.msra.mxu0 %v8137_v53  ;;  %2741 = vmatprep.mubr.bf16.mxu0 %v10039_v0  ;;  %v8046_v26 = vcombine.high %v239_v17, %v255_v19  ;;  %v8142_v53 = vcombine.high %v335_v42, %v351_v44 }
 0x13e   :  { %2723 = vmatprep.subr.bf16.mxu0 %v8170_v55 }
 0x13f   :  { %2505 = vmatpush1.bf16.msra.mxu1 %v8163_v23  ;;  %v158_v23 = vld [vmem:[#allocation5 + $0xe8] sm:$0xff] }
 0x140   :  { %2636 = vmatprep.subr.bf16.mxu1 %v7944_v24  ;;  %v8013_v24 = vcombine.low %v207_v9, %v223_v11  ;;  %v7948_v29 = vcombine.high %v142_v22, %v158_v23  ;;  %v7947_v37 = vcombine.low %v142_v22, %v158_v23  ;;  %v10300_v9 = vsub.s32 1, %v10289_v61  ;;  %v334_v11 = vld [vmem:[#allocation5 + $0x668] sm:$0xff]  ;;  %v9085_v23 = vld [vmem:[#allocation8 + $0x710] ss:$8 sps:$4 sm:$0xff]  }
 0x141   :  { %2724 = vmatpush1.bf16.msra.mxu0 %v8169_v62  ;;  %v8174_v62 = vcombine.high %v367_v50, %v383_v54  ;;  %v382_v22 = vld [vmem:[#allocation5 + $0x7e8] sm:$0xff]  ;;  %v9097_v50 = vld [vmem:[#allocation8 + $0x730] ss:$8 sps:$4 sm:$0xff]  }
 0x142   :  { %2523 = vmatmul.mubr.bf16.vlgmr.msra.gmra.mrb[80].mxu1 %v10184_v58  ;;  %2855 = vmatprep.subr.bf16.mxu0 %v7950_v1  ;;  %11188 = vst [vmem:[#allocation21_spill] sm:$0xff] %v10300_v9  ;;  %v9105_v54 = vld [vmem:[#allocation8 + $0x744] ss:$8 sps:$4 sm:$0xff]  }
 0x143   :  { %2637 = vmatpush1.bf16.msra.mxu1 %v7943_v31  ;;  %2532 = vmatprep.mubr.bf16.mxu1 %v10039_v0  ;;  %v190_v31 = vld [vmem:[#allocation5 + $0x1e8] sm:$0xff] }
 0x144   :  { %2638 = vmatprep.subr.bf16.mxu1 %v7976_v32  ;;  %2742 = vmatmul.mubr.bf16.vlgmr.msra.gmra.mrb[80].mxu0 %v10184_v58  ;;  %v8045_v32 = vcombine.low %v239_v17, %v255_v19  ;;  %v7980_v38 = vcombine.high %v174_v30, %v190_v31  ;;  %v7979_v45 = vcombine.low %v174_v30, %v190_v31 }
 0x145   :  { %2856 = vmatpush1.bf16.msra.mxu0 %v7949_v7  ;;  %2751 = vmatprep.mubr.bf16.mxu0 %v10039_v0  ;;  %v9081_v7 = vld [vmem:[#allocation8 + $0x704] ss:$8 sps:$4 sm:$0xff]   ;;  %v10309_v17 = vrot.slane %v10293_v2, %v10300_v9 }
 0x146   :  { %2857 = vmatprep.subr.bf16.mxu0 %v7982_v8 }
 0x147   :  { %2639 = vmatpush1.bf16.msra.mxu1 %v7975_v40  ;;  %v222_v40 = vld [vmem:[#allocation5 + $0x2e8] sm:$0xff] }
 0x148   :  { %2640 = vmatprep.subr.bf16.mxu1 %v8008_v41  ;;  %v8077_v41 = vcombine.low %v271_v25, %v287_v27  ;;  %v8012_v46 = vcombine.high %v206_v39, %v222_v40  ;;  %v8011_v55 = vcombine.low %v206_v39, %v222_v40  ;;  %v9099_v40 = vld [vmem:[#allocation8 + $0x734] ss:$8 sps:$4 sm:$0xff]  }
 0x149   :  { %2858 = vmatpush1.bf16.msra.mxu0 %v7981_v16  ;;  %v9087_v16 = vld [vmem:[#allocation8 + $0x714] ss:$8 sps:$4 sm:$0xff]  }
 0x14a   :  { %2533 = vmatmul.mubr.bf16.gmra.mrb[84].mxu1 %v10188_v14  ;;  %2859 = vmatprep.subr.bf16.mxu0 %v8014_v18 }
 0x14b   :  { %2641 = vmatpush1.bf16.msra.mxu1 %v8007_v48  ;;  %2542 = vmatprep.mubr.bf16.mxu1 %v10039_v0  ;;  %v254_v48 = vld [vmem:[#allocation5 + $0x3e8] sm:$0xff] }
 0x14c   :  { %2642 = vmatprep.subr.bf16.mxu1 %v8040_v49  ;;  %2752 = vmatmul.mubr.bf16.gmra.mrb[84].mxu0 %v10188_v14  ;;  %v8109_v49 = vcombine.low %v303_v34, %v319_v36  ;;  %v8044_v56 = vcombine.high %v238_v47, %v254_v48  ;;  %v8043_v63 = vcombine.low %v238_v47, %v254_v48  ;;  %v144_v34 = vld [vmem:[#allocation5 + $0x78] sm:$0xff] }
 0x14d   :  { %2860 = vmatpush1.bf16.msra.mxu0 %v8013_v24  ;;  %2761 = vmatprep.mubr.bf16.mxu0 %v10039_v0  ;;  %v160_v36 = vld [vmem:[#allocation5 + $0xf8] sm:$0xff] }
 0x14e   :  { %2861 = vmatprep.subr.bf16.mxu0 %v8046_v26  ;;  %v9093_v26 = vld [vmem:[#allocation8 + $0x724] ss:$8 sps:$4 sm:$0xff]  }
 0x14f   :  { %2643 = vmatpush1.bf16.msra.mxu1 %v8039_v57  ;;  %v270_v57 = vld [vmem:[#allocation5 + $0x468] sm:$0xff] }
 0x150   :  { %2644 = vmatprep.subr.bf16.mxu1 %v8072_v59  ;;  %v286_v59 = vld [vmem:[#allocation5 + $0x4e8] sm:$0xff] }
 0x151   :  { %2862 = vmatpush1.bf16.msra.mxu0 %v8045_v32  ;;  %v8076_v1 = vcombine.high %v270_v57, %v286_v59  ;;  %v8075_v8 = vcombine.low %v270_v57, %v286_v59  ;;  %v7951_v57 = vcombine.low %v144_v34, %v160_v36  ;;  %v10328_v59 = vld [vmem:[#allocation5 + $0x278] sm:$0xff] }
 0x152   :  { %2543 = vmatmul.mubr.bf16.gmra.mrb[88].mxu1 %v10192_v33  ;;  %2863 = vmatprep.subr.bf16.mxu0 %v8078_v35 }
 0x153   :  { %2645 = vmatpush1.bf16.msra.mxu1 %v8071_v3  ;;  %2552 = vmatprep.mubr.bf16.mxu1 %v10039_v0  ;;  %v302_v3 = vld [vmem:[#allocation5 + $0x568] sm:$0xff] }
 0x154   :  { %2646 = vmatprep.subr.bf16.mxu1 %v8104_v4  ;;  %2762 = vmatmul.mubr.bf16.gmra.mrb[88].mxu0 %v10192_v33  ;;  %v318_v4 = vld [vmem:[#allocation5 + $0x5e8] sm:$0xff] }
 0x155   :  { %2864 = vmatpush1.bf16.msra.mxu0 %v8077_v41  ;;  %2771 = vmatprep.mubr.bf16.mxu0 %v10039_v0  ;;  %v8107_v18 = vcombine.low %v302_v3, %v318_v4 }
 0x156   :  { %2865 = vmatprep.subr.bf16.mxu0 %v8110_v43 }
 0x157   :  { %2647 = vmatpush1.bf16.msra.mxu1 %v8103_v10  ;;  %v8108_v10 = vcombine.high %v302_v3, %v318_v4  ;;  %v224_v4 = vld [vmem:[#allocation5 + $0x2f8] sm:$0xff] }
 0x158   :  { %2648 = vmatprep.subr.bf16.mxu1 %v8136_v12  ;;  %v350_v12 = vld [vmem:[#allocation5 + $0x6e8] sm:$0xff] }
 0x159   :  { %2866 = vmatpush1.bf16.msra.mxu0 %v8109_v49  ;;  %v8140_v19 = vcombine.high %v334_v11, %v350_v12  ;;  %v192_v49 = vld [vmem:[#allocation5 + $0x1f8] sm:$0xff] }
 0x15a   :  { %2553 = vmatmul.mubr.bf16.gmra.mrb[92].mxu1 %v10198_v52  ;;  %2867 = vmatprep.subr.bf16.mxu0 %v8142_v53 }
 0x15b   :  { %2649 = vmatpush1.bf16.msra.mxu1 %v8135_v20  ;;  %2668 = vmatprep.mubr.bf16.mxu1 %v10039_v0  ;;  %v366_v20 = vld [vmem:[#allocation5 + $0x768] sm:$0xff] }
 0x15c   :  { %2650 = vmatprep.subr.bf16.mxu1 %v8168_v21  ;;  %2772 = vmatmul.mubr.bf16.gmra.mrb[92].mxu0 %v10198_v52  ;;  %v8172_v32 = vcombine.high %v366_v20, %v382_v22  ;;  %v8171_v43 = vcombine.low %v366_v20, %v382_v22  ;;  %v10347_v22 = vld [vmem:[#allocation5 + $0x478] sm:$0xff] }
 0x15d   :  { %2868 = vmatpush1.bf16.msra.mxu0 %v8141_v60  ;;  %2887 = vmatprep.mubr.bf16.mxu0 %v10039_v0 }
 0x15e   :  { %2869 = vmatprep.subr.bf16.mxu0 %v8174_v62 }
 0x15f   :  { %2651 = vmatpush1.bf16.msra.mxu1 %v8167_v28 }
 0x160   :  { %2782 = vmatprep.subr.bf16.mxu1 %v7948_v29  ;;  %v8139_v29 = vcombine.low %v334_v11, %v350_v12  ;;  %v9111_v11 = vld [vmem:[#allocation8 + $0x754] ss:$8 sps:$4 sm:$0xff]  }
 0x161   :  { %2870 = vmatpush1.bf16.msra.mxu0 %v8173_v5  ;;  %v9103_v5 = vld [vmem:[#allocation8 + $0x740] ss:$8 sps:$4 sm:$0xff]  }
 0x162   :  { %2669 = vmatmul.mubr.bf16.vlgmr.msra.gmra.mrb[96].mxu1 %v10184_v58  ;;  %6980 = vmatprep.subr.bf16.mxu0 %v9081_v7  ;;  %v10336_v7 = vsub.s32 5, %v10289_v61 }
 0x163   :  { %2783 = vmatpush1.bf16.msra.mxu1 %v7947_v37  ;;  %2678 = vmatprep.mubr.bf16.mxu1 %v10039_v0  ;;  %v9091_v37 = vld [vmem:[#allocation8 + $0x720] ss:$8 sps:$4 sm:$0xff]  }
 0x164   :  { %2784 = vmatprep.subr.bf16.mxu1 %v7980_v38  ;;  %2888 = vmatmul.mubr.bf16.vlgmr.msra.gmra.mrb[96].mxu0 %v10184_v58 }
 0x165   :  { %6981 = vmatpush1.bf16.msra.mxu0 %v9079_v13  ;;  %2897 = vmatprep.mubr.bf16.mxu0 %v10039_v0 }
 0x166   :  { %6982 = vmatprep.subr.bf16.mxu0 %v9087_v16 }
 0x167   :  { %2785 = vmatpush1.bf16.msra.mxu1 %v7979_v45  ;;  %v7952_v45 = vcombine.high %v144_v34, %v160_v36 }
 0x168   :  { %2786 = vmatprep.subr.bf16.mxu1 %v8012_v46  ;;  %v176_v46 = vld [vmem:[#allocation5 + $0x178] sm:$0xff] }
 0x169   :  { %6983 = vmatpush1.bf16.msra.mxu0 %v9085_v23  ;;  %v7983_v16 = vcombine.low %v176_v46, %v192_v49 }
 0x16a   :  { %2679 = vmatmul.mubr.bf16.gmra.mrb[100].mxu1 %v10188_v14  ;;  %6984 = vmatprep.subr.bf16.mxu0 %v9093_v26  ;;  %v10356_v26 = vld [vmem:[#allocation5 + $0x4f8] sm:$0xff] }
 0x16b   :  { %2787 = vmatpush1.bf16.msra.mxu1 %v8011_v55  ;;  %2688 = vmatprep.mubr.bf16.mxu1 %v10039_v0 }
 0x16c   :  { %2788 = vmatprep.subr.bf16.mxu1 %v8044_v56  ;;  %2898 = vmatmul.mubr.bf16.gmra.mrb[100].mxu0 %v10188_v14 }
 0x16d   :  { %6985 = vmatpush1.bf16.msra.mxu0 %v9091_v37  ;;  %2907 = vmatprep.mubr.bf16.mxu0 %v10039_v0 }
 0x16e   :  { %6986 = vmatprep.subr.bf16.mxu0 %v9099_v40 }
 0x16f   :  { %2789 = vmatpush1.bf16.msra.mxu1 %v8043_v63  ;;  %v7984_v63 = vcombine.high %v176_v46, %v192_v49  ;;  %v9115_v49 = vld [vmem:[#allocation8 + $0x760] ss:$8 sps:$4 sm:$0xff]  }
 0x170   :  { %2790 = vmatprep.subr.bf16.mxu1 %v8076_v1  ;;  %v10332_v1 = vsub.s32 4, %v10289_v61 }
 0x171   :  { %6987 = vmatpush1.bf16.msra.mxu0 %v9097_v50  ;;  %v9123_v50 = vld [vmem:[#allocation8 + $0x774] ss:$8 sps:$4 sm:$0xff]  }
 0x172   :  { %2689 = vmatmul.mubr.bf16.gmra.mrb[104].mxu1 %v10192_v33  ;;  %6988 = vmatprep.subr.bf16.mxu0 %v9105_v54  ;;  %v10351_v23 = vrot.slane %v10293_v2, %v10332_v1 }
 0x173   :  { %2791 = vmatpush1.bf16.msra.mxu1 %v8075_v8  ;;  %2698 = vmatprep.mubr.bf16.mxu1 %v10039_v0 }
 0x174   :  { %2792 = vmatprep.subr.bf16.mxu1 %v8108_v10  ;;  %2908 = vmatmul.mubr.bf16.gmra.mrb[104].mxu0 %v10192_v33 }
 0x175   :  { %v1867_v21 = vpop.f32.mrb[0].mxu1  ;;  %6989 = vmatpush1.bf16.msra.mxu0 %v9103_v5  ;;  %2917 = vmatprep.mubr.bf16.mxu0 %v10039_v0  ;;  %v2013_v36 = vpop.f32.mrb[0].mxu0 }
 0x176   :  { %v1868_v24 = vadd.f32 %v1867_v21, %v10305_v15  ;;  %v1869_v25 = vpop.f32.mrb[1].mxu1  ;;  %v8016_v21 = vcombine.high %v10328_v59, %v224_v4  ;;  %6990 = vmatprep.subr.bf16.mxu0 %v9111_v11  ;;  %v2014_v40 = vadd.f32 %v2013_v36, %v10351_v23  ;;  %v10391_v11 = vld [vmem:[#allocation5 + $0x578] sm:$0xff] }
 0x177   :  { %v1870_v27 = vadd.f32 %v1869_v25, %v10309_v17  ;;  %v1871_v28 = vpop.f32.mrb[2].mxu1  ;;  %2793 = vmatpush1.bf16.msra.mxu1 %v8107_v18  ;;  %v10340_v18 = vld [vmem:[#allocation5 + $0x378] sm:$0xff] }
 0x178   :  { %v1872_v30 = vadd.f32 %v1871_v28, %v10305_v15  ;;  %v1873_v31 = vpop.f32.mrb[3].mxu1  ;;  %2794 = vmatprep.subr.bf16.mxu1 %v8140_v19  ;;  %v3001_v38 = vmax.f32 %v1868_v24, 0.0  ;;  %v10342_v19 = vld [vmem:[#allocation5 + $0x3f8] sm:$0xff]  ;;  %v3005_v54 = vmax.f32 %v2014_v40, 0.0 }
 0x179   :  { %v1874_v35 = vadd.f32 %v1873_v31, %v10309_v17  ;;  %v3002_v41 = vmax.f32 %v1870_v27, 0.0  ;;  %v10360_v27 = vrot.slane %v10293_v2, %v10336_v7  ;;  %v9109_v28 = vld [vmem:[#allocation8 + $0x750] ss:$8 sps:$4 sm:$0xff]   ;;  %v9117_v31 = vld [vmem:[#allocation8 + $0x764] ss:$8 sps:$4 sm:$0xff]  }
 0x17a   :  { %v3033_v39 = vmax.f32 %v1872_v30, 0.0  ;;  %2699 = vmatmul.mubr.bf16.gmra.mrb[108].mxu1 %v10198_v52  ;;  %6991 = vmatpush1.bf16.msra.mxu0 %v9109_v28 }
 0x17b   :  { %v3034_v42 = vmax.f32 %v1874_v35, 0.0  ;;  %2795 = vmatpush1.bf16.msra.mxu1 %v8139_v29  ;;  %2814 = vmatprep.mubr.bf16.mxu1 %v10039_v0  ;;  %v8015_v35 = vcombine.low %v10328_v59, %v224_v4  ;;  %v10386_v4 = vsub.s32 3, %v10289_v61 }
 0x17c   :  { %v10320_v44 = vpack.c.bf16 %v3033_v39, %v3001_v38  ;;  %2796 = vmatprep.subr.bf16.mxu1 %v8172_v32  ;;  %v8048_v39 = vcombine.high %v10340_v18, %v10342_v19  ;;  %6992 = vmatprep.subr.bf16.mxu0 %v9117_v31  ;;  %v10401_v31 = vld [vmem:[#allocation5 + $0x678] sm:$0xff] }
 0x17d   :  { %v10323_v47 = vpack.c.bf16 %v3034_v42, %v3002_v41  ;;  %v1877_v48 = vpop.f32.mrb[4].mxu1  ;;  %v2015_v41 = vpop.f32.mrb[1].mxu0  ;;  %2918 = vmatmul.mubr.bf16.gmra.mrb[108].mxu0 %v10198_v52 }
 0x17e   :  { %v1878_v51 = vadd.f32 %v1877_v48, %v10305_v15  ;;  %v1879_v53 = vpop.f32.mrb[5].mxu1  ;;  %v2016_v46 = vadd.f32 %v2015_v41, %v10360_v27  ;;  %v2017_v48 = vpop.f32.mrb[2].mxu0  ;;  %6993 = vmatpush1.bf16.msra.mxu0 %v9115_v49  ;;  %v10420_v41 = vld [vmem:[#allocation5 + $0x6f8] sm:$0xff] }
 0x17f   :  { %v1880_v55 = vadd.f32 %v1879_v53, %v10309_v17  ;;  %v1881_v56 = vpop.f32.mrb[6].mxu1  ;;  %2797 = vmatpush1.bf16.msra.mxu1 %v8171_v43  ;;  %v8047_v43 = vcombine.low %v10340_v18, %v10342_v19  ;;  %6994 = vmatprep.subr.bf16.mxu0 %v9123_v50 }
 0x180   :  { %v1882_v60 = vadd.f32 %v1881_v56, %v10305_v15  ;;  %v1883_v62 = vpop.f32.mrb[7].mxu1  ;;  %2928 = vmatprep.subr.bf16.mxu1 %v7952_v45  ;;  %v3065_v8 = vmax.f32 %v1878_v51, 0.0  ;;  %v8080_v45 = vcombine.high %v10347_v22, %v10356_v26  ;;  %v2019_v56 = vpop.f32.mrb[3].mxu0 }
 0x181   :  { %v1884_v3 = vadd.f32 %v1883_v62, %v10309_v17  ;;  %v3066_v12 = vmax.f32 %v1880_v55, 0.0  ;;  %v2018_v55 = vadd.f32 %v2017_v48, %v10351_v23  ;;  %v2020_v62 = vadd.f32 %v2019_v56, %v10360_v27 }
 0x182   :  { %v3097_v10 = vmax.f32 %v1882_v60, 0.0  ;;  %2815 = vmatmul.mubr.bf16.vlgmr.msra.gmra.mrb[112].mxu1 %v10184_v58  ;;  %v3006_v60 = vmax.f32 %v2016_v46, 0.0  ;;  %v9135_v46 = vld [vmem:[#allocation8 + $0x794] ss:$8 sps:$4 sm:$0xff]  }
 0x183   :  { %v3098_v13 = vmax.f32 %v1884_v3, 0.0  ;;  %2929 = vmatpush1.bf16.msra.mxu1 %v7951_v57  ;;  %2824 = vmatprep.mubr.bf16.mxu1 %v10039_v0  ;;  %v10383_v3 = vsub.s32 2, %v10289_v61  ;;  %v3037_v5 = vmax.f32 %v2018_v55, 0.0 }
 0x184   :  { %v10344_v20 = vpack.c.bf16 %v3097_v10, %v3065_v8  ;;  %2930 = vmatprep.subr.bf16.mxu1 %v7984_v63 }
 0x185   :  { %v10354_v24 = vpack.c.bf16 %v3098_v13, %v3066_v12  ;;  %v1887_v25 = vpop.f32.mrb[8].mxu1  ;;  %v10393_v12 = vld [vmem:[#allocation5 + $0x5f8] sm:$0xff]  ;;  %v3038_v13 = vmax.f32 %v2020_v62, 0.0 }
 0x186   :  { %v1888_v29 = vadd.f32 %v1887_v25, %v10305_v15  ;;  %v1889_v30 = vpop.f32.mrb[9].mxu1  ;;  %v9129_v25 = vld [vmem:[#allocation8 + $0x784] ss:$8 sps:$4 sm:$0xff]  }
 0x187   :  { %v1890_v32 = vadd.f32 %v1889_v30, %v10309_v17  ;;  %v1891_v34 = vpop.f32.mrb[10].mxu1  ;;  %2931 = vmatpush1.bf16.msra.mxu1 %v7983_v16  ;;  %v9121_v16 = vld [vmem:[#allocation8 + $0x770] ss:$8 sps:$4 sm:$0xff]   ;;  %v8079_v30 = vcombine.low %v10347_v22, %v10356_v26  ;;  %v10416_v26 = vrot.slane %v10293_v2, %v10386_v4 }
 0x188   :  { %v1892_v37 = vadd.f32 %v1891_v34, %v10305_v15  ;;  %v1893_v38 = vpop.f32.mrb[11].mxu1  ;;  %2932 = vmatprep.subr.bf16.mxu1 %v8016_v21  ;;  %v3129_v51 = vmax.f32 %v1888_v29, 0.0  ;;  %v10396_v21 = vpack.c.bf16 %v3037_v5, %v3005_v54  ;;  %v2023_v34 = vpop.f32.mrb[4].mxu0  ;;  %6995 = vmatpush1.bf16.msra.mxu0 %v9121_v16 }
 0x189   :  { %v1894_v42 = vadd.f32 %v1893_v38, %v10309_v17  ;;  %v3130_v57 = vmax.f32 %v1890_v32, 0.0  ;;  %v10403_v32 = vpack.c.bf16 %v3038_v13, %v3006_v60  ;;  %v8112_v38 = vcombine.high %v10391_v11, %v10393_v12  ;;  %v2025_v40 = vpop.f32.mrb[5].mxu0  ;;  %6996 = vmatprep.subr.bf16.mxu0 %v9129_v25  ;;  %v9133_v13 = vld [vmem:[#allocation8 + $0x790] ss:$8 sps:$4 sm:$0xff]   ;;  %v9141_v25 = vld [vmem:[#allocation8 + $0x7a4] ss:$8 sps:$4 sm:$0xff]  }
 0x18a   :  { %v3161_v53 = vmax.f32 %v1892_v37, 0.0  ;;  %2825 = vmatmul.mubr.bf16.gmra.mrb[116].mxu1 %v10188_v14  ;;  %v10408_v37 = vrot.slane %v10293_v2, %v10383_v3 }
 0x18b   :  { %v3162_v59 = vmax.f32 %v1894_v42, 0.0  ;;  %2933 = vmatpush1.bf16.msra.mxu1 %v8015_v35  ;;  %2834 = vmatprep.mubr.bf16.mxu1 %v10039_v0  ;;  %v2026_v42 = vadd.f32 %v2025_v40, %v10360_v27 }
 0x18c   :  { %v10380_v63 = vpack.c.bf16 %v3161_v53, %v3129_v51  ;;  %2934 = vmatprep.subr.bf16.mxu1 %v8048_v39  ;;  %v2024_v39 = vadd.f32 %v2023_v34, %v10351_v23 }
 0x18d   :  { %v10389_v8 = vpack.c.bf16 %v3162_v59, %v3130_v57  ;;  %v1897_v10 = vpop.f32.mrb[12].mxu1  ;;  %v3070_v55 = vmax.f32 %v2026_v42, 0.0  ;;  %v8144_v59 = vcombine.high %v10401_v31, %v10420_v41 }
 0x18e   :  { %v1898_v18 = vadd.f32 %v1897_v10, %v10305_v15  ;;  %v1899_v19 = vpop.f32.mrb[13].mxu1  ;;  %v368_v10 = vld [vmem:[#allocation5 + $0x778] sm:$0xff] }
 0x18f   :  { %v1900_v28 = vadd.f32 %v1899_v19, %v10309_v17  ;;  %v1901_v29 = vpop.f32.mrb[14].mxu1  ;;  %2935 = vmatpush1.bf16.msra.mxu1 %v8047_v43  ;;  %v2027_v43 = vpop.f32.mrb[6].mxu0 }
 0x190   :  { %v1902_v35 = vadd.f32 %v1901_v29, %v10305_v15  ;;  %v1903_v36 = vpop.f32.mrb[15].mxu1  ;;  %2936 = vmatprep.subr.bf16.mxu1 %v8080_v45  ;;  %v8111_v15 = vcombine.low %v10391_v11, %v10393_v12  ;;  %v9127_v45 = vld [vmem:[#allocation8 + $0x780] ss:$8 sps:$4 sm:$0xff]   ;;  %v3193_v48 = vmax.f32 %v1898_v18, 0.0  ;;  %v2028_v50 = vadd.f32 %v2027_v43, %v10351_v23  ;;  %v2029_v51 = vpop.f32.mrb[7].mxu0  ;;  %v384_v11 = vld [vmem:[#allocation5 + $0x7f8] sm:$0xff] }
 0x191   :  { %v1904_v22 = vadd.f32 %v1903_v36, %v10309_v17  ;;  %v3069_v17 = vmax.f32 %v2024_v39, 0.0  ;;  %v3194_v53 = vmax.f32 %v1900_v28, 0.0  ;;  %v2030_v56 = vadd.f32 %v2029_v51, %v10360_v27  ;;  %6997 = vmatpush1.bf16.msra.mxu0 %v9127_v45 }
 0x192   :  { %v3225_v49 = vmax.f32 %v1902_v35, 0.0  ;;  %2835 = vmatmul.mubr.bf16.gmra.mrb[120].mxu1 %v10192_v33  ;;  %v3101_v60 = vmax.f32 %v2028_v50, 0.0  ;;  %6998 = vmatprep.subr.bf16.mxu0 %v9135_v46  ;;  %v2033_v35 = vpop.f32.mrb[8].mxu0  ;;  %v8176_v39 = vcombine.high %v368_v10, %v384_v11  ;;  %v8175_v43 = vcombine.low %v368_v10, %v384_v11  ;;  %v9139_v46 = vld [vmem:[#allocation8 + $0x7a0] ss:$8 sps:$4 sm:$0xff]  }
 0x193   :  { %v3226_v54 = vmax.f32 %v1904_v22, 0.0  ;;  %2937 = vmatpush1.bf16.msra.mxu1 %v8079_v30  ;;  %2844 = vmatprep.mubr.bf16.mxu1 %v10039_v0  ;;  %v3102_v12 = vmax.f32 %v2030_v56, 0.0  ;;  %v8143_v30 = vcombine.low %v10401_v31, %v10420_v41  ;;  %v2034_v40 = vadd.f32 %v2033_v35, %v10351_v23  ;;  %v2035_v22 = vpop.f32.mrb[9].mxu0  ;;  %v9147_v31 = vld [vmem:[#allocation8 + $0x7b4] ss:$8 sps:$4 sm:$0xff]  }
 0x194   :  { %v10427_v57 = vpack.c.bf16 %v3225_v49, %v3193_v48  ;;  %2938 = vmatprep.subr.bf16.mxu1 %v8112_v38  ;;  %v10434_v19 = vpack.c.bf16 %v3101_v60, %v3069_v17  ;;  %v2036_v45 = vadd.f32 %v2035_v22, %v10360_v27  ;;  %v9057_v49 = vld [vmem:[#allocation8 + $0x4] ss:$8 sps:$4 sm:$0xff]   ;;  %v9055_v11 = vld [vmem:[#allocation8] ss:$8 sps:$4 sm:$0xff]  }
 0x195   :  { %v10431_v62 = vpack.c.bf16 %v3226_v54, %v3194_v53  ;;  %v1940_v5 = vpop.f32.mrb[16].mxu1  ;;  %v10439_v34 = vpack.c.bf16 %v3102_v12, %v3070_v55  ;;  %6999 = vmatpush1.bf16.msra.mxu0 %v9133_v13  ;;  %v3133_v17 = vmax.f32 %v2034_v40, 0.0  ;;  %v9145_v13 = vld [vmem:[#allocation8 + $0x7b0] ss:$8 sps:$4 sm:$0xff]  }
 0x196   :  { %v1941_v16 = vadd.f32 %v1940_v5, %v10408_v37  ;;  %v1942_v18 = vpop.f32.mrb[17].mxu1  ;;  %7000 = vmatprep.subr.bf16.mxu0 %v9141_v25  ;;  %v3134_v55 = vmax.f32 %v2036_v45, 0.0  ;;  %v9060_v25 = vld [vmem:[#allocation8 + $0x14] ss:$8 sps:$4 sm:$0xff]  }
 0x197   :  { %v1943_v28 = vadd.f32 %v1942_v18, %v10416_v26  ;;  %v1944_v29 = vpop.f32.mrb[18].mxu1  ;;  %2939 = vmatpush1.bf16.msra.mxu1 %v8111_v15  ;;  %v2037_v15 = vpop.f32.mrb[10].mxu0 }
 0x198   :  { %v1945_v36 = vadd.f32 %v1944_v29, %v10408_v37  ;;  %v1946_v38 = vpop.f32.mrb[19].mxu1  ;;  %2940 = vmatprep.subr.bf16.mxu1 %v8144_v59  ;;  %v3003_v41 = vmax.f32 %v1941_v16, 0.0  ;;  %v2038_v50 = vadd.f32 %v2037_v15, %v10351_v23  ;;  %v2039_v51 = vpop.f32.mrb[11].mxu0  ;;  %v9153_v29 = vld [vmem:[#allocation8 + $0x7c4] ss:$8 sps:$4 sm:$0xff]  }
 0x199   :  { %v1947_v42 = vadd.f32 %v1946_v38, %v10416_v26  ;;  %v3004_v53 = vmax.f32 %v1943_v28, 0.0  ;;  %v2040_v56 = vadd.f32 %v2039_v51, %v10360_v27  ;;  %7001 = vmatpush1.bf16.msra.mxu0 %v9139_v46  ;;  %v2043_v38 = vpop.f32.mrb[12].mxu0  ;;  %v9058_v46 = vld [vmem:[#allocation8 + $0x10] ss:$8 sps:$4 sm:$0xff]  }
 0x19a   :  { %v3035_v48 = vmax.f32 %v1945_v36, 0.0  ;;  %2845 = vmatmul.mubr.bf16.gmra.mrb[124].mxu1 %v10198_v52  ;;  %v3165_v60 = vmax.f32 %v2038_v50, 0.0  ;;  %7002 = vmatprep.subr.bf16.mxu0 %v9147_v31  ;;  %v2045_v45 = vpop.f32.mrb[13].mxu0 }
 0x19b   :  { %v3036_v54 = vmax.f32 %v1947_v42, 0.0  ;;  %2941 = vmatpush1.bf16.msra.mxu1 %v8143_v30  ;;  %2960 = vmatprep.mubr.bf16.mxu1 %v10039_v0  ;;  %v3166_v12 = vmax.f32 %v2040_v56, 0.0  ;;  %v2044_v42 = vadd.f32 %v2043_v38, %v10351_v23  ;;  %v2046_v31 = vadd.f32 %v2045_v45, %v10360_v27  ;;  %v10466_v56 = vld [vmem:[#allocation7 + $0x8] sm:$0xff] }
 0x19c   :  { %v10449_v59 = vpack.c.bf16 %v3035_v48, %v3003_v41  ;;  %2942 = vmatprep.subr.bf16.mxu1 %v8176_v39  ;;  %v10454_v28 = vpack.c.bf16 %v3165_v60, %v3133_v17  ;;  %v9151_v39 = vld [vmem:[#allocation8 + $0x7c0] ss:$8 sps:$4 sm:$0xff]   ;;  %v2047_v41 = vpop.f32.mrb[14].mxu0  ;;  %v9159_v48 = vld [vmem:[#allocation8 + $0x7d4] ss:$8 sps:$4 sm:$0xff]  }
 0x19d   :  { %v10451_v5 = vpack.c.bf16 %v3036_v54, %v3004_v53  ;;  %v1950_v10 = vpop.f32.mrb[20].mxu1  ;;  %v10457_v36 = vpack.c.bf16 %v3166_v12, %v3134_v55  ;;  %7003 = vmatpush1.bf16.msra.mxu0 %v9145_v13  ;;  %v3197_v50 = vmax.f32 %v2044_v42, 0.0  ;;  %v2048_v51 = vadd.f32 %v2047_v41, %v10351_v23  ;;  %v2049_v53 = vpop.f32.mrb[15].mxu0  ;;  %v9063_v55 = vld [vmem:[#allocation8 + $0x24] ss:$8 sps:$4 sm:$0xff]  }
 0x19e   :  { %v1951_v16 = vadd.f32 %v1950_v10, %v10408_v37  ;;  %v1952_v18 = vpop.f32.mrb[21].mxu1  ;;  %7004 = vmatprep.subr.bf16.mxu0 %v9153_v29  ;;  %v3198_v60 = vmax.f32 %v2046_v31, 0.0  ;;  %v2050_v10 = vadd.f32 %v2049_v53, %v10360_v27  ;;  %v10473_v23 = vrot.slane %v10466_v56, %v10297_v6 }
 0x19f   :  { %v1953_v30 = vadd.f32 %v1952_v18, %v10416_v26  ;;  %v1954_v35 = vpop.f32.mrb[22].mxu1  ;;  %2943 = vmatpush1.bf16.msra.mxu1 %v8175_v43  ;;  %v10479_v29 = vrot.slane %v10466_v56, %v10300_v9 }
 0x1a0   :  { %v1955_v40 = vadd.f32 %v1954_v35, %v10408_v37  ;;  %v1956_v22 = vpop.f32.mrb[23].mxu1  ;;  %6469 = vmatprep.subr.bf16.mxu1 %v9057_v49  ;;  %v3067_v43 = vmax.f32 %v1951_v16, 0.0  ;;  %v3230_v18 = vmax.f32 %v2050_v10, 0.0 }
 0x1a1   :  { %v1957_v15 = vadd.f32 %v1956_v22, %v10416_v26  ;;  %v3068_v49 = vmax.f32 %v1953_v30, 0.0  ;;  %7005 = vmatpush1.bf16.msra.mxu0 %v9151_v39  ;;  %v9157_v30 = vld [vmem:[#allocation8 + $0x7d0] ss:$8 sps:$4 sm:$0xff]   ;;  %v2159_v39 = vpop.f32.mrb[16].mxu0 }
 0x1a2   :  { %v3099_v17 = vmax.f32 %v1955_v40, 0.0  ;;  %2961 = vmatmul.mubr.bf16.vlgmr.msra.gmra.mrb[128].mxu1 %v10184_v58  ;;  %v3229_v58 = vmax.f32 %v2048_v51, 0.0  ;;  %7006 = vmatprep.subr.bf16.mxu0 %v9159_v48  ;;  %v9165_v40 = vld [vmem:[#allocation8 + $0x7e4] ss:$8 sps:$4 sm:$0xff]   ;;  %v10485_v45 = vpack.c.bf16 %v3230_v18, %v3198_v60  ;;  %v9064_v51 = vld [vmem:[#allocation8 + $0x30] ss:$8 sps:$4 sm:$0xff]  }
 0x1a3   :  { %v3100_v54 = vmax.f32 %v1957_v15, 0.0  ;;  %6470 = vmatpush1.bf16.msra.mxu1 %v9055_v11  ;;  %2970 = vmatprep.mubr.bf16.mxu1 %v10039_v0  ;;  %v9061_v11 = vld [vmem:[#allocation8 + $0x20] ss:$8 sps:$4 sm:$0xff]   ;;  %v9069_v18 = vld [vmem:[#allocation8 + $0x44] ss:$8 sps:$4 sm:$0xff]  }
 0x1a4   :  { %v10469_v12 = vpack.c.bf16 %v3099_v17, %v3067_v43  ;;  %6471 = vmatprep.subr.bf16.mxu1 %v9060_v25  ;;  %v9066_v25 = vld [vmem:[#allocation8 + $0x34] ss:$8 sps:$4 sm:$0xff]   ;;  %v10482_v38 = vpack.c.bf16 %v3229_v58, %v3197_v50  ;;  %v9163_v15 = vld [vmem:[#allocation8 + $0x7e0] ss:$8 sps:$4 sm:$0xff]   ;;  %v2160_v43 = vadd.f32 %v2159_v39, %v10473_v23  ;;  %v2161_v17 = vpop.f32.mrb[17].mxu0 }
 0x1a5   :  { %v10475_v13 = vpack.c.bf16 %v3100_v54, %v3068_v49  ;;  %v1960_v16 = vpop.f32.mrb[24].mxu1  ;;  %v2162_v48 = vadd.f32 %v2161_v17, %v10479_v29  ;;  %v2163_v53 = vpop.f32.mrb[18].mxu0  ;;  %7007 = vmatpush1.bf16.msra.mxu0 %v9157_v30  ;;  %v9171_v49 = vld [vmem:[#allocation8 + $0x7f4] ss:$8 sps:$4 sm:$0xff]  }
 0x1a6   :  { %v1961_v27 = vadd.f32 %v1960_v16, %v10408_v37  ;;  %v1962_v35 = vpop.f32.mrb[25].mxu1  ;;  %v3009_v60 = vmax.f32 %v2160_v43, 0.0  ;;  %v2164_v10 = vadd.f32 %v2163_v53, %v10473_v23  ;;  %v2165_v58 = vpop.f32.mrb[19].mxu0  ;;  %7008 = vmatprep.subr.bf16.mxu0 %v9165_v40  ;;  %v10503_v40 = vsub.s32 7, %v10289_v61 }
 0x1a7   :  { %v1963_v22 = vadd.f32 %v1962_v35, %v10416_v26  ;;  %v1964_v42 = vpop.f32.mrb[26].mxu1  ;;  %6472 = vmatpush1.bf16.msra.mxu1 %v9058_v46  ;;  %v3010_v35 = vmax.f32 %v2162_v48, 0.0 }
 0x1a8   :  { %v1965_v31 = vadd.f32 %v1964_v42, %v10408_v37  ;;  %v1966_v41 = vpop.f32.mrb[27].mxu1  ;;  %6473 = vmatprep.subr.bf16.mxu1 %v9063_v55  ;;  %v3131_v46 = vmax.f32 %v1961_v27, 0.0  ;;  %v2166_v42 = vadd.f32 %v2165_v58, %v10479_v29  ;;  %v3041_v27 = vmax.f32 %v2164_v10, 0.0  ;;  %v2169_v10 = vpop.f32.mrb[20].mxu0 }
 0x1a9   :  { %v1967_v50 = vadd.f32 %v1966_v41, %v10416_v26  ;;  %v3132_v55 = vmax.f32 %v1963_v22, 0.0  ;;  %v10500_v41 = vsub.s32 6, %v10289_v61  ;;  %7009 = vmatpush1.bf16.msra.mxu0 %v9163_v15  ;;  %v9169_v22 = vld [vmem:[#allocation8 + $0x7f0] ss:$8 sps:$4 sm:$0xff]   ;;  %v2170_v15 = vadd.f32 %v2169_v10, %v10473_v23 }
 0x1aa   :  { %v3163_v54 = vmax.f32 %v1965_v31, 0.0  ;;  %2971 = vmatmul.mubr.bf16.gmra.mrb[132].mxu1 %v10188_v14  ;;  %v9067_v31 = vld [vmem:[#allocation8 + $0x40] ss:$8 sps:$4 sm:$0xff]   ;;  %7010 = vmatprep.subr.bf16.mxu0 %v9171_v49 }
 0x1ab   :  { %v3164_v16 = vmax.f32 %v1967_v50, 0.0  ;;  %6474 = vmatpush1.bf16.msra.mxu1 %v9061_v11  ;;  %2980 = vmatprep.mubr.bf16.mxu1 %v10039_v0  ;;  %v3042_v11 = vmax.f32 %v2166_v42, 0.0  ;;  %v10506_v50 = vpack.c.bf16 %v3041_v27, %v3009_v60  ;;  %v10516_v49 = vrot.slane %v10293_v2, %v10500_v41 }
 0x1ac   :  { %v10495_v30 = vpack.c.bf16 %v3163_v54, %v3131_v46  ;;  %6475 = vmatprep.subr.bf16.mxu1 %v9066_v25  ;;  %v9177_v25 = vld [vmem:[#allocation8 + $0x804] ss:$8 sps:$4 sm:$0xff]   ;;  %v9072_v46 = vld [vmem:[#allocation8 + $0x54] ss:$8 sps:$4 sm:$0xff]   ;;  %v3073_v27 = vmax.f32 %v2170_v15, 0.0 }
 0x1ad   :  { %v10497_v39 = vpack.c.bf16 %v3164_v16, %v3132_v55  ;;  %v1970_v14 = vpop.f32.mrb[28].mxu1  ;;  %11189 = vst [vmem:[#allocation22_spill] sm:$0xff] %v10506_v50  ;;  %v10509_v54 = vpack.c.bf16 %v3042_v11, %v3010_v35  ;;  %v2171_v55 = vpop.f32.mrb[21].mxu0  ;;  %v9070_v16 = vld [vmem:[#allocation8 + $0x50] ss:$8 sps:$4 sm:$0xff]   ;;  %7011 = vmatpush1.bf16.msra.mxu0 %v9169_v22 }
 0x1ae   :  { %v1971_v43 = vadd.f32 %v1970_v14, %v10408_v37  ;;  %v1972_v17 = vpop.f32.mrb[29].mxu1  ;;  %v2172_v35 = vadd.f32 %v2171_v55, %v10479_v29  ;;  %v2173_v42 = vpop.f32.mrb[22].mxu0  ;;  %7053 = vmatprep.subr.bf16.mxu0 %v9177_v25  ;;  %v9073_v55 = vld [vmem:[#allocation8 + $0x60] ss:$8 sps:$4 sm:$0xff]  }
 0x1af   :  { %v1973_v48 = vadd.f32 %v1972_v17, %v10416_v26  ;;  %v1974_v53 = vpop.f32.mrb[30].mxu1  ;;  %6476 = vmatpush1.bf16.msra.mxu1 %v9064_v51  ;;  %11190 = vst [vmem:[#allocation23_spill] sm:$0xff] %v10509_v54  ;;  %v10520_v51 = vrot.slane %v10293_v2, %v10503_v40  ;;  %v2175_v14 = vpop.f32.mrb[23].mxu0  ;;  %v9075_v2 = vld [vmem:[#allocation8 + $0x64] ss:$8 sps:$4 sm:$0xff]  }
 0x1b0   :  { %v1975_v61 = vadd.f32 %v1974_v53, %v10408_v37  ;;  %v1976_v58 = vpop.f32.mrb[31].mxu1  ;;  %6477 = vmatprep.subr.bf16.mxu1 %v9069_v18  ;;  %v3195_v37 = vmax.f32 %v1971_v43, 0.0  ;;  %v3074_v53 = vmax.f32 %v2172_v35, 0.0  ;;  %v2176_v10 = vadd.f32 %v2175_v14, %v10479_v29  ;;  %v2179_v35 = vpop.f32.mrb[24].mxu0 }
 0x1b1   :  { %v1977_v60 = vadd.f32 %v1976_v58, %v10416_v26  ;;  %v2174_v26 = vadd.f32 %v2173_v42, %v10473_v23  ;;  %v3196_v11 = vmax.f32 %v1973_v48, 0.0 }
 0x1b2   :  { %v3227_v18 = vmax.f32 %v1975_v61, 0.0  ;;  %2981 = vmatmul.mubr.bf16.gmra.mrb[136].mxu1 %v10192_v33  ;;  %v3106_v61 = vmax.f32 %v2176_v10, 0.0 }
 0x1b3   :  { %v3228_v17 = vmax.f32 %v1977_v60, 0.0  ;;  %6478 = vmatpush1.bf16.msra.mxu1 %v9067_v31  ;;  %2990 = vmatprep.mubr.bf16.mxu1 %v10039_v0  ;;  %v3105_v22 = vmax.f32 %v2174_v26, 0.0  ;;  %v2181_v26 = vpop.f32.mrb[25].mxu0 }
 0x1b4   :  { %v10527_v58 = vpack.c.bf16 %v3227_v18, %v3195_v37  ;;  %6479 = vmatprep.subr.bf16.mxu1 %v9072_v46  ;;  %v10535_v60 = vpack.c.bf16 %v3106_v61, %v3074_v53  ;;  %v9078_v37 = vld [vmem:[#allocation8 + $0x74] ss:$8 sps:$4 sm:$0xff]   ;;  %v2180_v18 = vadd.f32 %v2179_v35, %v10473_v23 }
 0x1b5   :  { %v10529_v43 = vpack.c.bf16 %v3228_v17, %v3196_v11  ;;  %v2086_v33 = vpop.f32.mrb[32].mxu1  ;;  %v10532_v48 = vpack.c.bf16 %v3105_v22, %v3073_v27  ;;  %v2182_v27 = vadd.f32 %v2181_v26, %v10479_v29  ;;  %v2183_v11 = vpop.f32.mrb[26].mxu0 }
 0x1b6   :  { %v2087_v15 = vadd.f32 %v2086_v33, %v10516_v49  ;;  %v2088_v25 = vpop.f32.mrb[33].mxu1  ;;  %11192 = vst [vmem:[#allocation25_spill] sm:$0xff] %v10535_v60  ;;  %v3137_v53 = vmax.f32 %v2180_v18, 0.0  ;;  %v2184_v22 = vadd.f32 %v2183_v11, %v10473_v23  ;;  %v2185_v33 = vpop.f32.mrb[27].mxu0 }
 0x1b7   :  { %11191 = vst [vmem:[#allocation24_spill] sm:$0xff] %v10532_v48  ;;  %v2089_v31 = vadd.f32 %v2088_v25, %v10520_v51  ;;  %v2090_v0 = vpop.f32.mrb[34].mxu1  ;;  %6480 = vmatpush1.bf16.msra.mxu1 %v9070_v16  ;;  %v9076_v16 = vld [vmem:[#allocation8 + $0x70] ss:$8 sps:$4 sm:$0xff]   ;;  %v9084_v25 = vld [vmem:[#allocation8 + $0x84] ss:$8 sps:$4 sm:$0xff]   ;;  %v2186_v35 = vadd.f32 %v2185_v33, %v10479_v29 }
 0x1b8   :  { %v2091_v46 = vadd.f32 %v2090_v0, %v10516_v49  ;;  %v2092_v42 = vpop.f32.mrb[35].mxu1  ;;  %6481 = vmatprep.subr.bf16.mxu1 %v9075_v2  ;;  %v3007_v17 = vmax.f32 %v2087_v15, 0.0  ;;  %v3138_v0 = vmax.f32 %v2182_v27, 0.0  ;;  %v3169_v15 = vmax.f32 %v2184_v22, 0.0  ;;  %v9090_v22 = vld [vmem:[#allocation8 + $0x94] ss:$8 sps:$4 sm:$0xff]  }
 0x1b9   :  { %v2093_v14 = vadd.f32 %v2092_v42, %v10520_v51  ;;  %v3008_v61 = vmax.f32 %v2089_v31, 0.0  ;;  %v3170_v18 = vmax.f32 %v2186_v35, 0.0 }
 0x1ba   :  { %v3039_v10 = vmax.f32 %v2091_v46, 0.0  ;;  %2991 = vmatmul.mubr.bf16.gmra.mrb[140].mxu1 %v10198_v52  ;;  %v10550_v31 = vpack.c.bf16 %v3169_v15, %v3137_v53  ;;  %v9088_v53 = vld [vmem:[#allocation8 + $0x90] ss:$8 sps:$4 sm:$0xff]  }
 0x1bb   :  { %v3040_v2 = vmax.f32 %v2093_v14, 0.0  ;;  %6482 = vmatpush1.bf16.msra.mxu1 %v9073_v55  ;;  %6501 = vmatprep.mubr.bf16.mxu1 %v10323_v47  ;;  %v9082_v14 = vld [vmem:[#allocation8 + $0x80] ss:$8 sps:$4 sm:$0xff]   ;;  %v10553_v27 = vpack.c.bf16 %v3170_v18, %v3138_v0 }
 0x1bc   :  { %v10545_v42 = vpack.c.bf16 %v3039_v10, %v3007_v17  ;;  %6483 = vmatprep.subr.bf16.mxu1 %v9078_v37  ;;  %11193 = vst [vmem:[#allocation26_spill] sm:$0xff] %v10550_v31  ;;  %v2189_v17 = vpop.f32.mrb[28].mxu0 }
 0x1bd   :  { %v10547_v46 = vpack.c.bf16 %v3040_v2, %v3008_v61  ;;  %v2096_v52 = vpop.f32.mrb[36].mxu1  ;;  %11194 = vst [vmem:[#allocation27_spill] sm:$0xff] %v10553_v27  ;;  %v2190_v33 = vadd.f32 %v2189_v17, %v10473_v23  ;;  %v2191_v61 = vpop.f32.mrb[29].mxu0 }
 0x1be   :  { %v2097_v26 = vadd.f32 %v2096_v52, %v10516_v49  ;;  %v2098_v11 = vpop.f32.mrb[37].mxu1  ;;  %v2192_v35 = vadd.f32 %v2191_v61, %v10479_v29  ;;  %v2193_v15 = vpop.f32.mrb[30].mxu0  ;;  %v10565_v61 = vrot.slane %v10466_v56, %v10332_v1 }
 0x1bf   :  { %v2099_v55 = vadd.f32 %v2098_v11, %v10520_v51  ;;  %v2100_v47 = vpop.f32.mrb[38].mxu1  ;;  %6484 = vmatpush1.bf16.msra.mxu1 %v9076_v16  ;;  %v9096_v11 = vld [vmem:[#allocation8 + $0xa4] ss:$8 sps:$4 sm:$0xff]   ;;  %v3201_v0 = vmax.f32 %v2190_v33, 0.0  ;;  %v2194_v18 = vadd.f32 %v2193_v15, %v10473_v23  ;;  %v2195_v31 = vpop.f32.mrb[31].mxu0  ;;  %v10571_v23 = vrot.slane %v10466_v56, %v10336_v7 }
 0x1c0   :  { %v2101_v37 = vadd.f32 %v2100_v47, %v10516_v49  ;;  %v2102_v10 = vpop.f32.mrb[39].mxu1  ;;  %6485 = vmatprep.subr.bf16.mxu1 %v9084_v25  ;;  %v3071_v52 = vmax.f32 %v2097_v26, 0.0  ;;  %v3202_v25 = vmax.f32 %v2192_v35, 0.0  ;;  %v2196_v17 = vadd.f32 %v2195_v31, %v10479_v29 }
 0x1c1   :  { %v2103_v2 = vadd.f32 %v2102_v10, %v10520_v51  ;;  %v3072_v47 = vmax.f32 %v2099_v55, 0.0  ;;  %v3233_v10 = vmax.f32 %v2194_v18, 0.0 }
 0x1c2   :  { %v3103_v16 = vmax.f32 %v2101_v37, 0.0  ;;  %v3234_v33 = vmax.f32 %v2196_v17, 0.0 }
 0x1c3   :  { %v3104_v27 = vmax.f32 %v2103_v2, 0.0  ;;  %6486 = vmatpush1.bf16.msra.mxu1 %v9082_v14  ;;  %v10574_v29 = vpack.c.bf16 %v3233_v10, %v3201_v0  ;;  %v9094_v2 = vld [vmem:[#allocation8 + $0xa0] ss:$8 sps:$4 sm:$0xff]   ;;  %v9100_v0 = vld [vmem:[#allocation8 + $0xb0] ss:$8 sps:$4 sm:$0xff]  }
 0x1c4   :  { %v10561_v48 = vpack.c.bf16 %v3103_v16, %v3071_v52  ;;  %6487 = vmatprep.subr.bf16.mxu1 %v9090_v22  ;;  %v10577_v35 = vpack.c.bf16 %v3234_v33, %v3202_v25  ;;  %v9102_v16 = vld [vmem:[#allocation8 + $0xb4] ss:$8 sps:$4 sm:$0xff]  }
 0x1c5   :  { %v10567_v26 = vpack.c.bf16 %v3104_v27, %v3072_v47  ;;  %v2106_v37 = vpop.f32.mrb[40].mxu1  ;;  %11197 = vst [vmem:[#allocation30_spill] sm:$0xff] %v10574_v29  ;;  %v2305_v27 = vpop.f32.mrb[32].mxu0  ;;  %v9108_v29 = vld [vmem:[#allocation8 + $0xc4] ss:$8 sps:$4 sm:$0xff]  }
 0x1c6   :  { %11195 = vst [vmem:[#allocation28_spill] sm:$0xff] %v10561_v48  ;;  %v2107_v55 = vadd.f32 %v2106_v37, %v10516_v49  ;;  %v2108_v14 = vpop.f32.mrb[41].mxu1  ;;  %11198 = vst [vmem:[#allocation31_spill] sm:$0xff] %v10577_v35  ;;  %v2306_v18 = vadd.f32 %v2305_v27, %v10565_v61  ;;  %v2307_v47 = vpop.f32.mrb[33].mxu0 }
 0x1c7   :  { %11196 = vst [vmem:[#allocation29_spill] sm:$0xff] %v10567_v26  ;;  %v2109_v31 = vadd.f32 %v2108_v14, %v10520_v51  ;;  %v2110_v22 = vpop.f32.mrb[42].mxu1  ;;  %6488 = vmatpush1.bf16.msra.mxu1 %v9088_v53  ;;  %v2308_v10 = vadd.f32 %v2307_v47, %v10571_v23  ;;  %v2309_v37 = vpop.f32.mrb[34].mxu0 }
 0x1c8   :  { %v2111_v15 = vadd.f32 %v2110_v22, %v10516_v49  ;;  %v2112_v52 = vpop.f32.mrb[43].mxu1  ;;  %6489 = vmatprep.subr.bf16.mxu1 %v9096_v11  ;;  %v3135_v14 = vmax.f32 %v2107_v55, 0.0  ;;  %v3013_v25 = vmax.f32 %v2306_v18, 0.0  ;;  %v2310_v33 = vadd.f32 %v2309_v37, %v10565_v61  ;;  %v2311_v35 = vpop.f32.mrb[35].mxu0 }
 0x1c9   :  { %v2113_v17 = vadd.f32 %v2112_v52, %v10520_v51  ;;  %v3136_v22 = vmax.f32 %v2109_v31, 0.0  ;;  %v3014_v11 = vmax.f32 %v2308_v10, 0.0  ;;  %v2312_v27 = vadd.f32 %v2311_v35, %v10571_v23  ;;  %v2315_v35 = vpop.f32.mrb[36].mxu0 }
 0x1ca   :  { %v3167_v53 = vmax.f32 %v2111_v15, 0.0  ;;  %v3045_v52 = vmax.f32 %v2310_v33, 0.0 }
 0x1cb   :  { %v3168_v60 = vmax.f32 %v2113_v17, 0.0  ;;  %6490 = vmatpush1.bf16.msra.mxu1 %v9094_v2  ;;  %v3046_v55 = vmax.f32 %v2312_v27, 0.0  ;;  %v9106_v2 = vld [vmem:[#allocation8 + $0xc0] ss:$8 sps:$4 sm:$0xff]  }
 0x1cc   :  { %v10585_v50 = vpack.c.bf16 %v3167_v53, %v3135_v14  ;;  %6491 = vmatprep.subr.bf16.mxu1 %v9102_v16  ;;  %v10590_v48 = vpack.c.bf16 %v3045_v52, %v3013_v25  ;;  %v2316_v14 = vadd.f32 %v2315_v35, %v10565_v61  ;;  %v2317_v53 = vpop.f32.mrb[37].mxu0  ;;  %v10600_v25 = vrot.slane %v10466_v56, %v10383_v3  ;;  %v9120_v52 = vld [vmem:[#allocation8 + $0xe4] ss:$8 sps:$4 sm:$0xff]  }
 0x1cd   :  { %v10587_v54 = vpack.c.bf16 %v3168_v60, %v3136_v22  ;;  %v2116_v47 = vpop.f32.mrb[44].mxu1  ;;  %v10593_v10 = vpack.c.bf16 %v3046_v55, %v3014_v11  ;;  %v9114_v60 = vld [vmem:[#allocation8 + $0xd4] ss:$8 sps:$4 sm:$0xff]   ;;  %v9112_v22 = vld [vmem:[#allocation8 + $0xd0] ss:$8 sps:$4 sm:$0xff]   ;;  %v2318_v11 = vadd.f32 %v2317_v53, %v10571_v23 }
 0x1ce   :  { %11199 = vst [vmem:[#allocation32_spill] sm:$0xff] %v10585_v50  ;;  %v2117_v15 = vadd.f32 %v2116_v47, %v10516_v49  ;;  %v2118_v18 = vpop.f32.mrb[45].mxu1  ;;  %11201 = vst [vmem:[#allocation34_spill] sm:$0xff] %v10590_v48  ;;  %v3077_v47 = vmax.f32 %v2316_v14, 0.0 }
 0x1cf   :  { %11200 = vst [vmem:[#allocation33_spill] sm:$0xff] %v10587_v54  ;;  %v2119_v31 = vadd.f32 %v2118_v18, %v10520_v51  ;;  %v2120_v17 = vpop.f32.mrb[46].mxu1  ;;  %6492 = vmatpush1.bf16.msra.mxu1 %v9100_v0  ;;  %11202 = vst [vmem:[#allocation35_spill] sm:$0xff] %v10593_v10  ;;  %v10604_v0 = vrot.slane %v10466_v56, %v10386_v4  ;;  %v3078_v35 = vmax.f32 %v2318_v11, 0.0 }
 0x1d0   :  { %v2121_v16 = vadd.f32 %v2120_v17, %v10516_v49  ;;  %v2122_v37 = vpop.f32.mrb[47].mxu1  ;;  %6493 = vmatprep.subr.bf16.mxu1 %v9108_v29  ;;  %v2319_v49 = vpop.f32.mrb[38].mxu0  ;;  %v3199_v27 = vmax.f32 %v2117_v15, 0.0 }
 0x1d1   :  { %v2123_v33 = vadd.f32 %v2122_v37, %v10520_v51  ;;  %v2320_v55 = vadd.f32 %v2319_v49, %v10565_v61  ;;  %v2321_v18 = vpop.f32.mrb[39].mxu0  ;;  %v3200_v51 = vmax.f32 %v2119_v31, 0.0 }
 0x1d2   :  { %v3231_v29 = vmax.f32 %v2121_v16, 0.0  ;;  %v2322_v37 = vadd.f32 %v2321_v18, %v10571_v23  ;;  %v2325_v49 = vpop.f32.mrb[40].mxu0 }
 0x1d3   :  { %v3232_v17 = vmax.f32 %v2123_v33, 0.0  ;;  %6494 = vmatpush1.bf16.msra.mxu1 %v9106_v2  ;;  %v3109_v10 = vmax.f32 %v2320_v55, 0.0  ;;  %v9118_v2 = vld [vmem:[#allocation8 + $0xe0] ss:$8 sps:$4 sm:$0xff]   ;;  %v2326_v55 = vadd.f32 %v2325_v49, %v10565_v61  ;;  %v2327_v18 = vpop.f32.mrb[41].mxu0 }
 0x1d4   :  { %v10609_v48 = vpack.c.bf16 %v3231_v29, %v3199_v27  ;;  %6495 = vmatprep.subr.bf16.mxu1 %v9114_v60  ;;  %v3110_v15 = vmax.f32 %v2322_v37, 0.0  ;;  %v9126_v29 = vld [vmem:[#allocation8 + $0xf4] ss:$8 sps:$4 sm:$0xff]  }
 0x1d5   :  { %v10611_v50 = vpack.c.bf16 %v3232_v17, %v3200_v51  ;;  %v2232_v53 = vpop.f32.mrb[48].mxu1  ;;  %v10614_v54 = vpack.c.bf16 %v3109_v10, %v3077_v47  ;;  %v9124_v10 = vld [vmem:[#allocation8 + $0xf0] ss:$8 sps:$4 sm:$0xff]   ;;  %v2328_v47 = vadd.f32 %v2327_v18, %v10571_v23  ;;  %v2329_v17 = vpop.f32.mrb[42].mxu0 }
 0x1d6   :  { %11203 = vst [vmem:[#allocation36_spill] sm:$0xff] %v10609_v48  ;;  %v2233_v16 = vadd.f32 %v2232_v53, %v10600_v25  ;;  %v2234_v14 = vpop.f32.mrb[49].mxu1  ;;  %v10617_v11 = vpack.c.bf16 %v3110_v15, %v3078_v35  ;;  %v9132_v53 = vld [vmem:[#allocation8 + $0x104] ss:$8 sps:$4 sm:$0xff]   ;;  %v3141_v35 = vmax.f32 %v2326_v55, 0.0  ;;  %v2330_v15 = vadd.f32 %v2329_v17, %v10565_v61 }
 0x1d7   :  { %11204 = vst [vmem:[#allocation37_spill] sm:$0xff] %v10611_v50  ;;  %11205 = vst [vmem:[#allocation38_spill] sm:$0xff] %v10614_v54  ;;  %v2235_v31 = vadd.f32 %v2234_v14, %v10604_v0  ;;  %v2236_v33 = vpop.f32.mrb[50].mxu1  ;;  %6496 = vmatpush1.bf16.msra.mxu1 %v9112_v22  ;;  %v2331_v14 = vpop.f32.mrb[43].mxu0 }
 0x1d8   :  { %11206 = vst [vmem:[#allocation39_spill] sm:$0xff] %v10617_v11  ;;  %v2237_v60 = vadd.f32 %v2236_v33, %v10600_v25  ;;  %v2238_v27 = vpop.f32.mrb[51].mxu1  ;;  %6497 = vmatprep.subr.bf16.mxu1 %v9120_v52  ;;  %v3011_v37 = vmax.f32 %v2233_v16, 0.0  ;;  %v3142_v52 = vmax.f32 %v2328_v47, 0.0  ;;  %v2332_v49 = vadd.f32 %v2331_v14, %v10571_v23  ;;  %v2335_v17 = vpop.f32.mrb[44].mxu0 }
 0x1d9   :  { %v2239_v51 = vadd.f32 %v2238_v27, %v10604_v0  ;;  %v3012_v33 = vmax.f32 %v2235_v31, 0.0  ;;  %v3173_v27 = vmax.f32 %v2330_v15, 0.0  ;;  %v2337_v15 = vpop.f32.mrb[45].mxu0 }
 0x1da   :  { %v3043_v22 = vmax.f32 %v2237_v60, 0.0  ;;  %v3174_v16 = vmax.f32 %v2332_v49, 0.0  ;;  %v10639_v49 = vld [vmem:[#allocation7 + $0x10] sm:$0xff] }
 0x1db   :  { %v3044_v54 = vmax.f32 %v2239_v51, 0.0  ;;  %6498 = vmatpush1.bf16.msra.mxu1 %v9118_v2  ;;  %v10630_v50 = vpack.c.bf16 %v3173_v27, %v3141_v35  ;;  %v9130_v2 = vld [vmem:[#allocation8 + $0x100] ss:$8 sps:$4 sm:$0xff]   ;;  %v2338_v35 = vadd.f32 %v2337_v15, %v10571_v23 }
 0x1dc   :  { %v10625_v11 = vpack.c.bf16 %v3043_v22, %v3011_v37  ;;  %6499 = vmatprep.subr.bf16.mxu1 %v9126_v29  ;;  %v10633_v47 = vpack.c.bf16 %v3174_v16, %v3142_v52  ;;  %v2336_v22 = vadd.f32 %v2335_v17, %v10565_v61 }
 0x1dd   :  { %v10627_v48 = vpack.c.bf16 %v3044_v54, %v3012_v33  ;;  %v2242_v18 = vpop.f32.mrb[52].mxu1  ;;  %11209 = vst [vmem:[#allocation42_spill] sm:$0xff] %v10630_v50  ;;  %v9138_v54 = vld [vmem:[#allocation8 + $0x114] ss:$8 sps:$4 sm:$0xff]   ;;  %v2339_v33 = vpop.f32.mrb[46].mxu0  ;;  %v3206_v17 = vmax.f32 %v2338_v35, 0.0 }
 0x1de   :  { %11207 = vst [vmem:[#allocation40_spill] sm:$0xff] %v10625_v11  ;;  %v2243_v60 = vadd.f32 %v2242_v18, %v10600_v25  ;;  %v2244_v55 = vpop.f32.mrb[53].mxu1  ;;  %11210 = vst [vmem:[#allocation43_spill] sm:$0xff] %v10633_v47  ;;  %v3205_v52 = vmax.f32 %v2336_v22, 0.0  ;;  %v2340_v18 = vadd.f32 %v2339_v33, %v10565_v61  ;;  %v2341_v16 = vpop.f32.mrb[47].mxu0 }
 0x1df   :  { %11208 = vst [vmem:[#allocation41_spill] sm:$0xff] %v10627_v48  ;;  %v2245_v31 = vadd.f32 %v2244_v55, %v10604_v0  ;;  %v2246_v51 = vpop.f32.mrb[54].mxu1  ;;  %6500 = vmatpush1.bf16.msra.mxu1 %v9124_v10  ;;  %v9142_v33 = vld [vmem:[#allocation8 + $0x120] ss:$8 sps:$4 sm:$0xff]  }
 0x1e0   :  { %v2247_v29 = vadd.f32 %v2246_v51, %v10600_v25  ;;  %v2248_v37 = vpop.f32.mrb[55].mxu1  ;;  %6542 = vmatprep.subr.bf16.mxu1 %v9132_v53  ;;  %v3075_v10 = vmax.f32 %v2243_v60, 0.0  ;;  %v9136_v51 = vld [vmem:[#allocation8 + $0x110] ss:$8 sps:$4 sm:$0xff]   ;;  %v9144_v60 = vld [vmem:[#allocation8 + $0x124] ss:$8 sps:$4 sm:$0xff]  }
 0x1e1   :  { %v2249_v14 = vadd.f32 %v2248_v37, %v10604_v0  ;;  %v3076_v53 = vmax.f32 %v2245_v31, 0.0  ;;  %v2342_v37 = vadd.f32 %v2341_v16, %v10571_v23 }
 0x1e2   :  { %v3107_v27 = vmax.f32 %v2247_v29, 0.0  ;;  %6502 = vmatmul.mubr.bf16.vlgmr.msra.gmra.mrb[144].mxu1 %v10320_v44  ;;  %v3237_v29 = vmax.f32 %v2340_v18, 0.0  ;;  %v10649_v44 = vrot.slane %v10639_v49, %v10297_v6 }
 0x1e3   :  { %v3108_v55 = vmax.f32 %v2249_v14, 0.0  ;;  %6511 = vmatprep.mubr.bf16.mxu1 %v10354_v24  ;;  %6543 = vmatpush1.bf16.msra.mxu1 %v9130_v2  ;;  %v3238_v22 = vmax.f32 %v2342_v37, 0.0  ;;  %v10655_v24 = vrot.slane %v10639_v49, %v10300_v9 }
 0x1e4   :  { %v10645_v15 = vpack.c.bf16 %v3107_v27, %v3075_v10  ;;  %6544 = vmatprep.subr.bf16.mxu1 %v9138_v54  ;;  %v10658_v14 = vpack.c.bf16 %v3237_v29, %v3205_v52  ;;  %v2451_v27 = vpop.f32.mrb[48].mxu0 }
 0x1e5   :  { %v10651_v61 = vpack.c.bf16 %v3108_v55, %v3076_v53  ;;  %v2252_v31 = vpop.f32.mrb[56].mxu1  ;;  %v10661_v10 = vpack.c.bf16 %v3238_v22, %v3206_v17  ;;  %v9150_v53 = vld [vmem:[#allocation8 + $0x134] ss:$8 sps:$4 sm:$0xff]   ;;  %v2452_v55 = vadd.f32 %v2451_v27, %v10649_v44  ;;  %v2453_v37 = vpop.f32.mrb[49].mxu0 }
 0x1e6   :  { %11211 = vst [vmem:[#allocation44_spill] sm:$0xff] %v10645_v15  ;;  %v2253_v2 = vadd.f32 %v2252_v31, %v10600_v25  ;;  %v2254_v23 = vpop.f32.mrb[57].mxu1  ;;  %11213 = vst [vmem:[#allocation46_spill] sm:$0xff] %v10658_v14  ;;  %v2454_v52 = vadd.f32 %v2453_v37, %v10655_v24  ;;  %v2455_v29 = vpop.f32.mrb[50].mxu0 }
 0x1e7   :  { %11212 = vst [vmem:[#allocation45_spill] sm:$0xff] %v10651_v61  ;;  %v2255_v54 = vadd.f32 %v2254_v23, %v10604_v0  ;;  %v2256_v35 = vpop.f32.mrb[58].mxu1  ;;  %6545 = vmatpush1.bf16.msra.mxu1 %v9136_v51  ;;  %11214 = vst [vmem:[#allocation47_spill] sm:$0xff] %v10661_v10  ;;  %v3017_v51 = vmax.f32 %v2452_v55, 0.0  ;;  %v2456_v17 = vadd.f32 %v2455_v29, %v10649_v44  ;;  %v2457_v22 = vpop.f32.mrb[51].mxu0 }
 0x1e8   :  { %v2257_v18 = vadd.f32 %v2256_v35, %v10600_v25  ;;  %v2258_v16 = vpop.f32.mrb[59].mxu1  ;;  %6546 = vmatprep.subr.bf16.mxu1 %v9144_v60  ;;  %v3139_v23 = vmax.f32 %v2253_v2, 0.0  ;;  %v9148_v60 = vld [vmem:[#allocation8 + $0x130] ss:$8 sps:$4 sm:$0xff]   ;;  %v3018_v27 = vmax.f32 %v2454_v52, 0.0 }
 0x1e9   :  { %v2259_v31 = vadd.f32 %v2258_v16, %v10604_v0  ;;  %v3140_v35 = vmax.f32 %v2255_v54, 0.0  ;;  %v2458_v16 = vadd.f32 %v2457_v22, %v10655_v24  ;;  %v9156_v2 = vld [vmem:[#allocation8 + $0x144] ss:$8 sps:$4 sm:$0xff]   ;;  %v9154_v52 = vld [vmem:[#allocation8 + $0x140] ss:$8 sps:$4 sm:$0xff]  }
 0x1ea   :  { %v3171_v14 = vmax.f32 %v2257_v18, 0.0  ;;  %6512 = vmatmul.mubr.bf16.gmra.mrb[148].mxu1 %v10344_v20  ;;  %v3049_v18 = vmax.f32 %v2456_v17, 0.0 }
 0x1eb   :  { %v3172_v10 = vmax.f32 %v2259_v31, 0.0  ;;  %6521 = vmatprep.mubr.bf16.mxu1 %v10389_v8  ;;  %6547 = vmatpush1.bf16.msra.mxu1 %v9142_v33  ;;  %v3050_v55 = vmax.f32 %v2458_v16, 0.0 }
 0x1ec   :  { %v10671_v50 = vpack.c.bf16 %v3171_v14, %v3139_v23  ;;  %6548 = vmatprep.subr.bf16.mxu1 %v9150_v53  ;;  %v10676_v31 = vpack.c.bf16 %v3049_v18, %v3017_v51  ;;  %v2461_v14 = vpop.f32.mrb[52].mxu0  ;;  %v10686_v51 = vrot.slane %v10466_v56, %v10500_v41 }
 0x1ed   :  { %v10673_v37 = vpack.c.bf16 %v3172_v10, %v3140_v35  ;;  %v2262_v20 = vpop.f32.mrb[60].mxu1  ;;  %v10679_v22 = vpack.c.bf16 %v3050_v55, %v3018_v27  ;;  %v9162_v10 = vld [vmem:[#allocation8 + $0x154] ss:$8 sps:$4 sm:$0xff]   ;;  %v2462_v17 = vadd.f32 %v2461_v14, %v10649_v44  ;;  %v2463_v35 = vpop.f32.mrb[53].mxu0  ;;  %v9160_v14 = vld [vmem:[#allocation8 + $0x150] ss:$8 sps:$4 sm:$0xff]  }
 0x1ee   :  { %11215 = vst [vmem:[#allocation48_spill] sm:$0xff] %v10671_v50  ;;  %v2263_v29 = vadd.f32 %v2262_v20, %v10600_v25  ;;  %v2264_v54 = vpop.f32.mrb[61].mxu1  ;;  %v2464_v27 = vadd.f32 %v2463_v35, %v10655_v24  ;;  %v2465_v18 = vpop.f32.mrb[54].mxu0  ;;  %v9175_v50 = vld [vmem:[#allocation8 + $0x800] ss:$8 sps:$4 sm:$0xff]  }
 0x1ef   :  { %11216 = vst [vmem:[#allocation49_spill] sm:$0xff] %v10673_v37  ;;  %v2265_v8 = vadd.f32 %v2264_v54, %v10604_v0  ;;  %v2266_v33 = vpop.f32.mrb[62].mxu1  ;;  %6549 = vmatpush1.bf16.msra.mxu1 %v9148_v60  ;;  %v10690_v60 = vrot.slane %v10466_v56, %v10503_v40  ;;  %v2466_v55 = vadd.f32 %v2465_v18, %v10649_v44  ;;  %v2467_v54 = vpop.f32.mrb[55].mxu0  ;;  %v9183_v37 = vld [vmem:[#allocation8 + $0x814] ss:$8 sps:$4 sm:$0xff]  }
 0x1f0   :  { %v2267_v53 = vadd.f32 %v2266_v33, %v10600_v25  ;;  %v2268_v23 = vpop.f32.mrb[63].mxu1  ;;  %6550 = vmatprep.subr.bf16.mxu1 %v9156_v2  ;;  %v3203_v25 = vmax.f32 %v2263_v29, 0.0  ;;  %v3081_v2 = vmax.f32 %v2462_v17, 0.0  ;;  %v2468_v56 = vadd.f32 %v2467_v54, %v10655_v24  ;;  %v9168_v29 = vld [vmem:[#allocation8 + $0x164] ss:$8 sps:$4 sm:$0xff]  }
 0x1f1   :  { %v2269_v16 = vadd.f32 %v2268_v23, %v10604_v0  ;;  %v3204_v0 = vmax.f32 %v2265_v8, 0.0  ;;  %v3082_v23 = vmax.f32 %v2464_v27, 0.0  ;;  %v9166_v27 = vld [vmem:[#allocation8 + $0x160] ss:$8 sps:$4 sm:$0xff]  }
 0x1f2   :  { %v3235_v20 = vmax.f32 %v2267_v53, 0.0  ;;  %6522 = vmatmul.mubr.bf16.gmra.mrb[152].mxu1 %v10380_v63  ;;  %v3113_v53 = vmax.f32 %v2466_v55, 0.0  ;;  %v3114_v17 = vmax.f32 %v2468_v56, 0.0  ;;  %v9174_v55 = vld [vmem:[#allocation8 + $0x174] ss:$8 sps:$4 sm:$0xff]  }
 0x1f3   :  { %v3236_v33 = vmax.f32 %v2269_v16, 0.0  ;;  %6531 = vmatprep.mubr.bf16.mxu1 %v10431_v62  ;;  %6551 = vmatpush1.bf16.msra.mxu1 %v9154_v52 }
 0x1f4   :  { %v10697_v47 = vpack.c.bf16 %v3235_v20, %v3203_v25  ;;  %6552 = vmatprep.subr.bf16.mxu1 %v9162_v10  ;;  %v10702_v16 = vpack.c.bf16 %v3113_v53, %v3081_v2  ;;  %v10705_v54 = vpack.c.bf16 %v3114_v17, %v3082_v23  ;;  %v2471_v25 = vpop.f32.mrb[56].mxu0 }
 0x1f5   :  { %v10699_v35 = vpack.c.bf16 %v3236_v33, %v3204_v0  ;;  %v2378_v63 = vpop.f32.mrb[64].mxu1  ;;  %v2472_v0 = vadd.f32 %v2471_v25, %v10649_v44  ;;  %v2473_v33 = vpop.f32.mrb[57].mxu0 }
 0x1f6   :  { %11217 = vst [vmem:[#allocation50_spill] sm:$0xff] %v10697_v47  ;;  %v2379_v18 = vadd.f32 %v2378_v63, %v10686_v51  ;;  %v2380_v8 = vpop.f32.mrb[65].mxu1  ;;  %v2474_v2 = vadd.f32 %v2473_v33, %v10655_v24  ;;  %v2475_v53 = vpop.f32.mrb[58].mxu0  ;;  %v9180_v33 = vld [vmem:[#allocation8 + $0x184] ss:$8 sps:$4 sm:$0xff]  }
 0x1f7   :  { %11218 = vst [vmem:[#allocation51_spill] sm:$0xff] %v10699_v35  ;;  %v2381_v62 = vadd.f32 %v2380_v8, %v10690_v60  ;;  %v2382_v52 = vpop.f32.mrb[66].mxu1  ;;  %6553 = vmatpush1.bf16.msra.mxu1 %v9160_v14  ;;  %v3145_v14 = vmax.f32 %v2472_v0, 0.0  ;;  %v2476_v23 = vadd.f32 %v2475_v53, %v10649_v44  ;;  %v2477_v17 = vpop.f32.mrb[59].mxu0 }
 0x1f8   :  { %v2383_v10 = vadd.f32 %v2382_v52, %v10686_v51  ;;  %v2384_v20 = vpop.f32.mrb[67].mxu1  ;;  %6554 = vmatprep.subr.bf16.mxu1 %v9168_v29  ;;  %v3015_v63 = vmax.f32 %v2379_v18, 0.0  ;;  %v9172_v29 = vld [vmem:[#allocation8 + $0x170] ss:$8 sps:$4 sm:$0xff]   ;;  %v3146_v25 = vmax.f32 %v2474_v2, 0.0 }
 0x1f9   :  { %v2385_v56 = vadd.f32 %v2384_v20, %v10690_v60  ;;  %v3016_v52 = vmax.f32 %v2381_v62, 0.0  ;;  %v2478_v20 = vadd.f32 %v2477_v17, %v10655_v24  ;;  %v3177_v18 = vmax.f32 %v2476_v23, 0.0 }
 0x1fa   :  { %v3047_v8 = vmax.f32 %v2383_v10, 0.0  ;;  %6532 = vmatmul.mubr.bf16.gmra.mrb[156].mxu1 %v10427_v57 }
 0x1fb   :  { %v3048_v47 = vmax.f32 %v2385_v56, 0.0  ;;  %6555 = vmatpush1.bf16.msra.mxu1 %v9166_v27  ;;  %6574 = vmatprep.mubr.bf16.mxu1 %v10451_v5  ;;  %v3178_v0 = vmax.f32 %v2478_v20, 0.0  ;;  %v10716_v56 = vpack.c.bf16 %v3177_v18, %v3145_v14  ;;  %v9178_v5 = vld [vmem:[#allocation8 + $0x180] ss:$8 sps:$4 sm:$0xff]  }
 0x1fc   :  { %v3271_v35 = vpack.c.bf16 %v3047_v8, %v3015_v63  ;;  %6556 = vmatprep.subr.bf16.mxu1 %v9174_v55  ;;  %v2481_v55 = vpop.f32.mrb[60].mxu0 }
 0x1fd   :  { %v3272_v10 = vpack.c.bf16 %v3048_v47, %v3016_v52  ;;  %v2388_v57 = vpop.f32.mrb[68].mxu1  ;;  %v10719_v63 = vpack.c.bf16 %v3178_v0, %v3146_v25  ;;  %v9186_v47 = vld [vmem:[#allocation8 + $0x194] ss:$8 sps:$4 sm:$0xff]   ;;  %v2482_v52 = vadd.f32 %v2481_v55, %v10649_v44  ;;  %v2483_v14 = vpop.f32.mrb[61].mxu0 }
 0x1fe   :  { %v2389_v53 = vadd.f32 %v2388_v57, %v10686_v51  ;;  %v2390_v62 = vpop.f32.mrb[69].mxu1  ;;  %v2485_v25 = vpop.f32.mrb[62].mxu0  ;;  %v9189_v57 = vld [vmem:[#allocation8 + $0x824] ss:$8 sps:$4 sm:$0xff]  }
 0x1ff   :  { %6557 = vmatpush1.bf16.msra.mxu1 %v9172_v29  ;;  %7012 = vmatprep.mubr.bf16.mxu0 %v3272_v10  ;;  %v2391_v27 = vadd.f32 %v2390_v62, %v10690_v60  ;;  %v2392_v2 = vpop.f32.mrb[70].mxu1  ;;  %v9181_v29 = vld [vmem:[#allocation8 + $0x810] ss:$8 sps:$4 sm:$0xff]   ;;  %v2484_v10 = vadd.f32 %v2483_v14, %v10655_v24  ;;  %v2486_v0 = vadd.f32 %v2485_v25, %v10649_v44 }
 0x200   :  { %7013 = vmatmul.mubr.bf16.vlgmr.msra.gmra.mrb[112].mxu0 %v3271_v35  ;;  %6558 = vmatprep.subr.bf16.mxu1 %v9180_v33  ;;  %v3079_v8 = vmax.f32 %v2389_v53, 0.0  ;;  %v2393_v23 = vadd.f32 %v2392_v2, %v10686_v51  ;;  %v2394_v17 = vpop.f32.mrb[71].mxu1  ;;  %v3209_v33 = vmax.f32 %v2482_v52, 0.0  ;;  %v2487_v53 = vpop.f32.mrb[63].mxu0  ;;  %v9184_v62 = vld [vmem:[#allocation8 + $0x190] ss:$8 sps:$4 sm:$0xff]   ;;  %v10729_v14 = vrot.slane %v10639_v49, %v10332_v1 }
 0x201   :  { %7054 = vmatpush1.bf16.msra.mxu0 %v9175_v50  ;;  %v3080_v20 = vmax.f32 %v2391_v27, 0.0  ;;  %v2395_v18 = vadd.f32 %v2394_v17, %v10690_v60  ;;  %v3210_v55 = vmax.f32 %v2484_v10, 0.0  ;;  %v2488_v50 = vadd.f32 %v2487_v53, %v10655_v24  ;;  %v9192_v27 = vld [vmem:[#allocation8 + $0x1a4] ss:$8 sps:$4 sm:$0xff]   ;;  %v9190_v10 = vld [vmem:[#allocation8 + $0x1a0] ss:$8 sps:$4 sm:$0xff]  }
 0x202   :  { %7055 = vmatprep.subr.bf16.mxu0 %v9183_v37  ;;  %v3111_v35 = vmax.f32 %v2393_v23, 0.0  ;;  %v3241_v17 = vmax.f32 %v2486_v0, 0.0  ;;  %v9187_v37 = vld [vmem:[#allocation8 + $0x820] ss:$8 sps:$4 sm:$0xff]   ;;  %v9198_v0 = vld [vmem:[#allocation8 + $0x1b4] ss:$8 sps:$4 sm:$0xff]  }
 0x203   :  { %6559 = vmatpush1.bf16.msra.mxu1 %v9178_v5  ;;  %v3112_v2 = vmax.f32 %v2395_v18, 0.0  ;;  %v3242_v44 = vmax.f32 %v2488_v50, 0.0  ;;  %v10733_v5 = vrot.slane %v10639_v49, %v10336_v7  ;;  %v9195_v18 = vld [vmem:[#allocation8 + $0x834] ss:$8 sps:$4 sm:$0xff]  }
 0x204   :  { %6560 = vmatprep.subr.bf16.mxu1 %v9186_v47  ;;  %v3303_v15 = vpack.c.bf16 %v3111_v35, %v3079_v8  ;;  %v10736_v8 = vpack.c.bf16 %v3241_v17, %v3209_v33  ;;  %v2597_v35 = vpop.f32.mrb[64].mxu0 }
 0x205   :  { %7056 = vmatpush1.bf16.msra.mxu0 %v9181_v29  ;;  %v3304_v23 = vpack.c.bf16 %v3112_v2, %v3080_v20  ;;  %v2398_v52 = vpop.f32.mrb[72].mxu1  ;;  %v10739_v20 = vpack.c.bf16 %v3242_v44, %v3210_v55  ;;  %v2598_v50 = vadd.f32 %v2597_v35, %v10729_v14  ;;  %v2599_v33 = vpop.f32.mrb[65].mxu0  ;;  %v9201_v44 = vld [vmem:[#allocation8 + $0x844] ss:$8 sps:$4 sm:$0xff]  }
 0x206   :  { %7057 = vmatprep.subr.bf16.mxu0 %v9189_v57  ;;  %v2399_v24 = vadd.f32 %v2398_v52, %v10686_v51  ;;  %v2400_v47 = vpop.f32.mrb[73].mxu1  ;;  %v2601_v55 = vpop.f32.mrb[66].mxu0 }
 0x207   :  { %6561 = vmatpush1.bf16.msra.mxu1 %v9184_v62  ;;  %v2401_v25 = vadd.f32 %v2400_v47, %v10690_v60  ;;  %v2402_v29 = vpop.f32.mrb[74].mxu1  ;;  %7022 = vmatprep.mubr.bf16.mxu0 %v3304_v23  ;;  %v9193_v62 = vld [vmem:[#allocation8 + $0x830] ss:$8 sps:$4 sm:$0xff]   ;;  %v2600_v23 = vadd.f32 %v2599_v33, %v10733_v5  ;;  %v3021_v47 = vmax.f32 %v2598_v50, 0.0  ;;  %v9199_v33 = vld [vmem:[#allocation8 + $0x840] ss:$8 sps:$4 sm:$0xff]  }
 0x208   :  { %6562 = vmatprep.subr.bf16.mxu1 %v9192_v27  ;;  %v3143_v53 = vmax.f32 %v2399_v24, 0.0  ;;  %v2403_v57 = vadd.f32 %v2402_v29, %v10686_v51  ;;  %v2404_v2 = vpop.f32.mrb[75].mxu1  ;;  %7023 = vmatmul.mubr.bf16.gmra.mrb[116].mxu0 %v3303_v15  ;;  %v2602_v24 = vadd.f32 %v2601_v55, %v10729_v14  ;;  %v2603_v29 = vpop.f32.mrb[67].mxu0  ;;  %v9196_v15 = vld [vmem:[#allocation8 + $0x1b0] ss:$8 sps:$4 sm:$0xff]  }
 0x209   :  { %7058 = vmatpush1.bf16.msra.mxu0 %v9187_v37  ;;  %v3144_v17 = vmax.f32 %v2401_v25, 0.0  ;;  %v2405_v52 = vadd.f32 %v2404_v2, %v10690_v60  ;;  %v3022_v35 = vmax.f32 %v2600_v23, 0.0  ;;  %v2604_v37 = vadd.f32 %v2603_v29, %v10733_v5  ;;  %v9204_v25 = vld [vmem:[#allocation8 + $0x1c4] ss:$8 sps:$4 sm:$0xff]   ;;  %v9205_v29 = vld [vmem:[#allocation8 + $0x850] ss:$8 sps:$4 sm:$0xff]  }
 0x20a   :  { %7059 = vmatprep.subr.bf16.mxu0 %v9195_v18  ;;  %v3175_v27 = vmax.f32 %v2403_v57, 0.0  ;;  %v3053_v2 = vmax.f32 %v2602_v24, 0.0  ;;  %v9207_v57 = vld [vmem:[#allocation8 + $0x854] ss:$8 sps:$4 sm:$0xff]  }
 0x20b   :  { %6563 = vmatpush1.bf16.msra.mxu1 %v9190_v10  ;;  %v3176_v61 = vmax.f32 %v2405_v52, 0.0  ;;  %v3054_v26 = vmax.f32 %v2604_v37, 0.0  ;;  %v9202_v52 = vld [vmem:[#allocation8 + $0x1c0] ss:$8 sps:$4 sm:$0xff]  }
 0x20c   :  { %6564 = vmatprep.subr.bf16.mxu1 %v9198_v0  ;;  %v3335_v11 = vpack.c.bf16 %v3175_v27, %v3143_v53  ;;  %v10748_v10 = vpack.c.bf16 %v3053_v2, %v3021_v47 }
 0x20d   :  { %7060 = vmatpush1.bf16.msra.mxu0 %v9193_v62  ;;  %v3336_v48 = vpack.c.bf16 %v3176_v61, %v3144_v17  ;;  %v2408_v18 = vpop.f32.mrb[76].mxu1  ;;  %v10751_v53 = vpack.c.bf16 %v3054_v26, %v3022_v35  ;;  %v2607_v62 = vpop.f32.mrb[68].mxu0  ;;  %v9210_v61 = vld [vmem:[#allocation8 + $0x1d4] ss:$8 sps:$4 sm:$0xff]   ;;  %v9213_v35 = vld [vmem:[#allocation8 + $0x864] ss:$8 sps:$4 sm:$0xff]  }
 0x20e   :  { %7061 = vmatprep.subr.bf16.mxu0 %v9201_v44  ;;  %v2409_v50 = vadd.f32 %v2408_v18, %v10686_v51  ;;  %v2410_v55 = vpop.f32.mrb[77].mxu1  ;;  %v2608_v24 = vadd.f32 %v2607_v62, %v10729_v14  ;;  %v2609_v47 = vpop.f32.mrb[69].mxu0 }
 0x20f   :  { %6565 = vmatpush1.bf16.msra.mxu1 %v9196_v15  ;;  %v2411_v23 = vadd.f32 %v2410_v55, %v10690_v60  ;;  %v2412_v0 = vpop.f32.mrb[78].mxu1  ;;  %7032 = vmatprep.mubr.bf16.mxu0 %v3336_v48  ;;  %v2610_v48 = vadd.f32 %v2609_v47, %v10733_v5  ;;  %v2611_v26 = vpop.f32.mrb[70].mxu0 }
 0x210   :  { %6566 = vmatprep.subr.bf16.mxu1 %v9204_v25  ;;  %v3207_v17 = vmax.f32 %v2409_v50, 0.0  ;;  %v2413_v44 = vadd.f32 %v2412_v0, %v10686_v51  ;;  %v2414_v27 = vpop.f32.mrb[79].mxu1  ;;  %7033 = vmatmul.mubr.bf16.gmra.mrb[120].mxu0 %v3335_v11  ;;  %v3085_v2 = vmax.f32 %v2608_v24, 0.0  ;;  %v2612_v18 = vadd.f32 %v2611_v26, %v10729_v14  ;;  %v2613_v51 = vpop.f32.mrb[71].mxu0 }
 0x211   :  { %7062 = vmatpush1.bf16.msra.mxu0 %v9199_v33  ;;  %v3208_v15 = vmax.f32 %v2411_v23, 0.0  ;;  %v2415_v37 = vadd.f32 %v2414_v27, %v10690_v60  ;;  %v10760_v11 = vrot.slane %v10639_v49, %v10383_v3  ;;  %v9208_v33 = vld [vmem:[#allocation8 + $0x1d0] ss:$8 sps:$4 sm:$0xff]   ;;  %v3086_v55 = vmax.f32 %v2610_v48, 0.0 }
 0x212   :  { %7063 = vmatprep.subr.bf16.mxu0 %v9207_v57  ;;  %v3239_v25 = vmax.f32 %v2413_v44, 0.0  ;;  %v2614_v60 = vadd.f32 %v2613_v51, %v10733_v5  ;;  %v10765_v23 = vrot.slane %v10639_v49, %v10386_v4  ;;  %v9216_v57 = vld [vmem:[#allocation8 + $0x1e4] ss:$8 sps:$4 sm:$0xff]   ;;  %v3117_v62 = vmax.f32 %v2612_v18, 0.0  ;;  %v9211_v44 = vld [vmem:[#allocation8 + $0x860] ss:$8 sps:$4 sm:$0xff]  }
 0x213   :  { %6567 = vmatpush1.bf16.msra.mxu1 %v9202_v52  ;;  %v3240_v50 = vmax.f32 %v2415_v37, 0.0  ;;  %v9219_v52 = vld [vmem:[#allocation8 + $0x874] ss:$8 sps:$4 sm:$0xff]   ;;  %v9214_v51 = vld [vmem:[#allocation8 + $0x1e0] ss:$8 sps:$4 sm:$0xff]  }
 0x214   :  { %6568 = vmatprep.subr.bf16.mxu1 %v9210_v61  ;;  %v3367_v0 = vpack.c.bf16 %v3239_v25, %v3207_v17  ;;  %v3118_v24 = vmax.f32 %v2614_v60, 0.0  ;;  %v10767_v26 = vpack.c.bf16 %v3117_v62, %v3085_v2  ;;  %v2617_v61 = vpop.f32.mrb[72].mxu0 }
 0x215   :  { %7064 = vmatpush1.bf16.msra.mxu0 %v9205_v29  ;;  %v3368_v27 = vpack.c.bf16 %v3240_v50, %v3208_v15  ;;  %v2524_v47 = vpop.f32.mrb[80].mxu1  ;;  %v9222_v15 = vld [vmem:[#allocation8 + $0x1f4] ss:$8 sps:$4 sm:$0xff]   ;;  %v2619_v25 = vpop.f32.mrb[73].mxu0 }
 0x216   :  { %7065 = vmatprep.subr.bf16.mxu0 %v9213_v35  ;;  %11219 = vst [vmem:[#allocation52_spill] sm:$0xff] %v10767_v26  ;;  %v2525_v37 = vadd.f32 %v2524_v47, %v10760_v11  ;;  %v2526_v48 = vpop.f32.mrb[81].mxu1  ;;  %v10770_v49 = vpack.c.bf16 %v3118_v24, %v3086_v55  ;;  %v2618_v35 = vadd.f32 %v2617_v61, %v10729_v14  ;;  %v2621_v60 = vpop.f32.mrb[74].mxu0 }
 0x217   :  { %6569 = vmatpush1.bf16.msra.mxu1 %v9208_v33  ;;  %7042 = vmatprep.mubr.bf16.mxu0 %v3368_v27  ;;  %v2527_v17 = vadd.f32 %v2526_v48, %v10765_v23  ;;  %v2528_v29 = vpop.f32.mrb[82].mxu1  ;;  %v9217_v33 = vld [vmem:[#allocation8 + $0x870] ss:$8 sps:$4 sm:$0xff]   ;;  %v2620_v55 = vadd.f32 %v2619_v25, %v10733_v5  ;;  %v2622_v24 = vadd.f32 %v2621_v60, %v10729_v14  ;;  %v2623_v47 = vpop.f32.mrb[75].mxu0  ;;  %v9231_v60 = vld [vmem:[#allocation8 + $0x894] ss:$8 sps:$4 sm:$0xff]  }
 0x218   :  { %6570 = vmatprep.subr.bf16.mxu1 %v9216_v57  ;;  %7043 = vmatmul.mubr.bf16.gmra.mrb[124].mxu0 %v3367_v0  ;;  %v3019_v2 = vmax.f32 %v2525_v37, 0.0  ;;  %v2529_v18 = vadd.f32 %v2528_v29, %v10760_v11  ;;  %v2530_v50 = vpop.f32.mrb[83].mxu1  ;;  %v9225_v57 = vld [vmem:[#allocation8 + $0x884] ss:$8 sps:$4 sm:$0xff]   ;;  %v3149_v0 = vmax.f32 %v2618_v35, 0.0 }
 0x219   :  { %7066 = vmatpush1.bf16.msra.mxu0 %v9211_v44  ;;  %7085 = vmatprep.mubr.bf16.mxu0 %v10679_v22  ;;  %v3020_v62 = vmax.f32 %v2527_v17, 0.0  ;;  %v2531_v27 = vadd.f32 %v2530_v50, %v10765_v23  ;;  %v9220_v48 = vld [vmem:[#allocation8 + $0x1f0] ss:$8 sps:$4 sm:$0xff]   ;;  %v3150_v61 = vmax.f32 %v2620_v55, 0.0  ;;  %v2624_v44 = vadd.f32 %v2623_v47, %v10733_v5  ;;  %v9228_v22 = vld [vmem:[#allocation8 + $0x204] ss:$8 sps:$4 sm:$0xff]  }
 0x21a   :  { %7067 = vmatprep.subr.bf16.mxu0 %v9219_v52  ;;  %v3051_v37 = vmax.f32 %v2529_v18, 0.0  ;;  %v3181_v25 = vmax.f32 %v2622_v24, 0.0  ;;  %v9223_v17 = vld [vmem:[#allocation8 + $0x880] ss:$8 sps:$4 sm:$0xff]   ;;  %v2627_v24 = vpop.f32.mrb[76].mxu0 }
 0x21b   :  { %6571 = vmatpush1.bf16.msra.mxu1 %v9214_v51  ;;  %v3052_v29 = vmax.f32 %v2531_v27, 0.0  ;;  %v3182_v52 = vmax.f32 %v2624_v44, 0.0  ;;  %v9226_v27 = vld [vmem:[#allocation8 + $0x200] ss:$8 sps:$4 sm:$0xff]   ;;  %v9234_v47 = vld [vmem:[#allocation8 + $0x214] ss:$8 sps:$4 sm:$0xff]  }
 0x21c   :  { %6572 = vmatprep.subr.bf16.mxu1 %v9222_v15  ;;  %v10780_v26 = vpack.c.bf16 %v3051_v37, %v3019_v2  ;;  %v10784_v18 = vpack.c.bf16 %v3181_v25, %v3149_v0  ;;  %v2629_v37 = vpop.f32.mrb[77].mxu0 }
 0x21d   :  { %7068 = vmatpush1.bf16.msra.mxu0 %v9217_v33  ;;  %v10782_v50 = vpack.c.bf16 %v3052_v29, %v3020_v62  ;;  %v2534_v35 = vpop.f32.mrb[84].mxu1  ;;  %v10787_v15 = vpack.c.bf16 %v3182_v52, %v3150_v61  ;;  %v2628_v62 = vadd.f32 %v2627_v24, %v10729_v14  ;;  %v9229_v29 = vld [vmem:[#allocation8 + $0x890] ss:$8 sps:$4 sm:$0xff]   ;;  %v2631_v25 = vpop.f32.mrb[78].mxu0 }
 0x21e   :  { %7069 = vmatprep.subr.bf16.mxu0 %v9225_v57  ;;  %11220 = vst [vmem:[#allocation53_spill] sm:$0xff] %v10784_v18  ;;  %v2535_v51 = vadd.f32 %v2534_v35, %v10760_v11  ;;  %v2536_v55 = vpop.f32.mrb[85].mxu1  ;;  %v10793_v61 = vld [vmem:[#allocation7 + $0x18] sm:$0xff]  ;;  %v2633_v24 = vpop.f32.mrb[79].mxu0 }
 0x21f   :  { %6573 = vmatpush1.bf16.msra.mxu1 %v9220_v48  ;;  %11221 = vst [vmem:[#allocation54_spill] sm:$0xff] %v10787_v15  ;;  %v2537_v2 = vadd.f32 %v2536_v55, %v10765_v23  ;;  %v2538_v33 = vpop.f32.mrb[86].mxu1  ;;  %v2630_v48 = vadd.f32 %v2629_v37, %v10733_v5  ;;  %v3213_v55 = vmax.f32 %v2628_v62, 0.0  ;;  %v2634_v18 = vadd.f32 %v2633_v24, %v10733_v5  ;;  %v9246_v24 = vld [vmem:[#allocation8 + $0x234] ss:$8 sps:$4 sm:$0xff]  }
 0x220   :  { %6615 = vmatprep.subr.bf16.mxu1 %v9228_v22  ;;  %v3083_v57 = vmax.f32 %v2535_v51, 0.0  ;;  %v2539_v0 = vadd.f32 %v2538_v33, %v10760_v11  ;;  %v2540_v44 = vpop.f32.mrb[87].mxu1  ;;  %v9237_v22 = vld [vmem:[#allocation8 + $0x8a4] ss:$8 sps:$4 sm:$0xff]   ;;  %v2632_v51 = vadd.f32 %v2631_v25, %v10729_v14  ;;  %v9235_v14 = vld [vmem:[#allocation8 + $0x8a0] ss:$8 sps:$4 sm:$0xff]  }
 0x221   :  { %7070 = vmatpush1.bf16.msra.mxu0 %v9223_v17  ;;  %v3084_v52 = vmax.f32 %v2537_v2, 0.0  ;;  %v2541_v35 = vadd.f32 %v2540_v44, %v10765_v23  ;;  %v9232_v17 = vld [vmem:[#allocation8 + $0x210] ss:$8 sps:$4 sm:$0xff]   ;;  %v3214_v37 = vmax.f32 %v2630_v48, 0.0  ;;  %v9240_v2 = vld [vmem:[#allocation8 + $0x224] ss:$8 sps:$4 sm:$0xff]  }
 0x222   :  { %6575 = vmatmul.mubr.bf16.vlgmr.msra.gmra.mrb[144].mxu1 %v10449_v59  ;;  %7071 = vmatprep.subr.bf16.mxu0 %v9231_v60  ;;  %v3115_v33 = vmax.f32 %v2539_v0, 0.0  ;;  %v3245_v44 = vmax.f32 %v2632_v51, 0.0  ;;  %v10802_v59 = vrot.slane %v10793_v61, %v10297_v6  ;;  %v3246_v62 = vmax.f32 %v2634_v18, 0.0 }
 0x223   :  { %6584 = vmatprep.mubr.bf16.mxu1 %v10475_v13  ;;  %6616 = vmatpush1.bf16.msra.mxu1 %v9226_v27  ;;  %v3116_v15 = vmax.f32 %v2541_v35, 0.0  ;;  %v10808_v13 = vrot.slane %v10793_v61, %v10300_v9 }
 0x224   :  { %6617 = vmatprep.subr.bf16.mxu1 %v9234_v47  ;;  %v10804_v60 = vpack.c.bf16 %v3115_v33, %v3083_v57  ;;  %v9243_v47 = vld [vmem:[#allocation8 + $0x8b4] ss:$8 sps:$4 sm:$0xff]   ;;  %v10812_v0 = vpack.c.bf16 %v3245_v44, %v3213_v55  ;;  %v9238_v57 = vld [vmem:[#allocation8 + $0x220] ss:$8 sps:$4 sm:$0xff]   ;;  %v10815_v35 = vpack.c.bf16 %v3246_v62, %v3214_v37  ;;  %v9241_v44 = vld [vmem:[#allocation8 + $0x8b0] ss:$8 sps:$4 sm:$0xff]  }
 0x225   :  { %7072 = vmatpush1.bf16.msra.mxu0 %v9229_v29  ;;  %v10810_v27 = vpack.c.bf16 %v3116_v15, %v3084_v52  ;;  %v2544_v5 = vpop.f32.mrb[88].mxu1  ;;  %v2743_v29 = vpop.f32.mrb[80].mxu0 }
 0x226   :  { %7073 = vmatprep.subr.bf16.mxu0 %v9237_v22  ;;  %11222 = vst [vmem:[#allocation55_spill] sm:$0xff] %v10812_v0  ;;  %v2545_v48 = vadd.f32 %v2544_v5, %v10760_v11  ;;  %v2546_v25 = vpop.f32.mrb[89].mxu1  ;;  %v2744_v15 = vadd.f32 %v2743_v29, %v10802_v59  ;;  %v2745_v52 = vpop.f32.mrb[81].mxu0 }
 0x227   :  { %6618 = vmatpush1.bf16.msra.mxu1 %v9232_v17  ;;  %v2547_v18 = vadd.f32 %v2546_v25, %v10765_v23  ;;  %v2548_v51 = vpop.f32.mrb[90].mxu1  ;;  %v2746_v17 = vadd.f32 %v2745_v52, %v10808_v13  ;;  %v2747_v5 = vpop.f32.mrb[82].mxu0 }
 0x228   :  { %6619 = vmatprep.subr.bf16.mxu1 %v9240_v2  ;;  %v3147_v22 = vmax.f32 %v2545_v48, 0.0  ;;  %v2549_v55 = vadd.f32 %v2548_v51, %v10760_v11  ;;  %v2550_v33 = vpop.f32.mrb[91].mxu1  ;;  %v9249_v2 = vld [vmem:[#allocation8 + $0x8c4] ss:$8 sps:$4 sm:$0xff]   ;;  %v3025_v25 = vmax.f32 %v2744_v15, 0.0  ;;  %v2748_v29 = vadd.f32 %v2747_v5, %v10802_v59  ;;  %v2749_v9 = vpop.f32.mrb[83].mxu0 }
 0x229   :  { %7074 = vmatpush1.bf16.msra.mxu0 %v9235_v14  ;;  %v3148_v37 = vmax.f32 %v2547_v18, 0.0  ;;  %v2551_v62 = vadd.f32 %v2550_v33, %v10765_v23  ;;  %v9244_v14 = vld [vmem:[#allocation8 + $0x230] ss:$8 sps:$4 sm:$0xff]   ;;  %v3026_v51 = vmax.f32 %v2746_v17, 0.0  ;;  %v2750_v52 = vadd.f32 %v2749_v9, %v10808_v13  ;;  %v9252_v18 = vld [vmem:[#allocation8 + $0x244] ss:$8 sps:$4 sm:$0xff]  }
 0x22a   :  { %6585 = vmatmul.mubr.bf16.gmra.mrb[148].mxu1 %v10469_v12  ;;  %7075 = vmatprep.subr.bf16.mxu0 %v9243_v47  ;;  %v3179_v48 = vmax.f32 %v2549_v55, 0.0  ;;  %v3057_v33 = vmax.f32 %v2748_v29, 0.0  ;;  %v9247_v12 = vld [vmem:[#allocation8 + $0x8c0] ss:$8 sps:$4 sm:$0xff]   ;;  %v9255_v55 = vld [vmem:[#allocation8 + $0x8d4] ss:$8 sps:$4 sm:$0xff]  }
 0x22b   :  { %6594 = vmatprep.mubr.bf16.mxu1 %v10497_v39  ;;  %6620 = vmatpush1.bf16.msra.mxu1 %v9238_v57  ;;  %v3180_v6 = vmax.f32 %v2551_v62, 0.0  ;;  %v3058_v47 = vmax.f32 %v2750_v52, 0.0  ;;  %v9250_v9 = vld [vmem:[#allocation8 + $0x240] ss:$8 sps:$4 sm:$0xff]   ;;  %v2753_v62 = vpop.f32.mrb[84].mxu0 }
 0x22c   :  { %6621 = vmatprep.subr.bf16.mxu1 %v9246_v24  ;;  %v10826_v0 = vpack.c.bf16 %v3179_v48, %v3147_v22  ;;  %v10830_v39 = vpack.c.bf16 %v3057_v33, %v3025_v25  ;;  %v9258_v29 = vld [vmem:[#allocation8 + $0x254] ss:$8 sps:$4 sm:$0xff]   ;;  %v9253_v52 = vld [vmem:[#allocation8 + $0x8d0] ss:$8 sps:$4 sm:$0xff]  }
 0x22d   :  { %7076 = vmatpush1.bf16.msra.mxu0 %v9241_v44  ;;  %v10828_v15 = vpack.c.bf16 %v3180_v6, %v3148_v37  ;;  %v2554_v5 = vpop.f32.mrb[92].mxu1  ;;  %v10833_v24 = vpack.c.bf16 %v3058_v47, %v3026_v51  ;;  %v2754_v6 = vadd.f32 %v2753_v62, %v10802_v59  ;;  %v2755_v37 = vpop.f32.mrb[85].mxu0 }
 0x22e   :  { %7077 = vmatprep.subr.bf16.mxu0 %v9249_v2  ;;  %v2555_v57 = vadd.f32 %v2554_v5, %v10760_v11  ;;  %v2556_v17 = vpop.f32.mrb[93].mxu1  ;;  %v2757_v33 = vpop.f32.mrb[86].mxu0 }
 0x22f   :  { %6622 = vmatpush1.bf16.msra.mxu1 %v9244_v14  ;;  %v2557_v22 = vadd.f32 %v2556_v17, %v10765_v23  ;;  %v2558_v44 = vpop.f32.mrb[94].mxu1  ;;  %v2756_v14 = vadd.f32 %v2755_v37, %v10808_v13  ;;  %v3089_v5 = vmax.f32 %v2754_v6, 0.0  ;;  %v2758_v17 = vadd.f32 %v2757_v33, %v10802_v59  ;;  %v2759_v62 = vpop.f32.mrb[87].mxu0 }
 0x230   :  { %6623 = vmatprep.subr.bf16.mxu1 %v9252_v18  ;;  %v3211_v2 = vmax.f32 %v2555_v57, 0.0  ;;  %v2559_v25 = vadd.f32 %v2558_v44, %v10760_v11  ;;  %v2560_v48 = vpop.f32.mrb[95].mxu1  ;;  %v9261_v18 = vld [vmem:[#allocation8 + $0x8e4] ss:$8 sps:$4 sm:$0xff]   ;;  %v9256_v11 = vld [vmem:[#allocation8 + $0x250] ss:$8 sps:$4 sm:$0xff]   ;;  %v2760_v44 = vadd.f32 %v2759_v62, %v10808_v13 }
 0x231   :  { %7078 = vmatpush1.bf16.msra.mxu0 %v9247_v12  ;;  %v3212_v51 = vmax.f32 %v2557_v22, 0.0  ;;  %v2561_v47 = vadd.f32 %v2560_v48, %v10765_v23  ;;  %v3090_v12 = vmax.f32 %v2756_v14, 0.0  ;;  %v9264_v22 = vld [vmem:[#allocation8 + $0x264] ss:$8 sps:$4 sm:$0xff]   ;;  %v3121_v23 = vmax.f32 %v2758_v17, 0.0  ;;  %v2763_v14 = vpop.f32.mrb[88].mxu0 }
 0x232   :  { %6595 = vmatmul.mubr.bf16.gmra.mrb[152].mxu1 %v10495_v30  ;;  %7079 = vmatprep.subr.bf16.mxu0 %v9255_v55  ;;  %v3243_v57 = vmax.f32 %v2559_v25, 0.0  ;;  %v9259_v30 = vld [vmem:[#allocation8 + $0x8e0] ss:$8 sps:$4 sm:$0xff]   ;;  %v3122_v55 = vmax.f32 %v2760_v44, 0.0  ;;  %v9267_v25 = vld [vmem:[#allocation8 + $0x8f4] ss:$8 sps:$4 sm:$0xff]  }
 0x233   :  { %6604 = vmatprep.mubr.bf16.mxu1 %v10529_v43  ;;  %6624 = vmatpush1.bf16.msra.mxu1 %v9250_v9  ;;  %v3244_v37 = vmax.f32 %v2561_v47, 0.0  ;;  %v10848_v33 = vpack.c.bf16 %v3121_v23, %v3089_v5  ;;  %v9262_v43 = vld [vmem:[#allocation8 + $0x260] ss:$8 sps:$4 sm:$0xff]   ;;  %v2764_v47 = vadd.f32 %v2763_v14, %v10802_v59 }
 0x234   :  { %6625 = vmatprep.subr.bf16.mxu1 %v9258_v29  ;;  %v10844_v48 = vpack.c.bf16 %v3243_v57, %v3211_v2  ;;  %v10850_v9 = vpack.c.bf16 %v3122_v55, %v3090_v12  ;;  %v9270_v29 = vld [vmem:[#allocation8 + $0x274] ss:$8 sps:$4 sm:$0xff]   ;;  %v2765_v2 = vpop.f32.mrb[89].mxu0  ;;  %v9271_v23 = vld [vmem:[#allocation8 + $0x900] ss:$8 sps:$4 sm:$0xff]  }
 0x235   :  { %7080 = vmatpush1.bf16.msra.mxu0 %v9253_v52  ;;  %v10846_v6 = vpack.c.bf16 %v3244_v37, %v3212_v51  ;;  %v9265_v52 = vld [vmem:[#allocation8 + $0x8f0] ss:$8 sps:$4 sm:$0xff]   ;;  %v2766_v17 = vadd.f32 %v2765_v2, %v10808_v13  ;;  %v2767_v51 = vpop.f32.mrb[90].mxu0  ;;  %v3153_v5 = vmax.f32 %v2764_v47, 0.0  ;;  %v9276_v37 = vld [vmem:[#allocation8 + $0x284] ss:$8 sps:$4 sm:$0xff]  }
 0x236   :  { %7081 = vmatprep.subr.bf16.mxu0 %v9261_v18  ;;  %v9273_v18 = vld [vmem:[#allocation8 + $0x904] ss:$8 sps:$4 sm:$0xff]   ;;  %v2768_v62 = vadd.f32 %v2767_v51, %v10802_v59  ;;  %v2769_v57 = vpop.f32.mrb[91].mxu0  ;;  %v9277_v2 = vld [vmem:[#allocation8 + $0x910] ss:$8 sps:$4 sm:$0xff]  }
 0x237   :  { %6626 = vmatpush1.bf16.msra.mxu1 %v9256_v11  ;;  %v9268_v11 = vld [vmem:[#allocation8 + $0x270] ss:$8 sps:$4 sm:$0xff]   ;;  %v3154_v12 = vmax.f32 %v2766_v17, 0.0  ;;  %v2770_v44 = vadd.f32 %v2769_v57, %v10808_v13  ;;  %v9285_v51 = vld [vmem:[#allocation8 + $0x924] ss:$8 sps:$4 sm:$0xff]  }
 0x238   :  { %6627 = vmatprep.subr.bf16.mxu1 %v9264_v22  ;;  %v3185_v22 = vmax.f32 %v2768_v62, 0.0 }
 0x239   :  { %7082 = vmatpush1.bf16.msra.mxu0 %v9259_v30  ;;  %v3186_v30 = vmax.f32 %v2770_v44, 0.0 }
 0x23a   :  { %6605 = vmatmul.mubr.bf16.gmra.mrb[156].mxu1 %v10527_v58  ;;  %7083 = vmatprep.subr.bf16.mxu0 %v9267_v25  ;;  %v9279_v58 = vld [vmem:[#allocation8 + $0x914] ss:$8 sps:$4 sm:$0xff]   ;;  %v10858_v55 = vpack.c.bf16 %v3185_v22, %v3153_v5  ;;  %v9274_v25 = vld [vmem:[#allocation8 + $0x280] ss:$8 sps:$4 sm:$0xff]  }
 0x23b   :  { %6628 = vmatpush1.bf16.msra.mxu1 %v9262_v43  ;;  %6647 = vmatprep.mubr.bf16.mxu1 %v10403_v32  ;;  %v10860_v14 = vpack.c.bf16 %v3186_v30, %v3154_v12  ;;  %v2773_v43 = vpop.f32.mrb[92].mxu0  ;;  %v9282_v32 = vld [vmem:[#allocation8 + $0x294] ss:$8 sps:$4 sm:$0xff]   ;;  %v9288_v12 = vld [vmem:[#allocation8 + $0x2a4] ss:$8 sps:$4 sm:$0xff]  }
 0x23c   :  { %6629 = vmatprep.subr.bf16.mxu1 %v9270_v29  ;;  %v2774_v29 = vadd.f32 %v2773_v43, %v10802_v59  ;;  %v2775_v47 = vpop.f32.mrb[93].mxu0 }
 0x23d   :  { %7084 = vmatpush1.bf16.msra.mxu0 %v9265_v52  ;;  %v2776_v52 = vadd.f32 %v2775_v47, %v10808_v13  ;;  %v2777_v17 = vpop.f32.mrb[94].mxu0 }
 0x23e   :  { %7126 = vmatprep.subr.bf16.mxu0 %v9273_v18  ;;  %v3217_v18 = vmax.f32 %v2774_v29, 0.0  ;;  %v2778_v5 = vadd.f32 %v2777_v17, %v10802_v59  ;;  %v2779_v62 = vpop.f32.mrb[95].mxu0  ;;  %v9291_v59 = vld [vmem:[#allocation8 + $0x934] ss:$8 sps:$4 sm:$0xff]  }
 0x23f   :  { %6630 = vmatpush1.bf16.msra.mxu1 %v9268_v11  ;;  %v3218_v57 = vmax.f32 %v2776_v52, 0.0  ;;  %v2780_v11 = vadd.f32 %v2779_v62, %v10808_v13  ;;  %v9286_v13 = vld [vmem:[#allocation8 + $0x2a0] ss:$8 sps:$4 sm:$0xff]   ;;  %v9300_v62 = vld [vmem:[#allocation8 + $0x2c4] ss:$8 sps:$4 sm:$0xff]  }
 0x240   :  { %7086 = vmatmul.mubr.bf16.vlgmr.msra.gmra.mrb[112].mxu0 %v10676_v31  ;;  %6631 = vmatprep.subr.bf16.mxu1 %v9276_v37  ;;  %v9280_v31 = vld [vmem:[#allocation8 + $0x290] ss:$8 sps:$4 sm:$0xff]   ;;  %v3249_v44 = vmax.f32 %v2778_v5, 0.0  ;;  %v9283_v37 = vld [vmem:[#allocation8 + $0x920] ss:$8 sps:$4 sm:$0xff]  }
 0x241   :  { %7127 = vmatpush1.bf16.msra.mxu0 %v9271_v23  ;;  %7095 = vmatprep.mubr.bf16.mxu0 %v10705_v54  ;;  %v10870_v54 = vrot.slane %v10793_v61, %v10332_v1  ;;  %v3250_v22 = vmax.f32 %v2780_v11, 0.0  ;;  %v10874_v23 = vrot.slane %v10793_v61, %v10336_v7  ;;  %v9294_v1 = vld [vmem:[#allocation8 + $0x2b4] ss:$8 sps:$4 sm:$0xff]   ;;  %v9289_v7 = vld [vmem:[#allocation8 + $0x930] ss:$8 sps:$4 sm:$0xff]  }
 0x242   :  { %7128 = vmatprep.subr.bf16.mxu0 %v9279_v58  ;;  %v10876_v30 = vpack.c.bf16 %v3249_v44, %v3217_v18  ;;  %v9839_v11 = vld [vmem:[#allocation7 + $0x10] sm:$0xff]  ;;  %v2670_v44 = vpop.f32.mrb[96].mxu1 }
 0x243   :  { %6632 = vmatpush1.bf16.msra.mxu1 %v9274_v25  ;;  %v10878_v58 = vpack.c.bf16 %v3250_v22, %v3218_v57  ;;  %v2889_v25 = vpop.f32.mrb[96].mxu0 }
 0x244   :  { %6633 = vmatprep.subr.bf16.mxu1 %v9282_v32  ;;  %11223 = vst [vmem:[#allocation56_spill] sm:$0xff] %v10876_v30  ;;  %v2890_v43 = vadd.f32 %v2889_v25, %v10870_v54  ;;  %v2891_v32 = vpop.f32.mrb[97].mxu0 }
 0x245   :  { %7129 = vmatpush1.bf16.msra.mxu0 %v9277_v2  ;;  %v2892_v29 = vadd.f32 %v2891_v32, %v10874_v23  ;;  %v2893_v47 = vpop.f32.mrb[98].mxu0  ;;  %v9297_v2 = vld [vmem:[#allocation8 + $0x944] ss:$8 sps:$4 sm:$0xff]  }
 0x246   :  { %7130 = vmatprep.subr.bf16.mxu0 %v9285_v51  ;;  %v3029_v52 = vmax.f32 %v2890_v43, 0.0  ;;  %v2894_v17 = vadd.f32 %v2893_v47, %v10870_v54  ;;  %v2895_v51 = vpop.f32.mrb[99].mxu0  ;;  %v9306_v43 = vld [vmem:[#allocation8 + $0x2d4] ss:$8 sps:$4 sm:$0xff]   ;;  %v2672_v47 = vpop.f32.mrb[97].mxu1 }
 0x247   :  { %6634 = vmatpush1.bf16.msra.mxu1 %v9280_v31  ;;  %v3030_v18 = vmax.f32 %v2892_v29, 0.0  ;;  %v2896_v5 = vadd.f32 %v2895_v51, %v10874_v23  ;;  %v2899_v25 = vpop.f32.mrb[100].mxu0  ;;  %v10897_v29 = vrot.slane %v9839_v11, %v10503_v40 }
 0x248   :  { %7096 = vmatmul.mubr.bf16.gmra.mrb[116].mxu0 %v10702_v16  ;;  %6635 = vmatprep.subr.bf16.mxu1 %v9288_v12  ;;  %v9292_v16 = vld [vmem:[#allocation8 + $0x2b0] ss:$8 sps:$4 sm:$0xff]   ;;  %v3061_v31 = vmax.f32 %v2894_v17, 0.0  ;;  %v10887_v12 = vrot.slane %v9839_v11, %v10500_v41  ;;  %v2900_v32 = vadd.f32 %v2899_v25, %v10870_v54 }
 0x249   :  { %7131 = vmatpush1.bf16.msra.mxu0 %v9283_v37  ;;  %7105 = vmatprep.mubr.bf16.mxu0 %v10719_v63  ;;  %v9295_v63 = vld [vmem:[#allocation8 + $0x940] ss:$8 sps:$4 sm:$0xff]   ;;  %v3062_v57 = vmax.f32 %v2896_v5, 0.0  ;;  %v9303_v37 = vld [vmem:[#allocation8 + $0x954] ss:$8 sps:$4 sm:$0xff]  }
 0x24a   :  { %7132 = vmatprep.subr.bf16.mxu0 %v9291_v59  ;;  %v10889_v22 = vpack.c.bf16 %v3061_v31, %v3029_v52  ;;  %v9298_v59 = vld [vmem:[#allocation8 + $0x2c0] ss:$8 sps:$4 sm:$0xff]   ;;  %v2673_v31 = vadd.f32 %v2672_v47, %v10897_v29  ;;  %v9315_v47 = vld [vmem:[#allocation8 + $0x974] ss:$8 sps:$4 sm:$0xff]  }
 0x24b   :  { %6636 = vmatpush1.bf16.msra.mxu1 %v9286_v13  ;;  %v10891_v13 = vpack.c.bf16 %v3062_v57, %v3030_v18  ;;  %v3093_v18 = vmax.f32 %v2900_v32, 0.0 }
 0x24c   :  { %6637 = vmatprep.subr.bf16.mxu1 %v9294_v1  ;;  %11224 = vst [vmem:[#allocation57_spill] sm:$0xff] %v10889_v22  ;;  %v2671_v1 = vadd.f32 %v2670_v44, %v10887_v12 }
 0x24d   :  { %7133 = vmatpush1.bf16.msra.mxu0 %v9289_v7  ;;  %11225 = vst [vmem:[#allocation58_spill] sm:$0xff] %v10891_v13  ;;  %v2901_v7 = vpop.f32.mrb[101].mxu0 }
 0x24e   :  { %7134 = vmatprep.subr.bf16.mxu0 %v9297_v2  ;;  %v9301_v2 = vld [vmem:[#allocation8 + $0x950] ss:$8 sps:$4 sm:$0xff]   ;;  %v2902_v52 = vadd.f32 %v2901_v7, %v10874_v23  ;;  %v2903_v17 = vpop.f32.mrb[102].mxu0  ;;  %v3023_v51 = vmax.f32 %v2671_v1, 0.0  ;;  %v9312_v1 = vld [vmem:[#allocation8 + $0x2e4] ss:$8 sps:$4 sm:$0xff]  }
 0x24f   :  { %6638 = vmatpush1.bf16.msra.mxu1 %v9292_v16  ;;  %v2674_v16 = vpop.f32.mrb[98].mxu1  ;;  %v2904_v5 = vadd.f32 %v2903_v17, %v10870_v54  ;;  %v3024_v7 = vmax.f32 %v2673_v31, 0.0  ;;  %v9307_v17 = vld [vmem:[#allocation8 + $0x960] ss:$8 sps:$4 sm:$0xff]  }
 0x250   :  { %7106 = vmatmul.mubr.bf16.gmra.mrb[120].mxu0 %v10716_v56  ;;  %6639 = vmatprep.subr.bf16.mxu1 %v9300_v62  ;;  %v9309_v56 = vld [vmem:[#allocation8 + $0x964] ss:$8 sps:$4 sm:$0xff]   ;;  %v2905_v62 = vpop.f32.mrb[103].mxu0  ;;  %v2675_v57 = vadd.f32 %v2674_v16, %v10887_v12  ;;  %v2676_v11 = vpop.f32.mrb[99].mxu1 }
 0x251   :  { %7135 = vmatpush1.bf16.msra.mxu0 %v9295_v63  ;;  %7115 = vmatprep.mubr.bf16.mxu0 %v10739_v20  ;;  %v9304_v63 = vld [vmem:[#allocation8 + $0x2d0] ss:$8 sps:$4 sm:$0xff]   ;;  %v3094_v20 = vmax.f32 %v2902_v52, 0.0  ;;  %v2906_v44 = vadd.f32 %v2905_v62, %v10874_v23  ;;  %v2677_v25 = vadd.f32 %v2676_v11, %v10897_v29  ;;  %v2680_v52 = vpop.f32.mrb[100].mxu1  ;;  %v9310_v62 = vld [vmem:[#allocation8 + $0x2e0] ss:$8 sps:$4 sm:$0xff]  }
 0x252   :  { %7136 = vmatprep.subr.bf16.mxu0 %v9303_v37  ;;  %v3125_v37 = vmax.f32 %v2904_v5, 0.0  ;;  %v3055_v32 = vmax.f32 %v2675_v57, 0.0  ;;  %v2681_v5 = vadd.f32 %v2680_v52, %v10887_v12  ;;  %v2682_v31 = vpop.f32.mrb[101].mxu1 }
 0x253   :  { %6640 = vmatpush1.bf16.msra.mxu1 %v9298_v59  ;;  %v3126_v22 = vmax.f32 %v2906_v44, 0.0  ;;  %v3056_v13 = vmax.f32 %v2677_v25, 0.0 }
 0x254   :  { %6641 = vmatprep.subr.bf16.mxu1 %v9306_v43  ;;  %v10906_v16 = vpack.c.bf16 %v3125_v37, %v3093_v18  ;;  %v10908_v59 = vpack.c.bf16 %v3055_v32, %v3023_v51  ;;  %v2909_v43 = vpop.f32.mrb[104].mxu0  ;;  %v9313_v51 = vld [vmem:[#allocation8 + $0x970] ss:$8 sps:$4 sm:$0xff]  }
 0x255   :  { %7137 = vmatpush1.bf16.msra.mxu0 %v9301_v2  ;;  %v10910_v30 = vpack.c.bf16 %v3126_v22, %v3094_v20  ;;  %v10912_v11 = vpack.c.bf16 %v3056_v13, %v3024_v7  ;;  %v9318_v2 = vld [vmem:[#allocation8 + $0x2f4] ss:$8 sps:$4 sm:$0xff]   ;;  %v2911_v18 = vpop.f32.mrb[105].mxu0  ;;  %v2683_v13 = vadd.f32 %v2682_v31, %v10897_v29  ;;  %v9321_v20 = vld [vmem:[#allocation8 + $0x984] ss:$8 sps:$4 sm:$0xff]  }
 0x256   :  { %7138 = vmatprep.subr.bf16.mxu0 %v9309_v56  ;;  %11226 = vst [vmem:[#allocation59_spill] sm:$0xff] %v10906_v16  ;;  %v2910_v56 = vadd.f32 %v2909_v43, %v10870_v54  ;;  %v2912_v22 = vadd.f32 %v2911_v18, %v10874_v23  ;;  %v2913_v57 = vpop.f32.mrb[106].mxu0  ;;  %v9316_v32 = vld [vmem:[#allocation8 + $0x2f0] ss:$8 sps:$4 sm:$0xff]   ;;  %v9324_v18 = vld [vmem:[#allocation8 + $0x304] ss:$8 sps:$4 sm:$0xff]  }
 0x257   :  { %6642 = vmatpush1.bf16.msra.mxu1 %v9304_v63  ;;  %v2684_v63 = vpop.f32.mrb[102].mxu1  ;;  %v2915_v25 = vpop.f32.mrb[107].mxu0  ;;  %v3088_v52 = vmax.f32 %v2683_v13, 0.0 }
 0x258   :  { %7116 = vmatmul.mubr.bf16.gmra.mrb[124].mxu0 %v10736_v8  ;;  %6643 = vmatprep.subr.bf16.mxu1 %v9312_v1  ;;  %v3157_v44 = vmax.f32 %v2910_v56, 0.0  ;;  %v2914_v8 = vadd.f32 %v2913_v57, %v10870_v54  ;;  %v3087_v1 = vmax.f32 %v2681_v5, 0.0  ;;  %v2685_v37 = vadd.f32 %v2684_v63, %v10887_v12  ;;  %v2686_v7 = vpop.f32.mrb[103].mxu1  ;;  %v9319_v56 = vld [vmem:[#allocation8 + $0x980] ss:$8 sps:$4 sm:$0xff]  }
 0x259   :  { %7139 = vmatpush1.bf16.msra.mxu0 %v9307_v17  ;;  %7158 = vmatprep.mubr.bf16.mxu0 %v10782_v50  ;;  %v3158_v17 = vmax.f32 %v2912_v22, 0.0  ;;  %v2916_v50 = vadd.f32 %v2915_v25, %v10874_v23  ;;  %v2687_v43 = vadd.f32 %v2686_v7, %v10897_v29  ;;  %v9327_v5 = vld [vmem:[#allocation8 + $0x994] ss:$8 sps:$4 sm:$0xff]   ;;  %v2690_v22 = vpop.f32.mrb[104].mxu1  ;;  %v9322_v25 = vld [vmem:[#allocation8 + $0x300] ss:$8 sps:$4 sm:$0xff]  }
 0x25a   :  { %7140 = vmatprep.subr.bf16.mxu0 %v9315_v47  ;;  %v3189_v47 = vmax.f32 %v2914_v8, 0.0  ;;  %v3119_v31 = vmax.f32 %v2685_v37, 0.0  ;;  %v2919_v7 = vpop.f32.mrb[108].mxu0  ;;  %v2691_v8 = vadd.f32 %v2690_v22, %v10887_v12  ;;  %v9330_v37 = vld [vmem:[#allocation8 + $0x314] ss:$8 sps:$4 sm:$0xff]  }
 0x25b   :  { %6644 = vmatpush1.bf16.msra.mxu1 %v9310_v62  ;;  %v3190_v57 = vmax.f32 %v2916_v50, 0.0  ;;  %v3120_v16 = vmax.f32 %v2687_v43, 0.0  ;;  %v2921_v50 = vpop.f32.mrb[109].mxu0 }
 0x25c   :  { %6645 = vmatprep.subr.bf16.mxu1 %v9318_v2  ;;  %v10924_v63 = vpack.c.bf16 %v3189_v47, %v3157_v44  ;;  %v10926_v62 = vpack.c.bf16 %v3119_v31, %v3087_v1  ;;  %v9325_v1 = vld [vmem:[#allocation8 + $0x990] ss:$8 sps:$4 sm:$0xff]   ;;  %v2923_v43 = vpop.f32.mrb[110].mxu0  ;;  %v3151_v31 = vmax.f32 %v2691_v8, 0.0 }
 0x25d   :  { %7141 = vmatpush1.bf16.msra.mxu0 %v9313_v51  ;;  %v10928_v13 = vpack.c.bf16 %v3190_v57, %v3158_v17  ;;  %v10930_v2 = vpack.c.bf16 %v3120_v16, %v3088_v52  ;;  %v2692_v51 = vpop.f32.mrb[105].mxu1  ;;  %v9333_v16 = vld [vmem:[#allocation8 + $0x9a4] ss:$8 sps:$4 sm:$0xff]   ;;  %v2924_v47 = vadd.f32 %v2923_v43, %v10870_v54 }
 0x25e   :  { %7142 = vmatprep.subr.bf16.mxu0 %v9321_v20  ;;  %11227 = vst [vmem:[#allocation60_spill] sm:$0xff] %v10924_v63  ;;  %v2920_v20 = vadd.f32 %v2919_v7, %v10870_v54  ;;  %v2693_v44 = vadd.f32 %v2692_v51, %v10897_v29  ;;  %v2694_v17 = vpop.f32.mrb[106].mxu1  ;;  %v9331_v54 = vld [vmem:[#allocation8 + $0x9a0] ss:$8 sps:$4 sm:$0xff]  }
 0x25f   :  { %6646 = vmatpush1.bf16.msra.mxu1 %v9316_v32  ;;  %11228 = vst [vmem:[#allocation61_spill] sm:$0xff] %v10928_v13  ;;  %v2922_v32 = vadd.f32 %v2921_v50, %v10874_v23  ;;  %v2695_v57 = vadd.f32 %v2694_v17, %v10887_v12  ;;  %v2696_v22 = vpop.f32.mrb[107].mxu1  ;;  %v9339_v17 = vld [vmem:[#allocation8 + $0x9b4] ss:$8 sps:$4 sm:$0xff]  }
 0x260   :  { %6688 = vmatprep.subr.bf16.mxu1 %v9324_v18  ;;  %v3221_v52 = vmax.f32 %v2920_v20, 0.0  ;;  %v2925_v18 = vpop.f32.mrb[111].mxu0  ;;  %v3152_v50 = vmax.f32 %v2693_v44, 0.0  ;;  %v3253_v20 = vmax.f32 %v2924_v47, 0.0 }
 0x261   :  { %7143 = vmatpush1.bf16.msra.mxu0 %v9319_v56  ;;  %v9328_v56 = vld [vmem:[#allocation8 + $0x310] ss:$8 sps:$4 sm:$0xff]   ;;  %v3222_v7 = vmax.f32 %v2922_v32, 0.0  ;;  %v2926_v51 = vadd.f32 %v2925_v18, %v10874_v23  ;;  %v3183_v63 = vmax.f32 %v2695_v57, 0.0  ;;  %v9334_v23 = vld [vmem:[#allocation8 + $0x320] ss:$8 sps:$4 sm:$0xff]  }
 0x262   :  { %6648 = vmatmul.mubr.bf16.vlgmr.msra.gmra.mrb[144].mxu1 %v10396_v21  ;;  %7144 = vmatprep.subr.bf16.mxu0 %v9327_v5  ;;  %v2697_v21 = vadd.f32 %v2696_v22, %v10897_v29  ;;  %v9336_v5 = vld [vmem:[#allocation8 + $0x324] ss:$8 sps:$4 sm:$0xff]   ;;  %v10942_v13 = vpack.c.bf16 %v3253_v20, %v3221_v52 }
 0x263   :  { %6657 = vmatprep.mubr.bf16.mxu1 %v10439_v34  ;;  %6689 = vmatpush1.bf16.msra.mxu1 %v9322_v25  ;;  %v3254_v8 = vmax.f32 %v2926_v51, 0.0  ;;  %v10944_v34 = vpack.c.bf16 %v3183_v63, %v3151_v31  ;;  %v2700_v25 = vpop.f32.mrb[108].mxu1  ;;  %v9345_v63 = vld [vmem:[#allocation8 + $0x9c4] ss:$8 sps:$4 sm:$0xff]  }
 0x264   :  { %6690 = vmatprep.subr.bf16.mxu1 %v9330_v37  ;;  %v3184_v43 = vmax.f32 %v2697_v21, 0.0  ;;  %v2701_v37 = vadd.f32 %v2700_v25, %v10887_v12  ;;  %v2702_v47 = vpop.f32.mrb[109].mxu1 }
 0x265   :  { %7145 = vmatpush1.bf16.msra.mxu0 %v9325_v1  ;;  %v10946_v44 = vpack.c.bf16 %v3254_v8, %v3222_v7  ;;  %v9342_v1 = vld [vmem:[#allocation8 + $0x334] ss:$8 sps:$4 sm:$0xff]   ;;  %v2703_v18 = vadd.f32 %v2702_v47, %v10897_v29  ;;  %v2704_v52 = vpop.f32.mrb[110].mxu1 }
 0x266   :  { %7146 = vmatprep.subr.bf16.mxu0 %v9333_v16  ;;  %v10948_v32 = vpack.c.bf16 %v3184_v43, %v3152_v50  ;;  %v9337_v16 = vld [vmem:[#allocation8 + $0x9b0] ss:$8 sps:$4 sm:$0xff]   ;;  %v3215_v31 = vmax.f32 %v2701_v37, 0.0  ;;  %v2705_v57 = vadd.f32 %v2704_v52, %v10887_v12  ;;  %v2706_v22 = vpop.f32.mrb[111].mxu1  ;;  %v9348_v50 = vld [vmem:[#allocation8 + $0x344] ss:$8 sps:$4 sm:$0xff]  }
 0x267   :  { %6691 = vmatpush1.bf16.msra.mxu1 %v9328_v56  ;;  %v9340_v56 = vld [vmem:[#allocation8 + $0x330] ss:$8 sps:$4 sm:$0xff]   ;;  %v3216_v7 = vmax.f32 %v2703_v18, 0.0  ;;  %v2707_v51 = vadd.f32 %v2706_v22, %v10897_v29  ;;  %v9351_v12 = vld [vmem:[#allocation8 + $0x9d4] ss:$8 sps:$4 sm:$0xff]  }
 0x268   :  { %6692 = vmatprep.subr.bf16.mxu1 %v9336_v5  ;;  %v3247_v21 = vmax.f32 %v2705_v57, 0.0  ;;  %v9343_v5 = vld [vmem:[#allocation8 + $0x9c0] ss:$8 sps:$4 sm:$0xff]  }
 0x269   :  { %7147 = vmatpush1.bf16.msra.mxu0 %v9331_v54  ;;  %v3248_v20 = vmax.f32 %v2707_v51, 0.0  ;;  %v2816_v54 = vpop.f32.mrb[112].mxu1  ;;  %v9355_v22 = vld [vmem:[#allocation8 + $0x9e0] ss:$8 sps:$4 sm:$0xff]  }
 0x26a   :  { %6658 = vmatmul.mubr.bf16.gmra.mrb[148].mxu1 %v10434_v19  ;;  %7148 = vmatprep.subr.bf16.mxu0 %v9339_v17  ;;  %v10958_v19 = vrot.slane %v10793_v61, %v10383_v3  ;;  %v10960_v8 = vpack.c.bf16 %v3247_v21, %v3215_v31  ;;  %v10967_v17 = vrot.slane %v10793_v61, %v10386_v4  ;;  %v2818_v25 = vpop.f32.mrb[113].mxu1  ;;  %v9349_v3 = vld [vmem:[#allocation8 + $0x9d0] ss:$8 sps:$4 sm:$0xff]   ;;  %v9360_v31 = vld [vmem:[#allocation8 + $0x364] ss:$8 sps:$4 sm:$0xff]  }
 0x26b   :  { %6667 = vmatprep.mubr.bf16.mxu1 %v10457_v36  ;;  %6693 = vmatpush1.bf16.msra.mxu1 %v9334_v23  ;;  %v9346_v36 = vld [vmem:[#allocation8 + $0x340] ss:$8 sps:$4 sm:$0xff]   ;;  %v10962_v43 = vpack.c.bf16 %v3248_v20, %v3216_v7  ;;  %v9354_v23 = vld [vmem:[#allocation8 + $0x354] ss:$8 sps:$4 sm:$0xff]   ;;  %v2820_v47 = vpop.f32.mrb[114].mxu1 }
 0x26c   :  { %6694 = vmatprep.subr.bf16.mxu1 %v9342_v1  ;;  %v2817_v29 = vadd.f32 %v2816_v54, %v10958_v19  ;;  %v2819_v37 = vadd.f32 %v2818_v25, %v10967_v17  ;;  %v9357_v1 = vld [vmem:[#allocation8 + $0x9e4] ss:$8 sps:$4 sm:$0xff]   ;;  %v2822_v52 = vpop.f32.mrb[115].mxu1  ;;  %v9352_v4 = vld [vmem:[#allocation8 + $0x350] ss:$8 sps:$4 sm:$0xff]  }
 0x26d   :  { %7149 = vmatpush1.bf16.msra.mxu0 %v9337_v16  ;;  %v2821_v16 = vadd.f32 %v2820_v47, %v10958_v19  ;;  %v9363_v7 = vld [vmem:[#allocation8 + $0x9f4] ss:$8 sps:$4 sm:$0xff]  }
 0x26e   :  { %7150 = vmatprep.subr.bf16.mxu0 %v9345_v63  ;;  %v3027_v18 = vmax.f32 %v2817_v29, 0.0  ;;  %v3028_v61 = vmax.f32 %v2819_v37, 0.0  ;;  %v2823_v63 = vadd.f32 %v2822_v52, %v10967_v17  ;;  %v9366_v20 = vld [vmem:[#allocation8 + $0x374] ss:$8 sps:$4 sm:$0xff]   ;;  %v9369_v29 = vld [vmem:[#allocation8 + $0xa04] ss:$8 sps:$4 sm:$0xff]  }
 0x26f   :  { %6695 = vmatpush1.bf16.msra.mxu1 %v9340_v56  ;;  %v3059_v57 = vmax.f32 %v2821_v16, 0.0  ;;  %v9364_v37 = vld [vmem:[#allocation8 + $0x370] ss:$8 sps:$4 sm:$0xff]   ;;  %v9367_v52 = vld [vmem:[#allocation8 + $0xa00] ss:$8 sps:$4 sm:$0xff]  }
 0x270   :  { %6696 = vmatprep.subr.bf16.mxu1 %v9348_v50  ;;  %v3060_v56 = vmax.f32 %v2823_v63, 0.0 }
 0x271   :  { %7151 = vmatpush1.bf16.msra.mxu0 %v9343_v5  ;;  %v10974_v51 = vpack.c.bf16 %v3059_v57, %v3027_v18  ;;  %v9372_v18 = vld [vmem:[#allocation8 + $0x384] ss:$8 sps:$4 sm:$0xff]   ;;  %v9370_v57 = vld [vmem:[#allocation8 + $0x380] ss:$8 sps:$4 sm:$0xff]  }
 0x272   :  { %6668 = vmatmul.mubr.bf16.gmra.mrb[152].mxu1 %v10454_v28  ;;  %7152 = vmatprep.subr.bf16.mxu0 %v9351_v12  ;;  %v2826_v28 = vpop.f32.mrb[116].mxu1  ;;  %v10977_v21 = vpack.c.bf16 %v3060_v56, %v3028_v61  ;;  %v9361_v12 = vld [vmem:[#allocation8 + $0x9f0] ss:$8 sps:$4 sm:$0xff]   ;;  %v9375_v61 = vld [vmem:[#allocation8 + $0xa14] ss:$8 sps:$4 sm:$0xff]  }
 0x273   :  { %6677 = vmatprep.mubr.bf16.mxu1 %v10485_v45  ;;  %6697 = vmatpush1.bf16.msra.mxu1 %v9346_v36  ;;  %v2827_v50 = vadd.f32 %v2826_v28, %v10958_v19  ;;  %v9358_v45 = vld [vmem:[#allocation8 + $0x360] ss:$8 sps:$4 sm:$0xff]   ;;  %v2828_v5 = vpop.f32.mrb[117].mxu1  ;;  %v9373_v28 = vld [vmem:[#allocation8 + $0xa10] ss:$8 sps:$4 sm:$0xff]  }
 0x274   :  { %6698 = vmatprep.subr.bf16.mxu1 %v9354_v23  ;;  %v2829_v54 = vadd.f32 %v2828_v5, %v10967_v17  ;;  %v2830_v36 = vpop.f32.mrb[118].mxu1 }
 0x275   :  { %7153 = vmatpush1.bf16.msra.mxu0 %v9349_v3  ;;  %v3091_v25 = vmax.f32 %v2827_v50, 0.0  ;;  %v2831_v23 = vadd.f32 %v2830_v36, %v10958_v19  ;;  %v2832_v3 = vpop.f32.mrb[119].mxu1 }
 0x276   :  { %7154 = vmatprep.subr.bf16.mxu0 %v9357_v1  ;;  %v3092_v47 = vmax.f32 %v2829_v54, 0.0  ;;  %v2833_v1 = vadd.f32 %v2832_v3, %v10967_v17 }
 0x277   :  { %6699 = vmatpush1.bf16.msra.mxu1 %v9352_v4  ;;  %v3123_v16 = vmax.f32 %v2831_v23, 0.0  ;;  %v9379_v23 = vld [vmem:[#allocation8 + $0xa20] ss:$8 sps:$4 sm:$0xff]  }
 0x278   :  { %6700 = vmatprep.subr.bf16.mxu1 %v9360_v31  ;;  %v3124_v4 = vmax.f32 %v2833_v1, 0.0 }
 0x279   :  { %7155 = vmatpush1.bf16.msra.mxu0 %v9355_v22  ;;  %v10984_v63 = vpack.c.bf16 %v3123_v16, %v3091_v25  ;;  %v9378_v22 = vld [vmem:[#allocation8 + $0x394] ss:$8 sps:$4 sm:$0xff]  }
 0x27a   :  { %6678 = vmatmul.mubr.bf16.gmra.mrb[156].mxu1 %v10482_v38  ;;  %7156 = vmatprep.subr.bf16.mxu0 %v9363_v7  ;;  %v2836_v38 = vpop.f32.mrb[120].mxu1 }
 0x27b   :  { %6701 = vmatpush1.bf16.msra.mxu1 %v9358_v45  ;;  %6720 = vmatprep.mubr.bf16.mxu1 %v10547_v46  ;;  %v2837_v31 = vadd.f32 %v2836_v38, %v10958_v19  ;;  %v10987_v46 = vpack.c.bf16 %v3124_v4, %v3092_v47  ;;  %v2838_v56 = vpop.f32.mrb[121].mxu1  ;;  %v9381_v45 = vld [vmem:[#allocation8 + $0xa24] ss:$8 sps:$4 sm:$0xff]   ;;  %v9385_v38 = vld [vmem:[#allocation8 + $0xa30] ss:$8 sps:$4 sm:$0xff]  }
 0x27c   :  { %6702 = vmatprep.subr.bf16.mxu1 %v9366_v20  ;;  %v2839_v7 = vadd.f32 %v2838_v56, %v10967_v17  ;;  %v2840_v50 = vpop.f32.mrb[122].mxu1 }
 0x27d   :  { %7157 = vmatpush1.bf16.msra.mxu0 %v9361_v12  ;;  %v3155_v5 = vmax.f32 %v2837_v31, 0.0  ;;  %v2841_v20 = vadd.f32 %v2840_v50, %v10958_v19  ;;  %v2842_v54 = vpop.f32.mrb[123].mxu1  ;;  %v9376_v12 = vld [vmem:[#allocation8 + $0x390] ss:$8 sps:$4 sm:$0xff]  }
 0x27e   :  { %7199 = vmatprep.subr.bf16.mxu0 %v9369_v29  ;;  %v3156_v36 = vmax.f32 %v2839_v7, 0.0  ;;  %v9384_v29 = vld [vmem:[#allocation8 + $0x3a4] ss:$8 sps:$4 sm:$0xff]   ;;  %v2846_v3 = vpop.f32.mrb[124].mxu1  ;;  %v9388_v7 = vld [vmem:[#allocation8 + $0x3b0] ss:$8 sps:$4 sm:$0xff]  }
 0x27f   :  { %6703 = vmatpush1.bf16.msra.mxu1 %v9364_v37  ;;  %v3187_v25 = vmax.f32 %v2841_v20, 0.0  ;;  %v9387_v37 = vld [vmem:[#allocation8 + $0xa34] ss:$8 sps:$4 sm:$0xff]   ;;  %v2847_v1 = vadd.f32 %v2846_v3, %v10958_v19  ;;  %v2848_v4 = vpop.f32.mrb[125].mxu1  ;;  %v9391_v20 = vld [vmem:[#allocation8 + $0xa40] ss:$8 sps:$4 sm:$0xff]  }
 0x280   :  { %7159 = vmatmul.mubr.bf16.vlgmr.msra.gmra.mrb[112].mxu0 %v10780_v26  ;;  %6704 = vmatprep.subr.bf16.mxu1 %v9372_v18  ;;  %v2843_v26 = vadd.f32 %v2842_v54, %v10967_v17  ;;  %v9382_v18 = vld [vmem:[#allocation8 + $0x3a0] ss:$8 sps:$4 sm:$0xff]   ;;  %v2850_v31 = vpop.f32.mrb[126].mxu1  ;;  %v9840_v54 = vld [vmem:[#allocation7 + $0x18] sm:$0xff] }
 0x281   :  { %7200 = vmatpush1.bf16.msra.mxu0 %v9367_v52  ;;  %7168 = vmatprep.mubr.bf16.mxu0 %v10810_v27  ;;  %v10994_v47 = vpack.c.bf16 %v3187_v25, %v3155_v5  ;;  %v9390_v52 = vld [vmem:[#allocation8 + $0x3b4] ss:$8 sps:$4 sm:$0xff]   ;;  %v2851_v56 = vadd.f32 %v2850_v31, %v10958_v19  ;;  %v9397_v3 = vld [vmem:[#allocation8 + $0xa50] ss:$8 sps:$4 sm:$0xff]  }
 0x282   :  { %7201 = vmatprep.subr.bf16.mxu0 %v9375_v61  ;;  %v3188_v27 = vmax.f32 %v2843_v26, 0.0  ;;  %v2849_v61 = vadd.f32 %v2848_v4, %v10967_v17  ;;  %v9399_v26 = vld [vmem:[#allocation8 + $0xa54] ss:$8 sps:$4 sm:$0xff]  }
 0x283   :  { %6705 = vmatpush1.bf16.msra.mxu1 %v9370_v57  ;;  %v9393_v57 = vld [vmem:[#allocation8 + $0xa44] ss:$8 sps:$4 sm:$0xff]   ;;  %v3251_v5 = vmax.f32 %v2851_v56, 0.0  ;;  %v9411_v56 = vld [vmem:[#allocation8 + $0xa74] ss:$8 sps:$4 sm:$0xff]  }
 0x284   :  { %6706 = vmatprep.subr.bf16.mxu1 %v9378_v22  ;;  %v10997_v16 = vpack.c.bf16 %v3188_v27, %v3156_v36  ;;  %v3219_v22 = vmax.f32 %v2847_v1, 0.0  ;;  %v3220_v50 = vmax.f32 %v2849_v61, 0.0  ;;  %v11014_v27 = vrot.slane %v9840_v54, %v10503_v40  ;;  %v9405_v1 = vld [vmem:[#allocation8 + $0xa64] ss:$8 sps:$4 sm:$0xff]  }
 0x285   :  { %7202 = vmatpush1.bf16.msra.mxu0 %v9373_v28  ;;  %v2852_v28 = vpop.f32.mrb[127].mxu1  ;;  %v9408_v40 = vld [vmem:[#allocation8 + $0x3e4] ss:$8 sps:$4 sm:$0xff]  }
 0x286   :  { %7203 = vmatprep.subr.bf16.mxu0 %v9381_v45  ;;  %v9396_v45 = vld [vmem:[#allocation8 + $0x3c4] ss:$8 sps:$4 sm:$0xff]   ;;  %v2962_v36 = vpop.f32.mrb[128].mxu1  ;;  %v11007_v19 = vpack.c.bf16 %v3251_v5, %v3219_v22  ;;  %v9403_v22 = vld [vmem:[#allocation8 + $0xa60] ss:$8 sps:$4 sm:$0xff]  }
 0x287   :  { %6707 = vmatpush1.bf16.msra.mxu1 %v9376_v12  ;;  %v11005_v12 = vrot.slane %v9840_v54, %v10500_v41  ;;  %v2964_v41 = vpop.f32.mrb[129].mxu1  ;;  %v9417_v5 = vld [vmem:[#allocation8 + $0xa84] ss:$8 sps:$4 sm:$0xff]   ;;  %v9415_v54 = vld [vmem:[#allocation8 + $0xa80] ss:$8 sps:$4 sm:$0xff]  }
 0x288   :  { %7169 = vmatmul.mubr.bf16.gmra.mrb[116].mxu0 %v10804_v60  ;;  %6708 = vmatprep.subr.bf16.mxu1 %v9384_v29  ;;  %v2853_v60 = vadd.f32 %v2852_v28, %v10967_v17  ;;  %v9394_v29 = vld [vmem:[#allocation8 + $0x3c0] ss:$8 sps:$4 sm:$0xff]  }
 0x289   :  { %7204 = vmatpush1.bf16.msra.mxu0 %v9379_v23  ;;  %7178 = vmatprep.mubr.bf16.mxu0 %v10828_v15  ;;  %v2963_v17 = vadd.f32 %v2962_v36, %v11005_v12  ;;  %v9402_v23 = vld [vmem:[#allocation8 + $0x3d4] ss:$8 sps:$4 sm:$0xff]  }
 0x28a   :  { %7205 = vmatprep.subr.bf16.mxu0 %v9387_v37  ;;  %v3252_v15 = vmax.f32 %v2853_v60, 0.0  ;;  %v2966_v37 = vpop.f32.mrb[130].mxu1  ;;  %v9414_v60 = vld [vmem:[#allocation8 + $0x3f4] ss:$8 sps:$4 sm:$0xff]  }
 0x28b   :  { %6709 = vmatpush1.bf16.msra.mxu1 %v9382_v18  ;;  %v3031_v18 = vmax.f32 %v2963_v17, 0.0  ;;  %v2967_v4 = vadd.f32 %v2966_v37, %v11005_v12  ;;  %v9423_v36 = vld [vmem:[#allocation8 + $0xa94] ss:$8 sps:$4 sm:$0xff]   ;;  %v11229_v17 = vld [vmem:[#allocation29_spill] sm:$0xff] }
 0x28c   :  { %6710 = vmatprep.subr.bf16.mxu1 %v9390_v52  ;;  %v11009_v25 = vpack.c.bf16 %v3252_v15, %v3220_v50  ;;  %v2965_v52 = vadd.f32 %v2964_v41, %v11014_v27  ;;  %v9420_v15 = vld [vmem:[#allocation8 + $0x404] ss:$8 sps:$4 sm:$0xff]   ;;  %v9435_v37 = vld [vmem:[#allocation8 + $0xab4] ss:$8 sps:$4 sm:$0xff]  }
 0x28d   :  { %7206 = vmatpush1.bf16.msra.mxu0 %v9385_v38  ;;  %v2968_v38 = vpop.f32.mrb[131].mxu1  ;;  %v9432_v41 = vld [vmem:[#allocation8 + $0x424] ss:$8 sps:$4 sm:$0xff]  }
 0x28e   :  { %7207 = vmatprep.subr.bf16.mxu0 %v9393_v57  ;;  %v2969_v61 = vadd.f32 %v2968_v38, %v11014_v27  ;;  %v3032_v31 = vmax.f32 %v2965_v52, 0.0  ;;  %v3063_v57 = vmax.f32 %v2967_v4, 0.0  ;;  %v9433_v52 = vld [vmem:[#allocation8 + $0xab0] ss:$8 sps:$4 sm:$0xff]   ;;  %v11230_v4 = vld [vmem:[#allocation28_spill] sm:$0xff] }
 0x28f   :  { %6711 = vmatpush1.bf16.msra.mxu1 %v9388_v7  ;;  %v9406_v7 = vld [vmem:[#allocation8 + $0x3e0] ss:$8 sps:$4 sm:$0xff]   ;;  %v11231_v38 = vld [vmem:[#allocation33_spill] sm:$0xff] }
 0x290   :  { %7179 = vmatmul.mubr.bf16.gmra.mrb[120].mxu0 %v10826_v0  ;;  %6712 = vmatprep.subr.bf16.mxu1 %v9396_v45  ;;  %v9400_v0 = vld [vmem:[#allocation8 + $0x3d0] ss:$8 sps:$4 sm:$0xff]   ;;  %v11020_v28 = vpack.c.bf16 %v3063_v57, %v3031_v18  ;;  %v9438_v18 = vld [vmem:[#allocation8 + $0x434] ss:$8 sps:$4 sm:$0xff]   ;;  %v9442_v57 = vld [vmem:[#allocation8 + $0x440] ss:$8 sps:$4 sm:$0xff]  }
 0x291   :  { %7208 = vmatpush1.bf16.msra.mxu0 %v9391_v20  ;;  %7188 = vmatprep.mubr.bf16.mxu0 %v10846_v6  ;;  %v3064_v6 = vmax.f32 %v2969_v61, 0.0  ;;  %v9409_v45 = vld [vmem:[#allocation8 + $0xa70] ss:$8 sps:$4 sm:$0xff]   ;;  %v9444_v61 = vld [vmem:[#allocation8 + $0x444] ss:$8 sps:$4 sm:$0xff]  }
 0x292   :  { %7209 = vmatprep.subr.bf16.mxu0 %v9399_v26  ;;  %v9412_v20 = vld [vmem:[#allocation8 + $0x3f0] ss:$8 sps:$4 sm:$0xff]   ;;  %v9418_v26 = vld [vmem:[#allocation8 + $0x400] ss:$8 sps:$4 sm:$0xff]  }
 0x293   :  { %6713 = vmatpush1.bf16.msra.mxu1 %v9394_v29  ;;  %v11022_v50 = vpack.c.bf16 %v3064_v6, %v3032_v31  ;;  %v9421_v29 = vld [vmem:[#allocation8 + $0xa90] ss:$8 sps:$4 sm:$0xff]   ;;  %v9447_v31 = vld [vmem:[#allocation8 + $0xad4] ss:$8 sps:$4 sm:$0xff]  }
 0x294   :  { %6714 = vmatprep.subr.bf16.mxu1 %v9402_v23  ;;  %v9424_v23 = vld [vmem:[#allocation8 + $0x410] ss:$8 sps:$4 sm:$0xff]  }
 0x295   :  { %7210 = vmatpush1.bf16.msra.mxu0 %v9397_v3  ;;  %v9427_v3 = vld [vmem:[#allocation8 + $0xaa0] ss:$8 sps:$4 sm:$0xff]   ;;  %v9445_v6 = vld [vmem:[#allocation8 + $0xad0] ss:$8 sps:$4 sm:$0xff]  }
 0x296   :  { %7211 = vmatprep.subr.bf16.mxu0 %v9405_v1  ;;  %v9430_v1 = vld [vmem:[#allocation8 + $0x420] ss:$8 sps:$4 sm:$0xff]  }
 0x297   :  { %6715 = vmatpush1.bf16.msra.mxu1 %v9400_v0  ;;  %v9436_v0 = vld [vmem:[#allocation8 + $0x430] ss:$8 sps:$4 sm:$0xff]  }
 0x298   :  { %7189 = vmatmul.mubr.bf16.gmra.mrb[124].mxu0 %v10844_v48  ;;  %6716 = vmatprep.subr.bf16.mxu1 %v9408_v40  ;;  %v9426_v48 = vld [vmem:[#allocation8 + $0x414] ss:$8 sps:$4 sm:$0xff]   ;;  %v9439_v40 = vld [vmem:[#allocation8 + $0xac0] ss:$8 sps:$4 sm:$0xff]  }
 0x299   :  { %7212 = vmatpush1.bf16.msra.mxu0 %v9403_v22  ;;  %7231 = vmatprep.mubr.bf16.mxu0 %v10751_v53  ;;  %v9429_v53 = vld [vmem:[#allocation8 + $0xaa4] ss:$8 sps:$4 sm:$0xff]   ;;  %v9450_v22 = vld [vmem:[#allocation8 + $0x454] ss:$8 sps:$4 sm:$0xff]  }
 0x29a   :  { %7213 = vmatprep.subr.bf16.mxu0 %v9411_v56  ;;  %v11232_v56 = vld [vmem:[#allocation32_spill] sm:$0xff] }
 0x29b   :  { %6717 = vmatpush1.bf16.msra.mxu1 %v9406_v7  ;;  %v9453_v7 = vld [vmem:[#allocation8 + $0xae4] ss:$8 sps:$4 sm:$0xff]  }
 0x29c   :  { %6718 = vmatprep.subr.bf16.mxu1 %v9414_v60  ;;  %v11233_v60 = vld [vmem:[#allocation37_spill] sm:$0xff] }
 0x29d   :  { %7214 = vmatpush1.bf16.msra.mxu0 %v9409_v45  ;;  %v9448_v45 = vld [vmem:[#allocation8 + $0x450] ss:$8 sps:$4 sm:$0xff]  }
 0x29e   :  { %7215 = vmatprep.subr.bf16.mxu0 %v9417_v5  ;;  %v9456_v5 = vld [vmem:[#allocation8 + $0x464] ss:$8 sps:$4 sm:$0xff]  }
 0x29f   :  { %6719 = vmatpush1.bf16.msra.mxu1 %v9412_v20  ;;  %v9451_v20 = vld [vmem:[#allocation8 + $0xae0] ss:$8 sps:$4 sm:$0xff]  }
 0x2a0   :  { %6761 = vmatprep.subr.bf16.mxu1 %v9420_v15  ;;  %v2972_v15 = vpop.f32.mrb[132].mxu1 }
 0x2a1   :  { %7216 = vmatpush1.bf16.msra.mxu0 %v9415_v54  ;;  %v9459_v54 = vld [vmem:[#allocation8 + $0xaf4] ss:$8 sps:$4 sm:$0xff]  }
 0x2a2   :  { %6721 = vmatmul.mubr.bf16.vlgmr.msra.gmra.mrb[144].mxu1 %v10545_v42  ;;  %7217 = vmatprep.subr.bf16.mxu0 %v9423_v36  ;;  %v9441_v42 = vld [vmem:[#allocation8 + $0xac4] ss:$8 sps:$4 sm:$0xff]   ;;  %v2973_v36 = vadd.f32 %v2972_v15, %v11005_v12 }
 0x2a3   :  { %6730 = vmatprep.mubr.bf16.mxu1 %v11229_v17  ;;  %6762 = vmatpush1.bf16.msra.mxu1 %v9418_v26  ;;  %v9454_v26 = vld [vmem:[#allocation8 + $0x460] ss:$8 sps:$4 sm:$0xff]   ;;  %v9457_v17 = vld [vmem:[#allocation8 + $0xaf0] ss:$8 sps:$4 sm:$0xff]  }
 0x2a4   :  { %6763 = vmatprep.subr.bf16.mxu1 %v9426_v48  ;;  %v2974_v48 = vpop.f32.mrb[133].mxu1 }
 0x2a5   :  { %7218 = vmatpush1.bf16.msra.mxu0 %v9421_v29  ;;  %v9462_v29 = vld [vmem:[#allocation8 + $0x474] ss:$8 sps:$4 sm:$0xff]  }
 0x2a6   :  { %7219 = vmatprep.subr.bf16.mxu0 %v9429_v53  ;;  %v2975_v53 = vadd.f32 %v2974_v48, %v11014_v27 }
 0x2a7   :  { %6764 = vmatpush1.bf16.msra.mxu1 %v9424_v23  ;;  %v2976_v23 = vpop.f32.mrb[134].mxu1 }
 0x2a8   :  { %6765 = vmatprep.subr.bf16.mxu1 %v9432_v41  ;;  %v11234_v41 = vld [vmem:[#allocation36_spill] sm:$0xff] }
 0x2a9   :  { %7220 = vmatpush1.bf16.msra.mxu0 %v9427_v3  ;;  %v9465_v3 = vld [vmem:[#allocation8 + $0xb04] ss:$8 sps:$4 sm:$0xff]  }
 0x2aa   :  { %6731 = vmatmul.mubr.bf16.gmra.mrb[148].mxu1 %v11230_v4  ;;  %7221 = vmatprep.subr.bf16.mxu0 %v9435_v37  ;;  %v3095_v37 = vmax.f32 %v2973_v36, 0.0  ;;  %v9460_v4 = vld [vmem:[#allocation8 + $0x470] ss:$8 sps:$4 sm:$0xff]   ;;  %v9477_v36 = vld [vmem:[#allocation8 + $0xb24] ss:$8 sps:$4 sm:$0xff]  }
 0x2ab   :  { %6740 = vmatprep.mubr.bf16.mxu1 %v11231_v38  ;;  %6766 = vmatpush1.bf16.msra.mxu1 %v9430_v1  ;;  %v2977_v1 = vadd.f32 %v2976_v23, %v11005_v12  ;;  %v9480_v23 = vld [vmem:[#allocation8 + $0x4a4] ss:$8 sps:$4 sm:$0xff]  }
 0x2ac   :  { %6767 = vmatprep.subr.bf16.mxu1 %v9438_v18  ;;  %v2978_v18 = vpop.f32.mrb[135].mxu1 }
 0x2ad   :  { %7222 = vmatpush1.bf16.msra.mxu0 %v9433_v52  ;;  %v11235_v52 = vld [vmem:[#allocation23_spill] sm:$0xff]  ;;  %v2979_v38 = vadd.f32 %v2978_v18, %v11014_v27 }
 0x2ae   :  { %7223 = vmatprep.subr.bf16.mxu0 %v9441_v42  ;;  %v3096_v42 = vmax.f32 %v2975_v53, 0.0  ;;  %v9472_v53 = vld [vmem:[#allocation8 + $0x490] ss:$8 sps:$4 sm:$0xff]  }
 0x2af   :  { %6768 = vmatpush1.bf16.msra.mxu1 %v9436_v0  ;;  %v9468_v0 = vld [vmem:[#allocation8 + $0x484] ss:$8 sps:$4 sm:$0xff]  }
 0x2b0   :  { %6769 = vmatprep.subr.bf16.mxu1 %v9444_v61  ;;  %v3127_v61 = vmax.f32 %v2977_v1, 0.0  ;;  %v9483_v1 = vld [vmem:[#allocation8 + $0xb34] ss:$8 sps:$4 sm:$0xff]  }
 0x2b1   :  { %7224 = vmatpush1.bf16.msra.mxu0 %v9439_v40  ;;  %v9463_v40 = vld [vmem:[#allocation8 + $0xb00] ss:$8 sps:$4 sm:$0xff]  }
 0x2b2   :  { %6741 = vmatmul.mubr.bf16.gmra.mrb[152].mxu1 %v11232_v56  ;;  %7225 = vmatprep.subr.bf16.mxu0 %v9447_v31  ;;  %v3128_v31 = vmax.f32 %v2979_v38, 0.0  ;;  %v11236_v38 = vld [vmem:[#allocation52_spill] sm:$0xff] }
 0x2b3   :  { %6750 = vmatprep.mubr.bf16.mxu1 %v11233_v60  ;;  %6770 = vmatpush1.bf16.msra.mxu1 %v9442_v57  ;;  %v2982_v57 = vpop.f32.mrb[136].mxu1 }
 0x2b4   :  { %6771 = vmatprep.subr.bf16.mxu1 %v9450_v22  ;;  %v9471_v22 = vld [vmem:[#allocation8 + $0xb14] ss:$8 sps:$4 sm:$0xff]   ;;  %v2983_v56 = vadd.f32 %v2982_v57, %v11005_v12  ;;  %v11041_v60 = vpack.c.bf16 %v3128_v31, %v3096_v42  ;;  %v9481_v31 = vld [vmem:[#allocation8 + $0xb30] ss:$8 sps:$4 sm:$0xff]  }
 0x2b5   :  { %7226 = vmatpush1.bf16.msra.mxu0 %v9445_v6  ;;  %v11038_v6 = vpack.c.bf16 %v3127_v61, %v3095_v37 }
 0x2b6   :  { %7227 = vmatprep.subr.bf16.mxu0 %v9453_v7  ;;  %v9466_v7 = vld [vmem:[#allocation8 + $0x480] ss:$8 sps:$4 sm:$0xff]  }
 0x2b7   :  { %6772 = vmatpush1.bf16.msra.mxu1 %v9448_v45  ;;  %v9474_v45 = vld [vmem:[#allocation8 + $0x494] ss:$8 sps:$4 sm:$0xff]  }
 0x2b8   :  { %6773 = vmatprep.subr.bf16.mxu1 %v9456_v5  ;;  %v2984_v5 = vpop.f32.mrb[137].mxu1 }
 0x2b9   :  { %7228 = vmatpush1.bf16.msra.mxu0 %v9451_v20  ;;  %v9469_v20 = vld [vmem:[#allocation8 + $0xb10] ss:$8 sps:$4 sm:$0xff]   ;;  %v2985_v15 = vadd.f32 %v2984_v5, %v11014_v27 }
 0x2ba   :  { %6751 = vmatmul.mubr.bf16.gmra.mrb[156].mxu1 %v11234_v41  ;;  %7229 = vmatprep.subr.bf16.mxu0 %v9459_v54  ;;  %v2986_v54 = vpop.f32.mrb[138].mxu1 }
 0x2bb   :  { %6774 = vmatpush1.bf16.msra.mxu1 %v9454_v26  ;;  %6793 = vmatprep.mubr.bf16.mxu1 %v11235_v52  ;;  %v3159_v26 = vmax.f32 %v2983_v56, 0.0  ;;  %v2987_v48 = vadd.f32 %v2986_v54, %v11005_v12  ;;  %v9489_v56 = vld [vmem:[#allocation8 + $0xb44] ss:$8 sps:$4 sm:$0xff]  }
 0x2bc   :  { %6775 = vmatprep.subr.bf16.mxu1 %v9462_v29  ;;  %v2988_v29 = vpop.f32.mrb[139].mxu1 }
 0x2bd   :  { %7230 = vmatpush1.bf16.msra.mxu0 %v9457_v17  ;;  %v3160_v17 = vmax.f32 %v2985_v15, 0.0  ;;  %v3191_v41 = vmax.f32 %v2987_v48, 0.0  ;;  %v2992_v37 = vpop.f32.mrb[140].mxu1  ;;  %v9487_v48 = vld [vmem:[#allocation8 + $0xb40] ss:$8 sps:$4 sm:$0xff]  }
 0x2be   :  { %7272 = vmatprep.subr.bf16.mxu0 %v9465_v3  ;;  %v2993_v52 = vadd.f32 %v2992_v37, %v11005_v12  ;;  %v2994_v61 = vpop.f32.mrb[141].mxu1  ;;  %v9504_v37 = vld [vmem:[#allocation8 + $0x4e4] ss:$8 sps:$4 sm:$0xff]  }
 0x2bf   :  { %6776 = vmatpush1.bf16.msra.mxu1 %v9460_v4  ;;  %v11048_v18 = vpack.c.bf16 %v3191_v41, %v3159_v26  ;;  %v9478_v4 = vld [vmem:[#allocation8 + $0x4a0] ss:$8 sps:$4 sm:$0xff]   ;;  %v2995_v57 = vadd.f32 %v2994_v61, %v11014_v27  ;;  %v9498_v41 = vld [vmem:[#allocation8 + $0x4d4] ss:$8 sps:$4 sm:$0xff]   ;;  %v9513_v61 = vld [vmem:[#allocation8 + $0xb84] ss:$8 sps:$4 sm:$0xff]  }
 0x2c0   :  { %7232 = vmatmul.mubr.bf16.vlgmr.msra.gmra.mrb[112].mxu0 %v10748_v10  ;;  %6777 = vmatprep.subr.bf16.mxu1 %v9468_v0  ;;  %v2989_v10 = vadd.f32 %v2988_v29, %v11014_v27  ;;  %v9486_v0 = vld [vmem:[#allocation8 + $0x4b4] ss:$8 sps:$4 sm:$0xff]  }
 0x2c1   :  { %7241 = vmatprep.mubr.bf16.mxu0 %v10770_v49  ;;  %7273 = vmatpush1.bf16.msra.mxu0 %v9463_v40  ;;  %v9475_v49 = vld [vmem:[#allocation8 + $0xb20] ss:$8 sps:$4 sm:$0xff]   ;;  %v11237_v40 = vld [vmem:[#allocation54_spill] sm:$0xff]  ;;  %v3224_v15 = vmax.f32 %v2995_v57, 0.0 }
 0x2c2   :  { %7274 = vmatprep.subr.bf16.mxu0 %v9471_v22  ;;  %v3192_v3 = vmax.f32 %v2989_v10, 0.0  ;;  %v2996_v22 = vpop.f32.mrb[142].mxu1  ;;  %v9490_v10 = vld [vmem:[#allocation8 + $0x4c0] ss:$8 sps:$4 sm:$0xff]  }
 0x2c3   :  { %6778 = vmatpush1.bf16.msra.mxu1 %v9466_v7  ;;  %v3223_v7 = vmax.f32 %v2993_v52, 0.0  ;;  %v2998_v5 = vpop.f32.mrb[143].mxu1  ;;  %v9507_v52 = vld [vmem:[#allocation8 + $0xb74] ss:$8 sps:$4 sm:$0xff]   ;;  %v9511_v57 = vld [vmem:[#allocation8 + $0xb80] ss:$8 sps:$4 sm:$0xff]  }
 0x2c4   :  { %6779 = vmatprep.subr.bf16.mxu1 %v9474_v45  ;;  %v11051_v42 = vpack.c.bf16 %v3192_v3, %v3160_v17  ;;  %v2997_v45 = vadd.f32 %v2996_v22, %v11005_v12  ;;  %v2999_v54 = vadd.f32 %v2998_v5, %v11014_v27  ;;  %v11238_v12 = vld [vmem:[#allocation53_spill] sm:$0xff]  ;;  %v9519_v22 = vld [vmem:[#allocation8 + $0xb94] ss:$8 sps:$4 sm:$0xff]  }
 0x2c5   :  { %7275 = vmatpush1.bf16.msra.mxu0 %v9469_v20  ;;  %v9484_v20 = vld [vmem:[#allocation8 + $0x4b0] ss:$8 sps:$4 sm:$0xff]  }
 0x2c6   :  { %7276 = vmatprep.subr.bf16.mxu0 %v9477_v36  ;;  %v9492_v36 = vld [vmem:[#allocation8 + $0x4c4] ss:$8 sps:$4 sm:$0xff]   ;;  %v3255_v26 = vmax.f32 %v2997_v45, 0.0  ;;  %v3256_v29 = vmax.f32 %v2999_v54, 0.0  ;;  %v9493_v27 = vld [vmem:[#allocation8 + $0xb50] ss:$8 sps:$4 sm:$0xff]  }
 0x2c7   :  { %6780 = vmatpush1.bf16.msra.mxu1 %v9472_v53  ;;  %v9495_v53 = vld [vmem:[#allocation8 + $0xb54] ss:$8 sps:$4 sm:$0xff]   ;;  %v9496_v3 = vld [vmem:[#allocation8 + $0x4d0] ss:$8 sps:$4 sm:$0xff]   ;;  %v9528_v54 = vld [vmem:[#allocation8 + $0x524] ss:$8 sps:$4 sm:$0xff]  }
 0x2c8   :  { %7242 = vmatmul.mubr.bf16.gmra.mrb[116].mxu0 %v11236_v38  ;;  %6781 = vmatprep.subr.bf16.mxu1 %v9480_v23  ;;  %v11058_v17 = vpack.c.bf16 %v3255_v26, %v3223_v7  ;;  %v11060_v23 = vpack.c.bf16 %v3256_v29, %v3224_v15  ;;  %v11239_v38 = vld [vmem:[#allocation55_spill] sm:$0xff]  ;;  %v9517_v45 = vld [vmem:[#allocation8 + $0xb90] ss:$8 sps:$4 sm:$0xff]  }
 0x2c9   :  { %7251 = vmatprep.mubr.bf16.mxu0 %v11237_v40  ;;  %7277 = vmatpush1.bf16.msra.mxu0 %v9475_v49  ;;  %v9501_v49 = vld [vmem:[#allocation8 + $0xb64] ss:$8 sps:$4 sm:$0xff]   ;;  %v9508_v40 = vld [vmem:[#allocation8 + $0x4f0] ss:$8 sps:$4 sm:$0xff]   ;;  %v9522_v7 = vld [vmem:[#allocation8 + $0x514] ss:$8 sps:$4 sm:$0xff]  }
 0x2ca   :  { %7278 = vmatprep.subr.bf16.mxu0 %v9483_v1  ;;  %v9499_v1 = vld [vmem:[#allocation8 + $0xb60] ss:$8 sps:$4 sm:$0xff]   ;;  %v11240_v5 = vld [vmem:[#allocation22_spill] sm:$0xff] }
 0x2cb   :  { %6782 = vmatpush1.bf16.msra.mxu1 %v9478_v4  ;;  %v9502_v4 = vld [vmem:[#allocation8 + $0x4e0] ss:$8 sps:$4 sm:$0xff]   ;;  %v9520_v15 = vld [vmem:[#allocation8 + $0x510] ss:$8 sps:$4 sm:$0xff]   ;;  %v9531_v26 = vld [vmem:[#allocation8 + $0xbb4] ss:$8 sps:$4 sm:$0xff]  }
 0x2cc   :  { %6783 = vmatprep.subr.bf16.mxu1 %v9486_v0  ;;  %v9510_v0 = vld [vmem:[#allocation8 + $0x4f4] ss:$8 sps:$4 sm:$0xff]  }
 0x2cd   :  { %7279 = vmatpush1.bf16.msra.mxu0 %v9481_v31  ;;  %v9516_v31 = vld [vmem:[#allocation8 + $0x504] ss:$8 sps:$4 sm:$0xff]   ;;  %v9534_v29 = vld [vmem:[#allocation8 + $0x534] ss:$8 sps:$4 sm:$0xff]  }
 0x2ce   :  { %7280 = vmatprep.subr.bf16.mxu0 %v9489_v56  ;;  %v9514_v56 = vld [vmem:[#allocation8 + $0x500] ss:$8 sps:$4 sm:$0xff]  }
 0x2cf   :  { %6784 = vmatpush1.bf16.msra.mxu1 %v9484_v20  ;;  %v11241_v20 = vld [vmem:[#allocation25_spill] sm:$0xff] }
 0x2d0   :  { %7252 = vmatmul.mubr.bf16.gmra.mrb[120].mxu0 %v11238_v12  ;;  %6785 = vmatprep.subr.bf16.mxu1 %v9492_v36  ;;  %v9523_v36 = vld [vmem:[#allocation8 + $0xba0] ss:$8 sps:$4 sm:$0xff]   ;;  %v9537_v12 = vld [vmem:[#allocation8 + $0xbc4] ss:$8 sps:$4 sm:$0xff]  }
 0x2d1   :  { %7261 = vmatprep.mubr.bf16.mxu0 %v10815_v35  ;;  %7281 = vmatpush1.bf16.msra.mxu0 %v9487_v48  ;;  %v9505_v35 = vld [vmem:[#allocation8 + $0xb70] ss:$8 sps:$4 sm:$0xff]   ;;  %v9526_v48 = vld [vmem:[#allocation8 + $0x520] ss:$8 sps:$4 sm:$0xff]  }
 0x2d2   :  { %7282 = vmatprep.subr.bf16.mxu0 %v9495_v53  ;;  %v9529_v53 = vld [vmem:[#allocation8 + $0xbb0] ss:$8 sps:$4 sm:$0xff]  }
 0x2d3   :  { %6786 = vmatpush1.bf16.msra.mxu1 %v9490_v10  ;;  %v11242_v10 = vld [vmem:[#allocation24_spill] sm:$0xff] }
 0x2d4   :  { %6787 = vmatprep.subr.bf16.mxu1 %v9498_v41  ;;  %v11243_v41 = vld [vmem:[#allocation27_spill] sm:$0xff] }
 0x2d5   :  { %7283 = vmatpush1.bf16.msra.mxu0 %v9493_v27  ;;  %v9532_v27 = vld [vmem:[#allocation8 + $0x530] ss:$8 sps:$4 sm:$0xff]  }
 0x2d6   :  { %7284 = vmatprep.subr.bf16.mxu0 %v9501_v49  ;;  %v9540_v49 = vld [vmem:[#allocation8 + $0x544] ss:$8 sps:$4 sm:$0xff]  }
 0x2d7   :  { %6788 = vmatpush1.bf16.msra.mxu1 %v9496_v3  ;;  %v9535_v3 = vld [vmem:[#allocation8 + $0xbc0] ss:$8 sps:$4 sm:$0xff]  }
 0x2d8   :  { %7262 = vmatmul.mubr.bf16.gmra.mrb[124].mxu0 %v11239_v38  ;;  %6789 = vmatprep.subr.bf16.mxu1 %v9504_v37  ;;  %v9543_v37 = vld [vmem:[#allocation8 + $0xbd4] ss:$8 sps:$4 sm:$0xff]  }
 0x2d9   :  { %7285 = vmatpush1.bf16.msra.mxu0 %v9499_v1  ;;  %7304 = vmatprep.mubr.bf16.mxu0 %v10912_v11  ;;  %v9525_v11 = vld [vmem:[#allocation8 + $0xba4] ss:$8 sps:$4 sm:$0xff]   ;;  %v9538_v1 = vld [vmem:[#allocation8 + $0x540] ss:$8 sps:$4 sm:$0xff]   ;;  %v11244_v38 = vld [vmem:[#allocation26_spill] sm:$0xff] }
 0x2da   :  { %7286 = vmatprep.subr.bf16.mxu0 %v9507_v52  ;;  %v9546_v52 = vld [vmem:[#allocation8 + $0x554] ss:$8 sps:$4 sm:$0xff]  }
 0x2db   :  { %6790 = vmatpush1.bf16.msra.mxu1 %v9502_v4  ;;  %v9541_v4 = vld [vmem:[#allocation8 + $0xbd0] ss:$8 sps:$4 sm:$0xff]  }
 0x2dc   :  { %6791 = vmatprep.subr.bf16.mxu1 %v9510_v0  ;;  %v9549_v0 = vld [vmem:[#allocation8 + $0xbe4] ss:$8 sps:$4 sm:$0xff]  }
 0x2dd   :  { %7287 = vmatpush1.bf16.msra.mxu0 %v9505_v35  ;;  %v11245_v35 = vld [vmem:[#allocation31_spill] sm:$0xff] }
 0x2de   :  { %7288 = vmatprep.subr.bf16.mxu0 %v9513_v61  ;;  %v9544_v61 = vld [vmem:[#allocation8 + $0x550] ss:$8 sps:$4 sm:$0xff]  }
 0x2df   :  { %6792 = vmatpush1.bf16.msra.mxu1 %v9508_v40  ;;  %v9552_v40 = vld [vmem:[#allocation8 + $0x564] ss:$8 sps:$4 sm:$0xff]  }
 0x2e0   :  { %6834 = vmatprep.subr.bf16.mxu1 %v9516_v31  ;;  %v9547_v31 = vld [vmem:[#allocation8 + $0xbe0] ss:$8 sps:$4 sm:$0xff]  }
 0x2e1   :  { %7289 = vmatpush1.bf16.msra.mxu0 %v9511_v57  ;;  %v9555_v57 = vld [vmem:[#allocation8 + $0xbf4] ss:$8 sps:$4 sm:$0xff]  }
 0x2e2   :  { %6794 = vmatmul.mubr.bf16.vlgmr.msra.gmra.mrb[144].mxu1 %v11240_v5  ;;  %7290 = vmatprep.subr.bf16.mxu0 %v9519_v22  ;;  %v9550_v22 = vld [vmem:[#allocation8 + $0x560] ss:$8 sps:$4 sm:$0xff]   ;;  %v9561_v5 = vld [vmem:[#allocation8 + $0xc04] ss:$8 sps:$4 sm:$0xff]  }
 0x2e3   :  { %6803 = vmatprep.mubr.bf16.mxu1 %v11241_v20  ;;  %6835 = vmatpush1.bf16.msra.mxu1 %v9514_v56  ;;  %v9558_v56 = vld [vmem:[#allocation8 + $0x574] ss:$8 sps:$4 sm:$0xff]   ;;  %v9556_v20 = vld [vmem:[#allocation8 + $0x570] ss:$8 sps:$4 sm:$0xff]  }
 0x2e4   :  { %6836 = vmatprep.subr.bf16.mxu1 %v9522_v7  ;;  %v9553_v7 = vld [vmem:[#allocation8 + $0xbf0] ss:$8 sps:$4 sm:$0xff]  }
 0x2e5   :  { %7291 = vmatpush1.bf16.msra.mxu0 %v9517_v45  ;;  %v11246_v45 = vld [vmem:[#allocation30_spill] sm:$0xff] }
 0x2e6   :  { %7292 = vmatprep.subr.bf16.mxu0 %v9525_v11  ;;  %v11247_v11 = vld [vmem:[#allocation41_spill] sm:$0xff] }
 0x2e7   :  { %6837 = vmatpush1.bf16.msra.mxu1 %v9520_v15  ;;  %v9564_v15 = vld [vmem:[#allocation8 + $0x584] ss:$8 sps:$4 sm:$0xff]  }
 0x2e8   :  { %6838 = vmatprep.subr.bf16.mxu1 %v9528_v54  ;;  %v9559_v54 = vld [vmem:[#allocation8 + $0xc00] ss:$8 sps:$4 sm:$0xff]  }
 0x2e9   :  { %7293 = vmatpush1.bf16.msra.mxu0 %v9523_v36  ;;  %v9567_v36 = vld [vmem:[#allocation8 + $0xc14] ss:$8 sps:$4 sm:$0xff]  }
 0x2ea   :  { %6804 = vmatmul.mubr.bf16.gmra.mrb[148].mxu1 %v11242_v10  ;;  %7294 = vmatprep.subr.bf16.mxu0 %v9531_v26  ;;  %v9562_v26 = vld [vmem:[#allocation8 + $0x580] ss:$8 sps:$4 sm:$0xff]   ;;  %v9568_v10 = vld [vmem:[#allocation8 + $0x590] ss:$8 sps:$4 sm:$0xff]  }
 0x2eb   :  { %6813 = vmatprep.mubr.bf16.mxu1 %v11243_v41  ;;  %6839 = vmatpush1.bf16.msra.mxu1 %v9526_v48  ;;  %v9570_v48 = vld [vmem:[#allocation8 + $0x594] ss:$8 sps:$4 sm:$0xff]   ;;  %v9571_v41 = vld [vmem:[#allocation8 + $0xc20] ss:$8 sps:$4 sm:$0xff]  }
 0x2ec   :  { %6840 = vmatprep.subr.bf16.mxu1 %v9534_v29  ;;  %v9565_v29 = vld [vmem:[#allocation8 + $0xc10] ss:$8 sps:$4 sm:$0xff]  }
 0x2ed   :  { %7295 = vmatpush1.bf16.msra.mxu0 %v9529_v53  ;;  %v9573_v53 = vld [vmem:[#allocation8 + $0xc24] ss:$8 sps:$4 sm:$0xff]  }
 0x2ee   :  { %7296 = vmatprep.subr.bf16.mxu0 %v9537_v12  ;;  %v9576_v12 = vld [vmem:[#allocation8 + $0x5a4] ss:$8 sps:$4 sm:$0xff]  }
 0x2ef   :  { %6841 = vmatpush1.bf16.msra.mxu1 %v9532_v27  ;;  %v9579_v27 = vld [vmem:[#allocation8 + $0xc34] ss:$8 sps:$4 sm:$0xff]  }
 0x2f0   :  { %6842 = vmatprep.subr.bf16.mxu1 %v9540_v49  ;;  %v9574_v49 = vld [vmem:[#allocation8 + $0x5a0] ss:$8 sps:$4 sm:$0xff]  }
 0x2f1   :  { %7297 = vmatpush1.bf16.msra.mxu0 %v9535_v3  ;;  %v9585_v3 = vld [vmem:[#allocation8 + $0xc44] ss:$8 sps:$4 sm:$0xff]  }
 0x2f2   :  { %6814 = vmatmul.mubr.bf16.gmra.mrb[152].mxu1 %v11244_v38  ;;  %7298 = vmatprep.subr.bf16.mxu0 %v9543_v37  ;;  %v9580_v37 = vld [vmem:[#allocation8 + $0x5b0] ss:$8 sps:$4 sm:$0xff]   ;;  %v9586_v38 = vld [vmem:[#allocation8 + $0x5c0] ss:$8 sps:$4 sm:$0xff]  }
 0x2f3   :  { %6823 = vmatprep.mubr.bf16.mxu1 %v11245_v35  ;;  %6843 = vmatpush1.bf16.msra.mxu1 %v9538_v1  ;;  %v9588_v1 = vld [vmem:[#allocation8 + $0x5c4] ss:$8 sps:$4 sm:$0xff]   ;;  %v9592_v35 = vld [vmem:[#allocation8 + $0x5d0] ss:$8 sps:$4 sm:$0xff]  }
 0x2f4   :  { %6844 = vmatprep.subr.bf16.mxu1 %v9546_v52  ;;  %v9583_v52 = vld [vmem:[#allocation8 + $0xc40] ss:$8 sps:$4 sm:$0xff]  }
 0x2f5   :  { %7299 = vmatpush1.bf16.msra.mxu0 %v9541_v4  ;;  %v9591_v4 = vld [vmem:[#allocation8 + $0xc54] ss:$8 sps:$4 sm:$0xff]  }
 0x2f6   :  { %7300 = vmatprep.subr.bf16.mxu0 %v9549_v0  ;;  %v9597_v0 = vld [vmem:[#allocation8 + $0xc64] ss:$8 sps:$4 sm:$0xff]  }
 0x2f7   :  { %6845 = vmatpush1.bf16.msra.mxu1 %v9544_v61  ;;  %v9600_v61 = vld [vmem:[#allocation8 + $0x5e4] ss:$8 sps:$4 sm:$0xff]  }
 0x2f8   :  { %6846 = vmatprep.subr.bf16.mxu1 %v9552_v40  ;;  %v9595_v40 = vld [vmem:[#allocation8 + $0xc60] ss:$8 sps:$4 sm:$0xff]  }
 0x2f9   :  { %7301 = vmatpush1.bf16.msra.mxu0 %v9547_v31  ;;  %v9603_v31 = vld [vmem:[#allocation8 + $0xc74] ss:$8 sps:$4 sm:$0xff]  }
 0x2fa   :  { %6824 = vmatmul.mubr.bf16.gmra.mrb[156].mxu1 %v11246_v45  ;;  %7302 = vmatprep.subr.bf16.mxu0 %v9555_v57  ;;  %v9598_v57 = vld [vmem:[#allocation8 + $0x5e0] ss:$8 sps:$4 sm:$0xff]  }
 0x2fb   :  { %6847 = vmatpush1.bf16.msra.mxu1 %v9550_v22  ;;  %6866 = vmatprep.mubr.bf16.mxu1 %v11247_v11  ;;  %v9609_v22 = vld [vmem:[#allocation8 + $0xc84] ss:$8 sps:$4 sm:$0xff]   ;;  %v9607_v45 = vld [vmem:[#allocation8 + $0xc80] ss:$8 sps:$4 sm:$0xff]  }
 0x2fc   :  { %6848 = vmatprep.subr.bf16.mxu1 %v9558_v56  ;;  %v9604_v56 = vld [vmem:[#allocation8 + $0x5f0] ss:$8 sps:$4 sm:$0xff]   ;;  %v9610_v11 = vld [vmem:[#allocation8 + $0x600] ss:$8 sps:$4 sm:$0xff]  }
 0x2fd   :  { %7303 = vmatpush1.bf16.msra.mxu0 %v9553_v7  ;;  %v9612_v7 = vld [vmem:[#allocation8 + $0x604] ss:$8 sps:$4 sm:$0xff]  }
 0x2fe   :  { %7345 = vmatprep.subr.bf16.mxu0 %v9561_v5  ;;  %v9615_v5 = vld [vmem:[#allocation8 + $0xc94] ss:$8 sps:$4 sm:$0xff]  }
 0x2ff   :  { %6849 = vmatpush1.bf16.msra.mxu1 %v9556_v20  ;;  %v9613_v20 = vld [vmem:[#allocation8 + $0xc90] ss:$8 sps:$4 sm:$0xff]  }
 0x300   :  { %7305 = vmatmul.mubr.bf16.vlgmr.msra.gmra.mrb[112].mxu0 %v10908_v59  ;;  %6850 = vmatprep.subr.bf16.mxu1 %v9564_v15  ;;  %v9582_v59 = vld [vmem:[#allocation8 + $0x5b4] ss:$8 sps:$4 sm:$0xff]   ;;  %v11248_v15 = vld [vmem:[#allocation40_spill] sm:$0xff] }
 0x301   :  { %7314 = vmatprep.mubr.bf16.mxu0 %v10930_v2  ;;  %7346 = vmatpush1.bf16.msra.mxu0 %v9559_v54  ;;  %v9577_v2 = vld [vmem:[#allocation8 + $0xc30] ss:$8 sps:$4 sm:$0xff]  }
 0x302   :  { %7347 = vmatprep.subr.bf16.mxu0 %v9567_v36  ;;  %v11249_v54 = vld [vmem:[#allocation45_spill] sm:$0xff] }
 0x303   :  { %6851 = vmatpush1.bf16.msra.mxu1 %v9562_v26  ;;  %v9616_v36 = vld [vmem:[#allocation8 + $0x610] ss:$8 sps:$4 sm:$0xff]   ;;  %v9624_v26 = vld [vmem:[#allocation8 + $0x624] ss:$8 sps:$4 sm:$0xff]  }
 0x304   :  { %6852 = vmatprep.subr.bf16.mxu1 %v9570_v48  ;;  %v9619_v48 = vld [vmem:[#allocation8 + $0xca0] ss:$8 sps:$4 sm:$0xff]  }
 0x305   :  { %7348 = vmatpush1.bf16.msra.mxu0 %v9565_v29  ;;  %v9627_v29 = vld [vmem:[#allocation8 + $0xcb4] ss:$8 sps:$4 sm:$0xff]  }
 0x306   :  { %7349 = vmatprep.subr.bf16.mxu0 %v9573_v53  ;;  %v9622_v53 = vld [vmem:[#allocation8 + $0x620] ss:$8 sps:$4 sm:$0xff]  }
 0x307   :  { %6853 = vmatpush1.bf16.msra.mxu1 %v9568_v10  ;;  %v9630_v10 = vld [vmem:[#allocation8 + $0x634] ss:$8 sps:$4 sm:$0xff]  }
 0x308   :  { %7315 = vmatmul.mubr.bf16.gmra.mrb[116].mxu0 %v10926_v62  ;;  %6854 = vmatprep.subr.bf16.mxu1 %v9576_v12  ;;  %v9594_v62 = vld [vmem:[#allocation8 + $0x5d4] ss:$8 sps:$4 sm:$0xff]   ;;  %v9625_v12 = vld [vmem:[#allocation8 + $0xcb0] ss:$8 sps:$4 sm:$0xff]  }
 0x309   :  { %7324 = vmatprep.mubr.bf16.mxu0 %v10948_v32  ;;  %7350 = vmatpush1.bf16.msra.mxu0 %v9571_v41  ;;  %v9589_v32 = vld [vmem:[#allocation8 + $0xc50] ss:$8 sps:$4 sm:$0xff]   ;;  %v11250_v41 = vld [vmem:[#allocation44_spill] sm:$0xff] }
 0x30a   :  { %7351 = vmatprep.subr.bf16.mxu0 %v9579_v27  ;;  %v9633_v27 = vld [vmem:[#allocation8 + $0xcc4] ss:$8 sps:$4 sm:$0xff]  }
 0x30b   :  { %6855 = vmatpush1.bf16.msra.mxu1 %v9574_v49  ;;  %v11251_v49 = vld [vmem:[#allocation49_spill] sm:$0xff] }
 0x30c   :  { %6856 = vmatprep.subr.bf16.mxu1 %v9582_v59  ;;  %v9628_v59 = vld [vmem:[#allocation8 + $0x630] ss:$8 sps:$4 sm:$0xff]  }
 0x30d   :  { %7352 = vmatpush1.bf16.msra.mxu0 %v9577_v2  ;;  %v9636_v2 = vld [vmem:[#allocation8 + $0x644] ss:$8 sps:$4 sm:$0xff]  }
 0x30e   :  { %7353 = vmatprep.subr.bf16.mxu0 %v9585_v3  ;;  %v9631_v3 = vld [vmem:[#allocation8 + $0xcc0] ss:$8 sps:$4 sm:$0xff]  }
 0x30f   :  { %6857 = vmatpush1.bf16.msra.mxu1 %v9580_v37  ;;  %v9639_v37 = vld [vmem:[#allocation8 + $0xcd4] ss:$8 sps:$4 sm:$0xff]  }
 0x310   :  { %7325 = vmatmul.mubr.bf16.gmra.mrb[120].mxu0 %v10944_v34  ;;  %6858 = vmatprep.subr.bf16.mxu1 %v9588_v1  ;;  %v9606_v34 = vld [vmem:[#allocation8 + $0x5f4] ss:$8 sps:$4 sm:$0xff]   ;;  %v9634_v1 = vld [vmem:[#allocation8 + $0x640] ss:$8 sps:$4 sm:$0xff]  }
 0x311   :  { %7334 = vmatprep.mubr.bf16.mxu0 %v10962_v43  ;;  %7354 = vmatpush1.bf16.msra.mxu0 %v9583_v52  ;;  %v9601_v43 = vld [vmem:[#allocation8 + $0xc70] ss:$8 sps:$4 sm:$0xff]   ;;  %v9642_v52 = vld [vmem:[#allocation8 + $0x654] ss:$8 sps:$4 sm:$0xff]  }
 0x312   :  { %7355 = vmatprep.subr.bf16.mxu0 %v9591_v4  ;;  %v9637_v4 = vld [vmem:[#allocation8 + $0xcd0] ss:$8 sps:$4 sm:$0xff]  }
 0x313   :  { %6859 = vmatpush1.bf16.msra.mxu1 %v9586_v38  ;;  %v11252_v38 = vld [vmem:[#allocation48_spill] sm:$0xff] }
 0x314   :  { %6860 = vmatprep.subr.bf16.mxu1 %v9594_v62  ;;  %v9645_v62 = vld [vmem:[#allocation8 + $0xce4] ss:$8 sps:$4 sm:$0xff]  }
 0x315   :  { %7356 = vmatpush1.bf16.msra.mxu0 %v9589_v32  ;;  %v11253_v32 = vld [vmem:[#allocation51_spill] sm:$0xff] }
 0x316   :  { %7357 = vmatprep.subr.bf16.mxu0 %v9597_v0  ;;  %v9640_v0 = vld [vmem:[#allocation8 + $0x650] ss:$8 sps:$4 sm:$0xff]  }
 0x317   :  { %6861 = vmatpush1.bf16.msra.mxu1 %v9592_v35  ;;  %v9648_v35 = vld [vmem:[#allocation8 + $0x664] ss:$8 sps:$4 sm:$0xff]  }
 0x318   :  { %7335 = vmatmul.mubr.bf16.gmra.mrb[124].mxu0 %v10960_v8  ;;  %6862 = vmatprep.subr.bf16.mxu1 %v9600_v61  ;;  %v9618_v8 = vld [vmem:[#allocation8 + $0x614] ss:$8 sps:$4 sm:$0xff]   ;;  %v9643_v61 = vld [vmem:[#allocation8 + $0xce0] ss:$8 sps:$4 sm:$0xff]  }
 0x319   :  { %7358 = vmatpush1.bf16.msra.mxu0 %v9595_v40  ;;  %7377 = vmatprep.mubr.bf16.mxu0 %v10833_v24  ;;  %v9621_v24 = vld [vmem:[#allocation8 + $0xca4] ss:$8 sps:$4 sm:$0xff]   ;;  %v9651_v40 = vld [vmem:[#allocation8 + $0xcf4] ss:$8 sps:$4 sm:$0xff]  }
 0x31a   :  { %7359 = vmatprep.subr.bf16.mxu0 %v9603_v31  ;;  %v9646_v31 = vld [vmem:[#allocation8 + $0x660] ss:$8 sps:$4 sm:$0xff]  }
 0x31b   :  { %6863 = vmatpush1.bf16.msra.mxu1 %v9598_v57  ;;  %v9654_v57 = vld [vmem:[#allocation8 + $0x674] ss:$8 sps:$4 sm:$0xff]  }
 0x31c   :  { %6864 = vmatprep.subr.bf16.mxu1 %v9606_v34  ;;  %v9649_v34 = vld [vmem:[#allocation8 + $0xcf0] ss:$8 sps:$4 sm:$0xff]  }
 0x31d   :  { %7360 = vmatpush1.bf16.msra.mxu0 %v9601_v43  ;;  %v11254_v43 = vld [vmem:[#allocation50_spill] sm:$0xff] }
 0x31e   :  { %7361 = vmatprep.subr.bf16.mxu0 %v9609_v22  ;;  %v9657_v22 = vld [vmem:[#allocation8 + $0xd04] ss:$8 sps:$4 sm:$0xff]  }
 0x31f   :  { %6865 = vmatpush1.bf16.msra.mxu1 %v9604_v56  ;;  %v11255_v56 = vld [vmem:[#allocation35_spill] sm:$0xff] }
 0x320   :  { %6907 = vmatprep.subr.bf16.mxu1 %v9612_v7  ;;  %v9652_v7 = vld [vmem:[#allocation8 + $0x670] ss:$8 sps:$4 sm:$0xff]  }
 0x321   :  { %7362 = vmatpush1.bf16.msra.mxu0 %v9607_v45  ;;  %v9660_v45 = vld [vmem:[#allocation8 + $0x684] ss:$8 sps:$4 sm:$0xff]  }
 0x322   :  { %6867 = vmatmul.mubr.bf16.vlgmr.msra.gmra.mrb[144].mxu1 %v11248_v15  ;;  %7363 = vmatprep.subr.bf16.mxu0 %v9615_v5  ;;  %v9655_v5 = vld [vmem:[#allocation8 + $0xd00] ss:$8 sps:$4 sm:$0xff]   ;;  %v9661_v15 = vld [vmem:[#allocation8 + $0xd10] ss:$8 sps:$4 sm:$0xff]  }
 0x323   :  { %6876 = vmatprep.mubr.bf16.mxu1 %v11249_v54  ;;  %6908 = vmatpush1.bf16.msra.mxu1 %v9610_v11  ;;  %v9663_v11 = vld [vmem:[#allocation8 + $0xd14] ss:$8 sps:$4 sm:$0xff]   ;;  %v9664_v54 = vld [vmem:[#allocation8 + $0x690] ss:$8 sps:$4 sm:$0xff]  }
 0x324   :  { %6909 = vmatprep.subr.bf16.mxu1 %v9618_v8  ;;  %v9658_v8 = vld [vmem:[#allocation8 + $0x680] ss:$8 sps:$4 sm:$0xff]  }
 0x325   :  { %7364 = vmatpush1.bf16.msra.mxu0 %v9613_v20  ;;  %v9666_v20 = vld [vmem:[#allocation8 + $0x694] ss:$8 sps:$4 sm:$0xff]  }
 0x326   :  { %7365 = vmatprep.subr.bf16.mxu0 %v9621_v24  ;;  %v9669_v24 = vld [vmem:[#allocation8 + $0xd24] ss:$8 sps:$4 sm:$0xff]  }
 0x327   :  { %6910 = vmatpush1.bf16.msra.mxu1 %v9616_v36  ;;  %v9672_v36 = vld [vmem:[#allocation8 + $0x6a4] ss:$8 sps:$4 sm:$0xff]  }
 0x328   :  { %6911 = vmatprep.subr.bf16.mxu1 %v9624_v26  ;;  %v9667_v26 = vld [vmem:[#allocation8 + $0xd20] ss:$8 sps:$4 sm:$0xff]  }
 0x329   :  { %7366 = vmatpush1.bf16.msra.mxu0 %v9619_v48  ;;  %v9675_v48 = vld [vmem:[#allocation8 + $0xd34] ss:$8 sps:$4 sm:$0xff]  }
 0x32a   :  { %6877 = vmatmul.mubr.bf16.gmra.mrb[148].mxu1 %v11250_v41  ;;  %7367 = vmatprep.subr.bf16.mxu0 %v9627_v29  ;;  %v9670_v29 = vld [vmem:[#allocation8 + $0x6a0] ss:$8 sps:$4 sm:$0xff]  }
 0x32b   :  { %6886 = vmatprep.mubr.bf16.mxu1 %v11251_v49  ;;  %6912 = vmatpush1.bf16.msra.mxu1 %v9622_v53  ;;  %v9681_v53 = vld [vmem:[#allocation8 + $0xd44] ss:$8 sps:$4 sm:$0xff]   ;;  %v9679_v41 = vld [vmem:[#allocation8 + $0xd40] ss:$8 sps:$4 sm:$0xff]  }
 0x32c   :  { %6913 = vmatprep.subr.bf16.mxu1 %v9630_v10  ;;  %v9676_v10 = vld [vmem:[#allocation8 + $0x6b0] ss:$8 sps:$4 sm:$0xff]   ;;  %v9682_v49 = vld [vmem:[#allocation8 + $0x6c0] ss:$8 sps:$4 sm:$0xff]  }
 0x32d   :  { %7368 = vmatpush1.bf16.msra.mxu0 %v9625_v12  ;;  %v9684_v12 = vld [vmem:[#allocation8 + $0x6c4] ss:$8 sps:$4 sm:$0xff]  }
 0x32e   :  { %7369 = vmatprep.subr.bf16.mxu0 %v9633_v27  ;;  %v9687_v27 = vld [vmem:[#allocation8 + $0xd54] ss:$8 sps:$4 sm:$0xff]  }
 0x32f   :  { %6914 = vmatpush1.bf16.msra.mxu1 %v9628_v59  ;;  %v9693_v59 = vld [vmem:[#allocation8 + $0xd64] ss:$8 sps:$4 sm:$0xff]  }
 0x330   :  { %6915 = vmatprep.subr.bf16.mxu1 %v9636_v2  ;;  %v9688_v2 = vld [vmem:[#allocation8 + $0x6d0] ss:$8 sps:$4 sm:$0xff]  }
 0x331   :  { %7370 = vmatpush1.bf16.msra.mxu0 %v9631_v3  ;;  %v9696_v3 = vld [vmem:[#allocation8 + $0x6e4] ss:$8 sps:$4 sm:$0xff]  }
 0x332   :  { %6887 = vmatmul.mubr.bf16.gmra.mrb[152].mxu1 %v11252_v38  ;;  %7371 = vmatprep.subr.bf16.mxu0 %v9639_v37  ;;  %v9691_v37 = vld [vmem:[#allocation8 + $0xd60] ss:$8 sps:$4 sm:$0xff]   ;;  %v9705_v38 = vld [vmem:[#allocation8 + $0xd84] ss:$8 sps:$4 sm:$0xff]  }
 0x333   :  { %6896 = vmatprep.mubr.bf16.mxu1 %v11253_v32  ;;  %6916 = vmatpush1.bf16.msra.mxu1 %v9634_v1  ;;  %v9699_v1 = vld [vmem:[#allocation8 + $0xd74] ss:$8 sps:$4 sm:$0xff]   ;;  %v9703_v32 = vld [vmem:[#allocation8 + $0xd80] ss:$8 sps:$4 sm:$0xff]  }
 0x334   :  { %6917 = vmatprep.subr.bf16.mxu1 %v9642_v52  ;;  %v9694_v52 = vld [vmem:[#allocation8 + $0x6e0] ss:$8 sps:$4 sm:$0xff]  }
 0x335   :  { %7372 = vmatpush1.bf16.msra.mxu0 %v9637_v4  ;;  %v11256_v4 = vld [vmem:[#allocation56_spill] sm:$0xff] }
 0x336   :  { %7373 = vmatprep.subr.bf16.mxu0 %v9645_v62  ;;  %v9700_v62 = vld [vmem:[#allocation8 + $0x6f0] ss:$8 sps:$4 sm:$0xff]  }
 0x337   :  { %6918 = vmatpush1.bf16.msra.mxu1 %v9640_v0  ;;  %v9708_v0 = vld [vmem:[#allocation8 + $0xd94] ss:$8 sps:$4 sm:$0xff]  }
 0x338   :  { %6919 = vmatprep.subr.bf16.mxu1 %v9648_v35  ;;  %v9706_v35 = vld [vmem:[#allocation8 + $0xd90] ss:$8 sps:$4 sm:$0xff]  }
 0x339   :  { %7374 = vmatpush1.bf16.msra.mxu0 %v9643_v61  ;;  %v11257_v61 = vld [vmem:[#allocation34_spill] sm:$0xff] }
 0x33a   :  { %6897 = vmatmul.mubr.bf16.gmra.mrb[156].mxu1 %v11254_v43  ;;  %7375 = vmatprep.subr.bf16.mxu0 %v9651_v40  ;;  %v9711_v40 = vld [vmem:[#allocation8 + $0xda4] ss:$8 sps:$4 sm:$0xff]   ;;  %v11259_v43 = vld [vmem:[#allocation38_spill] sm:$0xff] }
 0x33b   :  { %6920 = vmatpush1.bf16.msra.mxu1 %v9646_v31  ;;  %6939 = vmatprep.mubr.bf16.mxu1 %v11255_v56  ;;  %v11258_v31 = vld [vmem:[#allocation39_spill] sm:$0xff] }
 0x33c   :  { %6921 = vmatprep.subr.bf16.mxu1 %v9654_v57  ;;  %v9714_v57 = vld [vmem:[#allocation8 + $0xdb4] ss:$8 sps:$4 sm:$0xff]  }
 0x33d   :  { %7376 = vmatpush1.bf16.msra.mxu0 %v9649_v34  ;;  %v9712_v34 = vld [vmem:[#allocation8 + $0xdb0] ss:$8 sps:$4 sm:$0xff]   ;;  %v11260_v56 = vld [vmem:[#allocation43_spill] sm:$0xff] }
 0x33e   :  { %7418 = vmatprep.subr.bf16.mxu0 %v9657_v22  ;;  %v9717_v22 = vld [vmem:[#allocation8 + $0xdc4] ss:$8 sps:$4 sm:$0xff]  }
 0x33f   :  { %6922 = vmatpush1.bf16.msra.mxu1 %v9652_v7  ;;  %v9715_v7 = vld [vmem:[#allocation8 + $0xdc0] ss:$8 sps:$4 sm:$0xff]  }
 0x340   :  { %7378 = vmatmul.mubr.bf16.vlgmr.msra.gmra.mrb[112].mxu0 %v10830_v39  ;;  %6923 = vmatprep.subr.bf16.mxu1 %v9660_v45  ;;  %v9678_v39 = vld [vmem:[#allocation8 + $0x6b4] ss:$8 sps:$4 sm:$0xff]  }
 0x341   :  { %7387 = vmatprep.mubr.bf16.mxu0 %v10850_v9  ;;  %7419 = vmatpush1.bf16.msra.mxu0 %v9655_v5  ;;  %v9673_v9 = vld [vmem:[#allocation8 + $0xd30] ss:$8 sps:$4 sm:$0xff]   ;;  %v9720_v45 = vld [vmem:[#allocation8 + $0xdd4] ss:$8 sps:$4 sm:$0xff]  }
 0x342   :  { %7420 = vmatprep.subr.bf16.mxu0 %v9663_v11  ;;  %v9718_v5 = vld [vmem:[#allocation8 + $0xdd0] ss:$8 sps:$4 sm:$0xff]  }
 0x343   :  { %6924 = vmatpush1.bf16.msra.mxu1 %v9658_v8  ;;  %v11261_v11 = vld [vmem:[#allocation42_spill] sm:$0xff]  ;;  %v9723_v8 = vld [vmem:[#allocation8 + $0xde4] ss:$8 sps:$4 sm:$0xff]  }
 0x344   :  { %6925 = vmatprep.subr.bf16.mxu1 %v9666_v20  ;;  %v11262_v20 = vld [vmem:[#allocation47_spill] sm:$0xff] }
 0x345   :  { %7421 = vmatpush1.bf16.msra.mxu0 %v9661_v15  ;;  %v9721_v15 = vld [vmem:[#allocation8 + $0xde0] ss:$8 sps:$4 sm:$0xff]  }
 0x346   :  { %7422 = vmatprep.subr.bf16.mxu0 %v9669_v24  ;;  %v9726_v24 = vld [vmem:[#allocation8 + $0xdf4] ss:$8 sps:$4 sm:$0xff]  }
 0x347   :  { %6926 = vmatpush1.bf16.msra.mxu1 %v9664_v54  ;;  %v9724_v54 = vld [vmem:[#allocation8 + $0xdf0] ss:$8 sps:$4 sm:$0xff]  }
 0x348   :  { %7388 = vmatmul.mubr.bf16.gmra.mrb[116].mxu0 %v10848_v33  ;;  %6927 = vmatprep.subr.bf16.mxu1 %v9672_v36  ;;  %v9690_v33 = vld [vmem:[#allocation8 + $0x6d4] ss:$8 sps:$4 sm:$0xff]  }
 0x349   :  { %7397 = vmatprep.mubr.bf16.mxu0 %v10860_v14  ;;  %7423 = vmatpush1.bf16.msra.mxu0 %v9667_v26  ;;  %v9685_v14 = vld [vmem:[#allocation8 + $0xd50] ss:$8 sps:$4 sm:$0xff]   ;;  %v9729_v26 = vld [vmem:[#allocation8 + $0xe04] ss:$8 sps:$4 sm:$0xff]  }
 0x34a   :  { %7424 = vmatprep.subr.bf16.mxu0 %v9675_v48  ;;  %v11263_v36 = vld [vmem:[#allocation46_spill] sm:$0xff]  ;;  %v9727_v48 = vld [vmem:[#allocation8 + $0xe00] ss:$8 sps:$4 sm:$0xff]  }
 0x34b   :  { %6928 = vmatpush1.bf16.msra.mxu1 %v9670_v29  ;;  %v9732_v29 = vld [vmem:[#allocation8 + $0xe14] ss:$8 sps:$4 sm:$0xff]  }
 0x34c   :  { %6929 = vmatprep.subr.bf16.mxu1 %v9678_v39  ;;  %v9730_v39 = vld [vmem:[#allocation8 + $0xe10] ss:$8 sps:$4 sm:$0xff]  }
 0x34d   :  { %7425 = vmatpush1.bf16.msra.mxu0 %v9673_v9  ;;  %v9735_v9 = vld [vmem:[#allocation8 + $0xe24] ss:$8 sps:$4 sm:$0xff]  }
 0x34e   :  { %7426 = vmatprep.subr.bf16.mxu0 %v9681_v53  ;;  %v9733_v53 = vld [vmem:[#allocation8 + $0xe20] ss:$8 sps:$4 sm:$0xff]  }
 0x34f   :  { %6930 = vmatpush1.bf16.msra.mxu1 %v9676_v10  ;;  %v9738_v10 = vld [vmem:[#allocation8 + $0xe34] ss:$8 sps:$4 sm:$0xff]  }
 0x350   :  { %7398 = vmatmul.mubr.bf16.gmra.mrb[120].mxu0 %v10858_v55  ;;  %6931 = vmatprep.subr.bf16.mxu1 %v9684_v12  ;;  %v9702_v55 = vld [vmem:[#allocation8 + $0x6f4] ss:$8 sps:$4 sm:$0xff]   ;;  %v9736_v12 = vld [vmem:[#allocation8 + $0xe30] ss:$8 sps:$4 sm:$0xff]  }
 0x351   :  { %7407 = vmatprep.mubr.bf16.mxu0 %v10878_v58  ;;  %7427 = vmatpush1.bf16.msra.mxu0 %v9679_v41  ;;  %v9697_v58 = vld [vmem:[#allocation8 + $0xd70] ss:$8 sps:$4 sm:$0xff]   ;;  %v9741_v41 = vld [vmem:[#allocation8 + $0xe44] ss:$8 sps:$4 sm:$0xff]  }
 0x352   :  { %7428 = vmatprep.subr.bf16.mxu0 %v9687_v27  ;;  %v9742_v27 = vld [vmem:[#allocation8 + $0xe50] ss:$8 sps:$4 sm:$0xff]  }
 0x353   :  { %6932 = vmatpush1.bf16.msra.mxu1 %v9682_v49  ;;  %v9747_v49 = vld [vmem:[#allocation8 + $0xe64] ss:$8 sps:$4 sm:$0xff]  }
 0x354   :  { %6933 = vmatprep.subr.bf16.mxu1 %v9690_v33  ;;  %v11264_v33 = vld [vmem:[#allocation58_spill] sm:$0xff] }
 0x355   :  { %7429 = vmatpush1.bf16.msra.mxu0 %v9685_v14  ;;  %v9748_v14 = vld [vmem:[#allocation8 + $0xe70] ss:$8 sps:$4 sm:$0xff]  }
 0x356   :  { %7430 = vmatprep.subr.bf16.mxu0 %v9693_v59  ;;  %v9753_v59 = vld [vmem:[#allocation8 + $0xe84] ss:$8 sps:$4 sm:$0xff]  }
 0x357   :  { %6934 = vmatpush1.bf16.msra.mxu1 %v9688_v2  ;;  %v9754_v2 = vld [vmem:[#allocation8 + $0xe90] ss:$8 sps:$4 sm:$0xff]  }
 0x358   :  { %7408 = vmatmul.mubr.bf16.gmra.mrb[124].mxu0 %v11256_v4  ;;  %6935 = vmatprep.subr.bf16.mxu1 %v9696_v3  ;;  %v9759_v3 = vld [vmem:[#allocation8 + $0xea4] ss:$8 sps:$4 sm:$0xff]   ;;  %v9763_v4 = vld [vmem:[#allocation8 + $0xec0] ss:$8 sps:$4 sm:$0xff]  }
 0x359   :  { %7431 = vmatpush1.bf16.msra.mxu0 %v9691_v37  ;;  %7450 = vmatprep.mubr.bf16.mxu0 %v10977_v21  ;;  %v9709_v21 = vld [vmem:[#allocation8 + $0xda0] ss:$8 sps:$4 sm:$0xff]  }
 0x35a   :  { %7432 = vmatprep.subr.bf16.mxu0 %v9699_v1  ;;  %v9757_v37 = vld [vmem:[#allocation8 + $0xea0] ss:$8 sps:$4 sm:$0xff]   ;;  %v9762_v1 = vld [vmem:[#allocation8 + $0xeb4] ss:$8 sps:$4 sm:$0xff]  }
 0x35b   :  { %6936 = vmatpush1.bf16.msra.mxu1 %v9694_v52  ;;  %v9765_v52 = vld [vmem:[#allocation8 + $0xec4] ss:$8 sps:$4 sm:$0xff]  }
 0x35c   :  { %6937 = vmatprep.subr.bf16.mxu1 %v9702_v55  ;;  %v9768_v55 = vld [vmem:[#allocation8 + $0xed4] ss:$8 sps:$4 sm:$0xff]  }
 0x35d   :  { %7433 = vmatpush1.bf16.msra.mxu0 %v9697_v58  ;;  %v9766_v58 = vld [vmem:[#allocation8 + $0xed0] ss:$8 sps:$4 sm:$0xff]  }
 0x35e   :  { %7434 = vmatprep.subr.bf16.mxu0 %v9705_v38  ;;  %v9771_v38 = vld [vmem:[#allocation8 + $0xee4] ss:$8 sps:$4 sm:$0xff]  }
 0x35f   :  { %6938 = vmatpush1.bf16.msra.mxu1 %v9700_v62  ;;  %v9769_v62 = vld [vmem:[#allocation8 + $0xee0] ss:$8 sps:$4 sm:$0xff]  }
 0x361   :  { %7435 = vmatpush1.bf16.msra.mxu0 %v9703_v32  ;;  %v9774_v32 = vld [vmem:[#allocation8 + $0xef4] ss:$8 sps:$4 sm:$0xff]  }
 0x362   :  { %6940 = vmatmul.mubr.bf16.vlgmr.msra.gmra.mrb[144].mxu1 %v11257_v61  ;;  %7436 = vmatprep.subr.bf16.mxu0 %v9708_v0  ;;  %v9772_v0 = vld [vmem:[#allocation8 + $0xef0] ss:$8 sps:$4 sm:$0xff]   ;;  %v9775_v61 = vld [vmem:[#allocation8 + $0xf00] ss:$8 sps:$4 sm:$0xff]  }
 0x363   :  { %6949 = vmatprep.mubr.bf16.mxu1 %v11258_v31  ;;  %v11265_v31 = vld [vmem:[#allocation57_spill] sm:$0xff] }
 0x365   :  { %7437 = vmatpush1.bf16.msra.mxu0 %v9706_v35  ;;  %v9777_v35 = vld [vmem:[#allocation8 + $0xf04] ss:$8 sps:$4 sm:$0xff]  }
 0x366   :  { %7438 = vmatprep.subr.bf16.mxu0 %v9711_v40  ;;  %v9780_v40 = vld [vmem:[#allocation8 + $0xf14] ss:$8 sps:$4 sm:$0xff]  }
 0x369   :  { %7439 = vmatpush1.bf16.msra.mxu0 %v9709_v21  ;;  %v9778_v21 = vld [vmem:[#allocation8 + $0xf10] ss:$8 sps:$4 sm:$0xff]  }
 0x36a   :  { %6950 = vmatmul.mubr.bf16.gmra.mrb[148].mxu1 %v11259_v43  ;;  %7440 = vmatprep.subr.bf16.mxu0 %v9714_v57  ;;  %v9783_v57 = vld [vmem:[#allocation8 + $0xf24] ss:$8 sps:$4 sm:$0xff]   ;;  %v9786_v43 = vld [vmem:[#allocation8 + $0xf34] ss:$8 sps:$4 sm:$0xff]  }
 0x36b   :  { %6959 = vmatprep.mubr.bf16.mxu1 %v11260_v56  ;;  %v11267_v56 = vld [vmem:[#allocation61_spill] sm:$0xff] }
 0x36d   :  { %7441 = vmatpush1.bf16.msra.mxu0 %v9712_v34  ;;  %v9781_v34 = vld [vmem:[#allocation8 + $0xf20] ss:$8 sps:$4 sm:$0xff]  }
 0x36e   :  { %7442 = vmatprep.subr.bf16.mxu0 %v9717_v22  ;;  %v11266_v22 = vld [vmem:[#allocation59_spill] sm:$0xff] }
 0x371   :  { %7443 = vmatpush1.bf16.msra.mxu0 %v9715_v7  ;;  %v9784_v7 = vld [vmem:[#allocation8 + $0xf30] ss:$8 sps:$4 sm:$0xff]  }
 0x372   :  { %6960 = vmatmul.mubr.bf16.gmra.mrb[152].mxu1 %v11261_v11  ;;  %7444 = vmatprep.subr.bf16.mxu0 %v9720_v45  ;;  %v9789_v45 = vld [vmem:[#allocation8 + $0xf44] ss:$8 sps:$4 sm:$0xff]  }
 0x373   :  { %6969 = vmatprep.mubr.bf16.mxu1 %v11262_v20  ;;  %v11268_v11 = vld [vmem:[#allocation60_spill] sm:$0xff] }
 0x374   :  { %v9823_v20 = vld [vmem:[#allocation11 + $0x40] sm:$0xff]  }
 0x375   :  { %7445 = vmatpush1.bf16.msra.mxu0 %v9718_v5  ;;  %v9787_v5 = vld [vmem:[#allocation8 + $0xf40] ss:$8 sps:$4 sm:$0xff]   ;;  %8745 = vmatprep.subr.bf16.mxu1 %v9823_v20 }
 0x376   :  { %7446 = vmatprep.subr.bf16.mxu0 %v9723_v8  ;;  %v9790_v8 = vld [vmem:[#allocation8 + $0xf50] ss:$8 sps:$4 sm:$0xff]  }
 0x379   :  { %7447 = vmatpush1.bf16.msra.mxu0 %v9721_v15  ;;  %v9824_v15 = vld [vmem:[#allocation11] sm:$0xff]  }
 0x37a   :  { %6970 = vmatmul.mubr.bf16.gmra.mrb[156].mxu1 %v11263_v36  ;;  %7448 = vmatprep.subr.bf16.mxu0 %v9726_v24  ;;  %v9825_v24 = vld [vmem:[#allocation11 + $0x48] sm:$0xff]  }
 0x37b   :  { %8746 = vmatpush3.bf16.msra.mxu1 %v9824_v15  ;;  %v9826_v36 = vld [vmem:[#allocation11 + $0x8] sm:$0xff]  }
 0x37c   :  { %8747 = vmatprep.subr.bf16.mxu1 %v9825_v24 }
 0x37d   :  { %7449 = vmatpush1.bf16.msra.mxu0 %v9724_v54  ;;  %v9795_v54 = vld [vmem:[#allocation8 + $0xf64] ss:$8 sps:$4 sm:$0xff]  }
 0x37e   :  { %7491 = vmatprep.subr.bf16.mxu0 %v9729_v26  ;;  %v9793_v26 = vld [vmem:[#allocation8 + $0xf60] ss:$8 sps:$4 sm:$0xff]  }
 0x37f   :  { %8748 = vmatpush3.bf16.msra.mxu1 %v9826_v36 }
 0x380   :  { %7451 = vmatmul.mubr.bf16.vlgmr.msra.gmra.mrb[112].mxu0 %v10974_v51  ;;  %v9739_v51 = vld [vmem:[#allocation8 + $0xe40] ss:$8 sps:$4 sm:$0xff]  }
 0x381   :  { %7460 = vmatprep.mubr.bf16.mxu0 %v10987_v46  ;;  %7492 = vmatpush1.bf16.msra.mxu0 %v9727_v48  ;;  %v9744_v46 = vld [vmem:[#allocation8 + $0xe54] ss:$8 sps:$4 sm:$0xff]  }
 0x382   :  { %7493 = vmatprep.subr.bf16.mxu0 %v9732_v29  ;;  %v9798_v48 = vld [vmem:[#allocation8 + $0xf74] ss:$8 sps:$4 sm:$0xff]  }
 0x383   :  { %v9827_v29 = vld [vmem:[#allocation11 + $0x50] sm:$0xff]  }
 0x384   :  { %8749 = vmatprep.subr.bf16.mxu1 %v9827_v29 }
 0x385   :  { %7494 = vmatpush1.bf16.msra.mxu0 %v9730_v39  ;;  %v9828_v39 = vld [vmem:[#allocation11 + $0x10] sm:$0xff]  }
 0x386   :  { %7495 = vmatprep.subr.bf16.mxu0 %v9735_v9  ;;  %v9829_v9 = vld [vmem:[#allocation11 + $0x58] sm:$0xff]   ;;  %8750 = vmatpush3.bf16.msra.mxu1 %v9828_v39 }
 0x387   :  { %8751 = vmatprep.subr.bf16.mxu1 %v9829_v9 }
 0x388   :  { %7461 = vmatmul.mubr.bf16.gmra.mrb[116].mxu0 %v10984_v63  ;;  %v9745_v63 = vld [vmem:[#allocation8 + $0xe60] ss:$8 sps:$4 sm:$0xff]  }
 0x389   :  { %7470 = vmatprep.mubr.bf16.mxu0 %v10997_v16  ;;  %7496 = vmatpush1.bf16.msra.mxu0 %v9733_v53  ;;  %v9750_v16 = vld [vmem:[#allocation8 + $0xe74] ss:$8 sps:$4 sm:$0xff]   ;;  %v9801_v53 = vld [vmem:[#allocation8 + $0xf84] ss:$8 sps:$4 sm:$0xff]  }
 0x38a   :  { %7497 = vmatprep.subr.bf16.mxu0 %v9738_v10  ;;  %v9830_v10 = vld [vmem:[#allocation11 + $0x18] sm:$0xff]  }
 0x38b   :  { %8752 = vmatpush3.bf16.msra.mxu1 %v9830_v10 }
 0x38d   :  { %7498 = vmatpush1.bf16.msra.mxu0 %v9736_v12  ;;  %v9799_v12 = vld [vmem:[#allocation8 + $0xf80] ss:$8 sps:$4 sm:$0xff]  }
 0x38e   :  { %7499 = vmatprep.subr.bf16.mxu0 %v9741_v41  ;;  %v9831_v41 = vld [vmem:[#allocation11 + $0x60] sm:$0xff]  }
 0x38f   :  { %8753 = vmatprep.subr.bf16.mxu1 %v9831_v41 }
 0x390   :  { %7471 = vmatmul.mubr.bf16.gmra.mrb[120].mxu0 %v10994_v47  ;;  %v9751_v47 = vld [vmem:[#allocation8 + $0xe80] ss:$8 sps:$4 sm:$0xff]  }
 0x391   :  { %7480 = vmatprep.mubr.bf16.mxu0 %v11009_v25  ;;  %7500 = vmatpush1.bf16.msra.mxu0 %v9739_v51  ;;  %v9756_v25 = vld [vmem:[#allocation8 + $0xe94] ss:$8 sps:$4 sm:$0xff]  }
 0x392   :  { %7501 = vmatprep.subr.bf16.mxu0 %v9744_v46  ;;  %v9804_v51 = vld [vmem:[#allocation8 + $0xf94] ss:$8 sps:$4 sm:$0xff]   ;;  %v9802_v46 = vld [vmem:[#allocation8 + $0xf90] ss:$8 sps:$4 sm:$0xff]  }
 0x395   :  { %7502 = vmatpush1.bf16.msra.mxu0 %v9742_v27  ;;  %v9833_v27 = vld [vmem:[#allocation11 + $0x68] sm:$0xff]  }
 0x396   :  { %7503 = vmatprep.subr.bf16.mxu0 %v9747_v49  ;;  %v9805_v49 = vld [vmem:[#allocation8 + $0xfa0] ss:$8 sps:$4 sm:$0xff]  }
 0x398   :  { %7481 = vmatmul.mubr.bf16.gmra.mrb[124].mxu0 %v11007_v19  ;;  %v9760_v19 = vld [vmem:[#allocation8 + $0xeb0] ss:$8 sps:$4 sm:$0xff]  }
 0x399   :  { %7504 = vmatpush1.bf16.msra.mxu0 %v9745_v63  ;;  %7523 = vmatprep.mubr.bf16.mxu0 %v11264_v33  ;;  %v9810_v63 = vld [vmem:[#allocation8 + $0xfb4] ss:$8 sps:$4 sm:$0xff]   ;;  %v9813_v33 = vld [vmem:[#allocation8 + $0xfc4] ss:$8 sps:$4 sm:$0xff]  }
 0x39a   :  { %7505 = vmatprep.subr.bf16.mxu0 %v9750_v16  ;;  %v9808_v16 = vld [vmem:[#allocation8 + $0xfb0] ss:$8 sps:$4 sm:$0xff]  }
 0x39d   :  { %7506 = vmatpush1.bf16.msra.mxu0 %v9748_v14  ;;  %v9811_v14 = vld [vmem:[#allocation8 + $0xfc0] ss:$8 sps:$4 sm:$0xff]  }
 0x39e   :  { %7507 = vmatprep.subr.bf16.mxu0 %v9753_v59  ;;  %v9816_v59 = vld [vmem:[#allocation8 + $0xfd4] ss:$8 sps:$4 sm:$0xff]  }
 0x3a1   :  { %7508 = vmatpush1.bf16.msra.mxu0 %v9751_v47  ;;  %v9814_v47 = vld [vmem:[#allocation8 + $0xfd0] ss:$8 sps:$4 sm:$0xff]  }
 0x3a2   :  { %7509 = vmatprep.subr.bf16.mxu0 %v9756_v25  ;;  %v9819_v25 = vld [vmem:[#allocation8 + $0xfe4] ss:$8 sps:$4 sm:$0xff]  }
 0x3a5   :  { %7510 = vmatpush1.bf16.msra.mxu0 %v9754_v2  ;;  %v9817_v2 = vld [vmem:[#allocation8 + $0xfe0] ss:$8 sps:$4 sm:$0xff]  }
 0x3a6   :  { %7511 = vmatprep.subr.bf16.mxu0 %v9759_v3  ;;  %v9822_v3 = vld [vmem:[#allocation8 + $0xff4] ss:$8 sps:$4 sm:$0xff]  }
 0x3a9   :  { %7512 = vmatpush1.bf16.msra.mxu0 %v9757_v37  ;;  %v9820_v37 = vld [vmem:[#allocation8 + $0xff0] ss:$8 sps:$4 sm:$0xff]  }
 0x3aa   :  { %7513 = vmatprep.subr.bf16.mxu0 %v9762_v1 }
 0x3ad   :  { %7514 = vmatpush1.bf16.msra.mxu0 %v9760_v19 }
 0x3ae   :  { %7515 = vmatprep.subr.bf16.mxu0 %v9765_v52 }
 0x3b1   :  { %7516 = vmatpush1.bf16.msra.mxu0 %v9763_v4 }
 0x3b2   :  { %7517 = vmatprep.subr.bf16.mxu0 %v9768_v55 }
 0x3b5   :  { %7518 = vmatpush1.bf16.msra.mxu0 %v9766_v58 }
 0x3b6   :  { %7519 = vmatprep.subr.bf16.mxu0 %v9771_v38 }
 0x3b9   :  { %7520 = vmatpush1.bf16.msra.mxu0 %v9769_v62 }
 0x3ba   :  { %7521 = vmatprep.subr.bf16.mxu0 %v9774_v32 }
 0x3bd   :  { %7522 = vmatpush1.bf16.msra.mxu0 %v9772_v0 }
 0x3be   :  { %7564 = vmatprep.subr.bf16.mxu0 %v9777_v35  ;;  %v9835_v35 = vld [vmem:[#allocation11 + $0x70] sm:$0xff]  }
 0x3c0   :  { %7524 = vmatmul.mubr.bf16.vlgmr.msra.gmra.mrb[112].mxu0 %v11265_v31  ;;  %v9838_v31 = vld [vmem:[#allocation11 + $0x38] sm:$0xff]  }
 0x3c1   :  { %7533 = vmatprep.mubr.bf16.mxu0 %v10910_v30  ;;  %7565 = vmatpush1.bf16.msra.mxu0 %v9775_v61  ;;  %v9792_v30 = vld [vmem:[#allocation8 + $0xf54] ss:$8 sps:$4 sm:$0xff]  }
 0x3c2   :  { %7566 = vmatprep.subr.bf16.mxu0 %v9780_v40  ;;  %v9836_v61 = vld [vmem:[#allocation11 + $0x30] sm:$0xff]   ;;  %v9837_v40 = vld [vmem:[#allocation11 + $0x78] sm:$0xff]  }
 0x3c5   :  { %7567 = vmatpush1.bf16.msra.mxu0 %v9778_v21  ;;  %v3897_v21 = vld [vmem:[#allocation10] sm:$0x3] }
 0x3c6   :  { %7568 = vmatprep.subr.bf16.mxu0 %v9783_v57  ;;  %v11269_v57 = vld [vmem:[#allocation20_spill] sm:$0xff] }
 0x3c8   :  { %7534 = vmatmul.mubr.bf16.gmra.mrb[116].mxu0 %v11266_v22 }
 0x3c9   :  { %7543 = vmatprep.mubr.bf16.mxu0 %v11267_v56  ;;  %7569 = vmatpush1.bf16.msra.mxu0 %v9781_v34  ;;  %v11137_v34 = vrot.slane %v3897_v21, %v11269_v57 }
 0x3ca   :  { %7570 = vmatprep.subr.bf16.mxu0 %v9786_v43  ;;  %v11270_v43 = vld [vmem:[#allocation21_spill] sm:$0xff] }
 0x3cb   :  { %v11140_v22 = vrot.slane %v3897_v21, %v11270_v43 }
 0x3cd   :  { %7571 = vmatpush1.bf16.msra.mxu0 %v9784_v7 }
 0x3ce   :  { %7572 = vmatprep.subr.bf16.mxu0 %v9789_v45 }
 0x3d0   :  { %7544 = vmatmul.mubr.bf16.gmra.mrb[120].mxu0 %v11268_v11 }
 0x3d1   :  { %7553 = vmatprep.mubr.bf16.mxu0 %v10946_v44  ;;  %7573 = vmatpush1.bf16.msra.mxu0 %v9787_v5  ;;  %v9796_v44 = vld [vmem:[#allocation8 + $0xf70] ss:$8 sps:$4 sm:$0xff]  }
 0x3d2   :  { %7574 = vmatprep.subr.bf16.mxu0 %v9792_v30 }
 0x3d5   :  { %7575 = vmatpush1.bf16.msra.mxu0 %v9790_v8 }
 0x3d6   :  { %7576 = vmatprep.subr.bf16.mxu0 %v9795_v54 }
 0x3d8   :  { %7554 = vmatmul.mubr.bf16.gmra.mrb[124].mxu0 %v10942_v13  ;;  %v9832_v13 = vld [vmem:[#allocation11 + $0x20] sm:$0xff]  }
 0x3d9   :  { %7577 = vmatpush1.bf16.msra.mxu0 %v9793_v26  ;;  %7596 = vmatprep.mubr.bf16.mxu0 %v11022_v50  ;;  %v9807_v50 = vld [vmem:[#allocation8 + $0xfa4] ss:$8 sps:$4 sm:$0xff]  }
 0x3da   :  { %7578 = vmatprep.subr.bf16.mxu0 %v9798_v48  ;;  %8754 = vmatpush3.bf16.msra.mxu1 %v9832_v13 }
 0x3db   :  { %8755 = vmatprep.subr.bf16.mxu1 %v9833_v27 }
 0x3dd   :  { %7579 = vmatpush1.bf16.msra.mxu0 %v9796_v44 }
 0x3de   :  { %7580 = vmatprep.subr.bf16.mxu0 %v9801_v53 }
 0x3e1   :  { %7581 = vmatpush1.bf16.msra.mxu0 %v9799_v12 }
 0x3e2   :  { %7582 = vmatprep.subr.bf16.mxu0 %v9804_v51 }
 0x3e5   :  { %7583 = vmatpush1.bf16.msra.mxu0 %v9802_v46 }
 0x3e6   :  { %7584 = vmatprep.subr.bf16.mxu0 %v9807_v50 }
 0x3e9   :  { %7585 = vmatpush1.bf16.msra.mxu0 %v9805_v49 }
 0x3ea   :  { %7586 = vmatprep.subr.bf16.mxu0 %v9810_v63 }
 0x3ed   :  { %7587 = vmatpush1.bf16.msra.mxu0 %v9808_v16 }
 0x3ee   :  { %7588 = vmatprep.subr.bf16.mxu0 %v9813_v33 }
 0x3f1   :  { %7589 = vmatpush1.bf16.msra.mxu0 %v9811_v14 }
 0x3f2   :  { %7590 = vmatprep.subr.bf16.mxu0 %v9816_v59 }
 0x3f5   :  { %7591 = vmatpush1.bf16.msra.mxu0 %v9814_v47 }
 0x3f6   :  { %7592 = vmatprep.subr.bf16.mxu0 %v9819_v25 }
 0x3f9   :  { %7593 = vmatpush1.bf16.msra.mxu0 %v9817_v2 }
 0x3fa   :  { %7594 = vmatprep.subr.bf16.mxu0 %v9822_v3 }
 0x3fd   :  { %7595 = vmatpush1.bf16.msra.mxu0 %v9820_v37 }
 0x400   :  { %7597 = vmatmul.mubr.bf16.vlgmr.msra.gmra.mrb[112].mxu0 %v11020_v28 }
 0x401   :  { %7606 = vmatprep.mubr.bf16.mxu0 %v11041_v60 }
 0x408   :  { %7607 = vmatmul.mubr.bf16.gmra.mrb[116].mxu0 %v11038_v6 }
 0x409   :  { %7616 = vmatprep.mubr.bf16.mxu0 %v11051_v42 }
 0x410   :  { %7617 = vmatmul.mubr.bf16.gmra.mrb[120].mxu0 %v11048_v18 }
 0x411   :  { %7626 = vmatprep.mubr.bf16.mxu0 %v11060_v23 }
 0x418   :  { %7627 = vmatmul.mubr.bf16.gmra.mrb[124].mxu0 %v11058_v17  ;;  %v9834_v17 = vld [vmem:[#allocation11 + $0x28] sm:$0xff]  }
 0x419   :  { %8756 = vmatpush3.bf16.msra.mxu1 %v9834_v17 }
 0x41a   :  { %8757 = vmatprep.subr.bf16.mxu1 %v9835_v35 }
 0x41d   :  { %8758 = vmatpush3.bf16.msra.mxu1 %v9836_v61 }
 0x41e   :  { %8759 = vmatprep.subr.bf16.mxu1 %v9837_v40 }
 0x421   :  { %8760 = vmatpush3.bf16.msra.mxu1 %v9838_v31 }
 0x435   :  { %v6941_v1 = vpop.f32.mrb[144].mxu1 }
 0x436   :  { %v6943_v19 = vpop.f32.mrb[145].mxu1  ;;  %v8785_v56 = vadd.f32 %v6941_v1, %v11137_v34 }
 0x437   :  { %v6945_v52 = vpop.f32.mrb[146].mxu1  ;;  %v8787_v7 = vadd.f32 %v6943_v19, %v11140_v22 }
 0x438   :  { %v6947_v4 = vpop.f32.mrb[147].mxu1  ;;  %v8789_v5 = vadd.f32 %v6945_v52, %v11137_v34 }
 0x439   :  { %v8791_v8 = vadd.f32 %v6947_v4, %v11140_v22 }
 0x43d   :  { %v6951_v55 = vpop.f32.mrb[148].mxu1 }
 0x43e   :  { %v6953_v58 = vpop.f32.mrb[149].mxu1  ;;  %v8793_v44 = vadd.f32 %v6951_v55, %v11137_v34 }
 0x43f   :  { %v6955_v38 = vpop.f32.mrb[150].mxu1  ;;  %v8795_v53 = vadd.f32 %v6953_v58, %v11140_v22 }
 0x440   :  { %v6957_v28 = vpop.f32.mrb[151].mxu1  ;;  %v8797_v41 = vadd.f32 %v6955_v38, %v11137_v34 }
 0x441   :  { %v8799_v46 = vadd.f32 %v6957_v28, %v11140_v22 }
 0x445   :  { %v6961_v62 = vpop.f32.mrb[152].mxu1 }
 0x446   :  { %v6963_v60 = vpop.f32.mrb[153].mxu1  ;;  %v8801_v25 = vadd.f32 %v6961_v62, %v11137_v34 }
 0x447   :  { %v6965_v32 = vpop.f32.mrb[154].mxu1  ;;  %v8803_v3 = vadd.f32 %v6963_v60, %v11140_v22 }
 0x448   :  { %v6967_v6 = vpop.f32.mrb[155].mxu1  ;;  %v8805_v19 = vadd.f32 %v6965_v32, %v11137_v34 }
 0x449   :  { %v8807_v55 = vadd.f32 %v6967_v6, %v11140_v22 }
 0x44d   :  { %v11128_v0 = vpop.f32.mrb[156].mxu1 }
 0x44e   :  { %v11130_v42 = vpop.f32.mrb[157].mxu1  ;;  %v8809_v60 = vadd.f32 %v11128_v0, %v11137_v34 }
 0x44f   :  { %v11132_v18 = vpop.f32.mrb[158].mxu1  ;;  %v8811_v32 = vadd.f32 %v11130_v42, %v11140_v22 }
 0x450   :  { %v11134_v23 = vpop.f32.mrb[159].mxu1  ;;  %v8813_v43 = vadd.f32 %v11132_v18, %v11137_v34 }
 0x4d3   :  { %v7598_v45 = vpop.f32.mrb[112].mxu0 }
 0x4d4   :  { %v8786_v30 = vadd.f32 %v8785_v56, %v7598_v45  ;;  %v7600_v11 = vpop.f32.mrb[113].mxu0  ;;  %v8815_v45 = vadd.f32 %v11134_v23, %v11140_v22  ;;  %v8689_v23 = vld [vmem:[#allocation13] ss:$0 sm:$0xff] }
 0x4d5   :  { %v8788_v20 = vadd.f32 %v8787_v7, %v7600_v11  ;;  %v7602_v15 = vpop.f32.mrb[114].mxu0 }
 0x4d6   :  { %v8790_v24 = vadd.f32 %v8789_v5, %v7602_v15  ;;  %v7604_v54 = vpop.f32.mrb[115].mxu0  ;;  %v7637_v26 = vmax.f32 %v8786_v30, 0.0 }
 0x4d7   :  { %v8792_v36 = vadd.f32 %v8791_v8, %v7604_v54  ;;  %v7638_v29 = vmax.f32 %v8788_v20, 0.0 }
 0x4d8   :  { %v7639_v48 = vmax.f32 %v8790_v24, 0.0 }
 0x4d9   :  { %v7640_v39 = vmax.f32 %v8792_v36, 0.0 }
 0x4da   :  { %v7653_v9 = vpack.c.bf16 %v7639_v48, %v7637_v26 }
 0x4db   :  { %v7654_v10 = vpack.c.bf16 %v7640_v39, %v7638_v29  ;;  %v7608_v12 = vpop.f32.mrb[116].mxu0 }
 0x4dc   :  { %v8794_v51 = vadd.f32 %v8793_v44, %v7608_v12  ;;  %v7610_v13 = vpop.f32.mrb[117].mxu0 }
 0x4dd   :  { %v8796_v27 = vadd.f32 %v8795_v53, %v7610_v13  ;;  %v7612_v50 = vpop.f32.mrb[118].mxu0  ;;  %7828 = vmatprep.mubr.bf16.mxu1 %v7654_v10 }
 0x4de   :  { %v8798_v49 = vadd.f32 %v8797_v41, %v7612_v50  ;;  %v7614_v63 = vpop.f32.mrb[119].mxu0  ;;  %7829 = vmatmul.mubr.bf16.vlgmr.msra.gmra.mrb[160].mxu1 %v7653_v9  ;;  %v7641_v33 = vmax.f32 %v8794_v51, 0.0 }
 0x4df   :  { %v8800_v16 = vadd.f32 %v8799_v46, %v7614_v63  ;;  %v7642_v59 = vmax.f32 %v8796_v27, 0.0 }
 0x4e0   :  { %v7643_v14 = vmax.f32 %v8798_v49, 0.0 }
 0x4e1   :  { %v7644_v47 = vmax.f32 %v8800_v16, 0.0 }
 0x4e2   :  { %v7655_v2 = vpack.c.bf16 %v7643_v14, %v7641_v33 }
 0x4e3   :  { %v7656_v37 = vpack.c.bf16 %v7644_v47, %v7642_v59  ;;  %v7618_v1 = vpop.f32.mrb[120].mxu0 }
 0x4e4   :  { %v8802_v52 = vadd.f32 %v8801_v25, %v7618_v1  ;;  %v7620_v4 = vpop.f32.mrb[121].mxu0 }
 0x4e5   :  { %v8804_v58 = vadd.f32 %v8803_v3, %v7620_v4  ;;  %v7622_v38 = vpop.f32.mrb[122].mxu0  ;;  %7836 = vmatprep.mubr.bf16.mxu1 %v7656_v37 }
 0x4e6   :  { %v8806_v28 = vadd.f32 %v8805_v19, %v7622_v38  ;;  %v7624_v17 = vpop.f32.mrb[123].mxu0  ;;  %7837 = vmatmul.mubr.bf16.gmra.mrb[164].mxu1 %v7655_v2  ;;  %v7645_v61 = vmax.f32 %v8802_v52, 0.0 }
 0x4e7   :  { %v8808_v35 = vadd.f32 %v8807_v55, %v7624_v17  ;;  %v7646_v40 = vmax.f32 %v8804_v58, 0.0 }
 0x4e8   :  { %v7647_v62 = vmax.f32 %v8806_v28, 0.0 }
 0x4e9   :  { %v7648_v31 = vmax.f32 %v8808_v35, 0.0 }
 0x4ea   :  { %v7657_v21 = vpack.c.bf16 %v7647_v62, %v7645_v61 }
 0x4eb   :  { %v7658_v57 = vpack.c.bf16 %v7648_v31, %v7646_v40  ;;  %v7628_v6 = vpop.f32.mrb[124].mxu0 }
 0x4ec   :  { %v8810_v56 = vadd.f32 %v8809_v60, %v7628_v6  ;;  %v7630_v7 = vpop.f32.mrb[125].mxu0 }
 0x4ed   :  { %v8812_v5 = vadd.f32 %v8811_v32, %v7630_v7  ;;  %v7632_v30 = vpop.f32.mrb[126].mxu0  ;;  %7844 = vmatprep.mubr.bf16.mxu1 %v7658_v57 }
 0x4ee   :  { %v8814_v11 = vadd.f32 %v8813_v43, %v7632_v30  ;;  %v7634_v8 = vpop.f32.mrb[127].mxu0  ;;  %7845 = vmatmul.mubr.bf16.gmra.mrb[168].mxu1 %v7657_v21  ;;  %v7649_v20 = vmax.f32 %v8810_v56, 0.0 }
 0x4ef   :  { %v8816_v0 = vadd.f32 %v8815_v45, %v7634_v8  ;;  %v7650_v42 = vmax.f32 %v8812_v5, 0.0 }
 0x4f0   :  { %v7651_v15 = vmax.f32 %v8814_v11, 0.0 }
 0x4f1   :  { %v7652_v24 = vmax.f32 %v8816_v0, 0.0 }
 0x4f2   :  { %v7659_v54 = vpack.c.bf16 %v7651_v15, %v7649_v20 }
 0x4f3   :  { %v7660_v36 = vpack.c.bf16 %v7652_v24, %v7650_v42 }
 0x4f5   :  { %7852 = vmatprep.mubr.bf16.mxu1 %v7660_v36 }
 0x4f6   :  { %7853 = vmatmul.mubr.bf16.gmra.mrb[172].mxu1 %v7659_v54 }
 0x5b1   :  { %v8761_v18 = vpop.f32.mrb[160].mxu1 }
 0x5b2   :  { %v8762_v34 = vpop.f32.mrb[161].mxu1 }
 0x5b3   :  { %v8763_v26 = vadd.f32 %v8762_v34, %v8761_v18  ;;  %v8764_v48 = vpop.f32.mrb[162].mxu1 }
 0x5b4   :  { %v8765_v22 = vpop.f32.mrb[163].mxu1 }
 0x5b5   :  { %v8766_v29 = vadd.f32 %v8765_v22, %v8764_v48  ;;  %v7831_v39 = vadd.f32 %v8763_v26, %v8689_v23 }
 0x5b7   :  { %v7834_v44 = vadd.f32 %v8766_v29, %v8689_v23 }
 0x5b9   :  { %v8725_v9 = vpack.c.bf16 %v7834_v44, %v7831_v39  ;;  %v8767_v53 = vpop.f32.mrb[164].mxu1 }
 0x5ba   :  { %v8768_v10 = vpop.f32.mrb[165].mxu1 }
 0x5bb   :  { %8726 = vst [vmem:[#allocation14] sm:$0xff] %v8725_v9   ;;  %v8769_v12 = vadd.f32 %v8768_v10, %v8767_v53  ;;  %v8770_v41 = vpop.f32.mrb[166].mxu1 }
 0x5bc   :  { %v8771_v51 = vpop.f32.mrb[167].mxu1 }
 0x5bd   :  { %v8772_v13 = vadd.f32 %v8771_v51, %v8770_v41  ;;  %v7839_v46 = vadd.f32 %v8769_v12, %v8689_v23 }
 0x5bf   :  { %v7842_v27 = vadd.f32 %v8772_v13, %v8689_v23 }
 0x5c1   :  { %v8730_v50 = vpack.c.bf16 %v7842_v27, %v7839_v46  ;;  %v8773_v49 = vpop.f32.mrb[168].mxu1 }
 0x5c2   :  { %v8774_v63 = vpop.f32.mrb[169].mxu1 }
 0x5c3   :  { %8742 = vst [vmem:[#allocation14 + $0x8] sm:$0xff] %v8730_v50   ;;  %v8775_v16 = vadd.f32 %v8774_v63, %v8773_v49  ;;  %v8776_v33 = vpop.f32.mrb[170].mxu1 }
 0x5c4   :  { %v8777_v14 = vpop.f32.mrb[171].mxu1 }
 0x5c5   :  { %v8778_v59 = vadd.f32 %v8777_v14, %v8776_v33  ;;  %v7847_v47 = vadd.f32 %v8775_v16, %v8689_v23 }
 0x5c7   :  { %v7850_v25 = vadd.f32 %v8778_v59, %v8689_v23 }
 0x5c9   :  { %v8735_v2 = vpack.c.bf16 %v7850_v25, %v7847_v47  ;;  %v8779_v3 = vpop.f32.mrb[172].mxu1 }
 0x5ca   :  { %v8780_v37 = vpop.f32.mrb[173].mxu1 }
 0x5cb   :  { %8743 = vst [vmem:[#allocation14 + $0x10] sm:$0xff] %v8735_v2   ;;  %v8781_v1 = vadd.f32 %v8780_v37, %v8779_v3  ;;  %v8782_v19 = vpop.f32.mrb[174].mxu1 }
 0x5cc   :  { %v8783_v52 = vpop.f32.mrb[175].mxu1 }
 0x5cd   :  { %v8784_v4 = vadd.f32 %v8783_v52, %v8782_v19  ;;  %v7855_v55 = vadd.f32 %v8781_v1, %v8689_v23 }
 0x5cf   :  { %v7858_v58 = vadd.f32 %v8784_v4, %v8689_v23 }
 0x5d1   :  { %v8740_v38 = vpack.c.bf16 %v7858_v58, %v7855_v55 }
 0x5d3   :  { %8744 = vst [vmem:[#allocation14 + $0x18] sm:$0xff] %v8740_v38  }
 0x5d4   :  { %10006 = shalt.err (!%p10003_p4)
}
 0x5d5   :  { %s10007_s20 = scalar_lea.hbm %s11184_s7, 512 }
 0x5d6   :  { %p10008_p5 = scmp.ne.s32.totalorder %s11184_s7, %s10007_s20  ;;  %p10011_p6 = scmp.lt.u32.totalorder %s10007_s20, %s11184_s7 }
 0x5d8   :  { %p10013_p7 = pnand %p10011_p6, %p10008_p5 }
 0x5da   :  { %10016 = shalt.err (!%p10013_p7)
}
 0x5db   :  { %7912 = dma.vmem_to_hbm [thread:$0]  %s7907_s0, 512, %s11184_s7, [#allocation4], %s10033_s3, %s10033_s3, %s10034_s15  }
 0x5dc   :  { %10025 = dma.done.wait [#allocation4], 512  }
 0x5dd   :  { %10026 = vsyncadd [#allocation4], 4294966784 }
 0x5de   :  { %7916 = vsyncpa [#allocation3], 1 }
 0x5df   :  { %7917 = vsyncpa [#allocation6], 1 }
 0x5e0   :  { %7918 = vsyncpa [#allocation9], 1 }
 0x5e1   :  { %7919 = vsyncpa [#allocation12], 1 }
 0x5e2   :  { %7920 = vsyncpa [#allocation4], 1 }

</bundles_post_ra>
